<compile_context>
chip_gen: v6e
topology: v6e:2x2x1
jax: 0.10.0
libtpu: 0.0.40
codegen_flags: <defaults>
</compile_context>

<pallas_src>
import jax
import jax.numpy as jnp
from jax import lax
from jax.experimental import pallas as pl
from jax.experimental.pallas import tpu as pltpu

SUBSTEPS = 4      # fixed RK4 substeps per shooting interval
BATCH_TILE = 8    # sublane tile: rows of the batch handled per grid program


def ms_ode_kernel(tspan_ref, x0_ref, w_ref, b_ref, sol_ref):
    """Integrate dx/dt = tanh(x @ W + b) over t_span for one batch tile.

    tspan_ref : SMEM  [T]                 f32
    x0_ref    : VMEM  [BATCH_TILE, D]     f32
    w_ref     : VMEM  [D, D]              f32
    b_ref     : VMEM  [1, D]              f32
    sol_ref   : VMEM  [T, BATCH_TILE, D]  f32 (output)
    """
    T = sol_ref.shape[0]

    # W / b resident in vregs for the entire time loop.
    w = w_ref[...]
    b = b_ref[...]

    def vf(x):
        # vector field: tanh(x @ W + b)   (MXU matmul + EUP tanh)
        return jnp.tanh(jnp.dot(x, w, preferred_element_type=jnp.float32) + b)

    x = x0_ref[...]
    sol_ref[0] = x

    # Both loops fully unrolled (T and SUBSTEPS are compile-time constants):
    # static VMEM store indices, zero loop-control overhead on the serial
    # latency chain.
    for i in range(T - 1):
        t0 = tspan_ref[i]
        t1 = tspan_ref[i + 1]
        dt = (t1 - t0) * jnp.float32(1.0 / SUBSTEPS)
        half_dt = jnp.float32(0.5) * dt
        dt6 = dt * jnp.float32(1.0 / 6.0)
        for _ in range(SUBSTEPS):
            k1 = vf(x)
            k2 = vf(x + half_dt * k1)
            k3 = vf(x + half_dt * k2)
            k4 = vf(x + dt * k3)
            x = x + dt6 * (k1 + 2.0 * k2 + 2.0 * k3 + k4)
        sol_ref[i + 1] = x


def multiple_shooting_forward(x0, t_span, W, b):
    """Pallas analogue of MultipleShootingProblem.forward -> (t_eval, sol)."""
    T = t_span.shape[0]
    B, D = x0.shape

    # Pad the batch to a sublane-tile multiple so any B runs.
    B_pad = pl.cdiv(B, BATCH_TILE) * BATCH_TILE
    x0p = x0.astype(jnp.float32)
    if B_pad != B:
        x0p = jnp.pad(x0p, ((0, B_pad - B), (0, 0)))

    grid = (B_pad // BATCH_TILE,)

    sol = pl.pallas_call(
        ms_ode_kernel,
        out_shape=jax.ShapeDtypeStruct((T, B_pad, D), jnp.float32),
        grid=grid,
        in_specs=[
            # t_span: full array, scalar memory.
            pl.BlockSpec(memory_space=pltpu.MemorySpace.SMEM),
            # x0: one batch tile per grid program.
            pl.BlockSpec((BATCH_TILE, D), lambda i: (i, 0)),
            # W, b: same full block every program (fetched once, stays resident).
            pl.BlockSpec((D, D), lambda i: (0, 0)),
            pl.BlockSpec((1, D), lambda i: (0, 0)),
        ],
        out_specs=pl.BlockSpec((T, BATCH_TILE, D), lambda i: (0, i, 0)),
        compiler_params=pltpu.CompilerParams(
            dimension_semantics=("parallel",)),  # shards batch tiles across TCs on v7x
    )(t_span.astype(jnp.float32), x0p,
      W.astype(jnp.float32), b.astype(jnp.float32))

    if B_pad != B:
        sol = sol[:, :B, :]

    # t_eval passthrough (glue, no compute) — matches `return (t_eval, sol)`.
    return t_span, sol


def _reference(x0, t_span, W, b):
    """Pure-JAX reference for correctness check."""
    def vf(x):
        return jnp.tanh(x @ W + b)

    def interval(x, pair):
        t0, t1 = pair
        dt = (t1 - t0) / SUBSTEPS

        def step(xc, _):
            k1 = vf(xc)
            k2 = vf(xc + 0.5 * dt * k1)
            k3 = vf(xc + 0.5 * dt * k2)
            k4 = vf(xc + dt * k3)
            return xc + (dt / 6.0) * (k1 + 2 * k2 + 2 * k3 + k4), None

        x_next, _ = lax.scan(step, x, None, length=SUBSTEPS)
        return x_next, x_next

    _, traj = lax.scan(interval, x0, (t_span[:-1], t_span[1:]))
    return jnp.concatenate([x0[None], traj], axis=0)


if __name__ == "__main__":
    key = jax.random.PRNGKey(0)
    kx, kw = jax.random.split(key)

    B, D, T = 16, 32, 8  # batch, state dim, number of shooting nodes

    x0 = jax.random.normal(kx, (B, D), dtype=jnp.float32)
    t_span = jnp.linspace(0.0, 1.0, T, dtype=jnp.float32)

    # Deterministic synthetic vector-field parameters (the module's vf_params).
    W = 0.1 * jax.random.normal(kw, (D, D), dtype=jnp.float32)
    b = jnp.zeros((1, D), dtype=jnp.float32)

    t_eval, sol = multiple_shooting_forward(x0, t_span, W, b)
    sol = jax.block_until_ready(sol)

    ref = _reference(x0, t_span, W, b)
    assert sol.shape == (T, B, D)
    assert jnp.allclose(sol, ref, atol=1e-5, rtol=1e-5), "mismatch vs JAX reference"

    print("KERNEL_OK")
</pallas_src>

<mosaic_0001>
module attributes {stable_mosaic.version = 11 : i64} {
  func.func @ms_ode_kernel(%arg0: i32, %arg1: memref<8xf32, #tpu.memory_space<smem>>, %arg2: memref<8x32xf32, #tpu.memory_space<vmem>>, %arg3: memref<32x32xf32, #tpu.memory_space<vmem>>, %arg4: memref<1x32xf32, #tpu.memory_space<vmem>>, %arg5: memref<8x8x32xf32, #tpu.memory_space<vmem>>) attributes {dimension_semantics = [#tpu.dimension_semantics<parallel>], iteration_bounds = array<i64: 2>, scalar_prefetch = 0 : i64, scratch_operands = 0 : i64, tpu.core_type = #tpu.core_type<tc>, window_params = [{transform_indices = @transform_0, window_bounds = array<i64: 8>}, {transform_indices = @transform_1, window_bounds = array<i64: 8, 32>}, {pipeline_mode = #tpu.pipeline_mode<synchronous>, transform_indices = @transform_2, window_bounds = array<i64: 32, 32>}, {pipeline_mode = #tpu.pipeline_mode<synchronous>, transform_indices = @transform_3, window_bounds = array<i64: 1, 32>}, {transform_indices = @transform_4, window_bounds = array<i64: 8, 8, 32>}]} {
    %c0 = arith.constant 0 : index
    %c0_0 = arith.constant 0 : index
    %0 = vector.load %arg3[%c0, %c0_0] : memref<32x32xf32, #tpu.memory_space<vmem>>, vector<32x32xf32>
    %c0_1 = arith.constant 0 : index
    %c0_2 = arith.constant 0 : index
    %1 = vector.load %arg4[%c0_1, %c0_2] : memref<1x32xf32, #tpu.memory_space<vmem>>, vector<1x32xf32>
    %c0_3 = arith.constant 0 : index
    %c0_4 = arith.constant 0 : index
    %2 = vector.load %arg2[%c0_3, %c0_4] : memref<8x32xf32, #tpu.memory_space<vmem>>, vector<8x32xf32>
    %c0_5 = arith.constant 0 : index
    %c0_6 = arith.constant 0 : index
    %c0_7 = arith.constant 0 : index
    %3 = vector.load %arg5[%c0_5, %c0_6, %c0_7] : memref<8x8x32xf32, #tpu.memory_space<vmem>>, vector<1x8x32xf32>
    %4 = vector.shape_cast %3 : vector<1x8x32xf32> to vector<8x32xf32>
    %5 = vector.shape_cast %2 : vector<8x32xf32> to vector<1x8x32xf32>
    tpu.vector_store %arg5[%c0_5, %c0_6, %c0_7], %5 {strides = array<i32>} : memref<8x8x32xf32, #tpu.memory_space<vmem>>, vector<1x8x32xf32>,
    %c0_8 = arith.constant 0 : index
    %6 = memref.load %arg1[%c0_8] : memref<8xf32, #tpu.memory_space<smem>>
    %c1 = arith.constant 1 : index
    %7 = memref.load %arg1[%c1] : memref<8xf32, #tpu.memory_space<smem>>
    %8 = arith.subf %7, %6 : f32
    %cst = arith.constant 2.500000e-01 : f32
    %9 = arith.mulf %8, %cst : f32
    %cst_9 = arith.constant 5.000000e-01 : f32
    %10 = arith.mulf %cst_9, %9 : f32
    %cst_10 = arith.constant 0.166666672 : f32
    %11 = arith.mulf %9, %cst_10 : f32
    %cst_11 = arith.constant dense<0.000000e+00> : vector<8x32xf32>
    %12 = tpu.matmul %2, %0, %cst_11 {dimension_numbers = #tpu.dot_dimension_numbers<[1], [0], [0], [1], [0, 0, 1, 1], [], []>} : vector<8x32xf32>, vector<32x32xf32>, vector<8x32xf32> -> vector<8x32xf32>
    %13 = vector.broadcast %1 : vector<1x32xf32> to vector<8x32xf32>
    %14 = arith.addf %12, %13 : vector<8x32xf32>
    %15 = math.tanh %14 : vector<8x32xf32>
    %16 = vector.broadcast %10 : f32 to vector<8x32xf32>
    %17 = arith.mulf %16, %15 : vector<8x32xf32>
    %18 = arith.addf %2, %17 : vector<8x32xf32>
    %cst_12 = arith.constant dense<0.000000e+00> : vector<8x32xf32>
    %19 = tpu.matmul %18, %0, %cst_12 {dimension_numbers = #tpu.dot_dimension_numbers<[1], [0], [0], [1], [0, 0, 1, 1], [], []>} : vector<8x32xf32>, vector<32x32xf32>, vector<8x32xf32> -> vector<8x32xf32>
    %20 = vector.broadcast %1 : vector<1x32xf32> to vector<8x32xf32>
    %21 = arith.addf %19, %20 : vector<8x32xf32>
    %22 = math.tanh %21 : vector<8x32xf32>
    %23 = vector.broadcast %10 : f32 to vector<8x32xf32>
    %24 = arith.mulf %23, %22 : vector<8x32xf32>
    %25 = arith.addf %2, %24 : vector<8x32xf32>
    %cst_13 = arith.constant dense<0.000000e+00> : vector<8x32xf32>
    %26 = tpu.matmul %25, %0, %cst_13 {dimension_numbers = #tpu.dot_dimension_numbers<[1], [0], [0], [1], [0, 0, 1, 1], [], []>} : vector<8x32xf32>, vector<32x32xf32>, vector<8x32xf32> -> vector<8x32xf32>
    %27 = vector.broadcast %1 : vector<1x32xf32> to vector<8x32xf32>
    %28 = arith.addf %26, %27 : vector<8x32xf32>
    %29 = math.tanh %28 : vector<8x32xf32>
    %30 = vector.broadcast %9 : f32 to vector<8x32xf32>
    %31 = arith.mulf %30, %29 : vector<8x32xf32>
    %32 = arith.addf %2, %31 : vector<8x32xf32>
    %cst_14 = arith.constant dense<0.000000e+00> : vector<8x32xf32>
    %33 = tpu.matmul %32, %0, %cst_14 {dimension_numbers = #tpu.dot_dimension_numbers<[1], [0], [0], [1], [0, 0, 1, 1], [], []>} : vector<8x32xf32>, vector<32x32xf32>, vector<8x32xf32> -> vector<8x32xf32>
    %34 = vector.broadcast %1 : vector<1x32xf32> to vector<8x32xf32>
    %35 = arith.addf %33, %34 : vector<8x32xf32>
    %36 = math.tanh %35 : vector<8x32xf32>
    %cst_15 = arith.constant 2.000000e+00 : f32
    %37 = vector.broadcast %cst_15 : f32 to vector<8x32xf32>
    %38 = arith.mulf %37, %22 : vector<8x32xf32>
    %39 = arith.addf %15, %38 : vector<8x32xf32>
    %cst_16 = arith.constant 2.000000e+00 : f32
    %40 = vector.broadcast %cst_16 : f32 to vector<8x32xf32>
    %41 = arith.mulf %40, %29 : vector<8x32xf32>
    %42 = arith.addf %39, %41 : vector<8x32xf32>
    %43 = arith.addf %42, %36 : vector<8x32xf32>
    %44 = vector.broadcast %11 : f32 to vector<8x32xf32>
    %45 = arith.mulf %44, %43 : vector<8x32xf32>
    %46 = arith.addf %2, %45 : vector<8x32xf32>
    %cst_17 = arith.constant dense<0.000000e+00> : vector<8x32xf32>
    %47 = tpu.matmul %46, %0, %cst_17 {dimension_numbers = #tpu.dot_dimension_numbers<[1], [0], [0], [1], [0, 0, 1, 1], [], []>} : vector<8x32xf32>, vector<32x32xf32>, vector<8x32xf32> -> vector<8x32xf32>
    %48 = vector.broadcast %1 : vector<1x32xf32> to vector<8x32xf32>
    %49 = arith.addf %47, %48 : vector<8x32xf32>
    %50 = math.tanh %49 : vector<8x32xf32>
    %51 = vector.broadcast %10 : f32 to vector<8x32xf32>
    %52 = arith.mulf %51, %50 : vector<8x32xf32>
    %53 = arith.addf %46, %52 : vector<8x32xf32>
    %cst_18 = arith.constant dense<0.000000e+00> : vector<8x32xf32>
    %54 = tpu.matmul %53, %0, %cst_18 {dimension_numbers = #tpu.dot_dimension_numbers<[1], [0], [0], [1], [0, 0, 1, 1], [], []>} : vector<8x32xf32>, vector<32x32xf32>, vector<8x32xf32> -> vector<8x32xf32>
    %55 = vector.broadcast %1 : vector<1x32xf32> to vector<8x32xf32>
    %56 = arith.addf %54, %55 : vector<8x32xf32>
    %57 = math.tanh %56 : vector<8x32xf32>
    %58 = vector.broadcast %10 : f32 to vector<8x32xf32>
    %59 = arith.mulf %58, %57 : vector<8x32xf32>
    %60 = arith.addf %46, %59 : vector<8x32xf32>
    %cst_19 = arith.constant dense<0.000000e+00> : vector<8x32xf32>
    %61 = tpu.matmul %60, %0, %cst_19 {dimension_numbers = #tpu.dot_dimension_numbers<[1], [0], [0], [1], [0, 0, 1, 1], [], []>} : vector<8x32xf32>, vector<32x32xf32>, vector<8x32xf32> -> vector<8x32xf32>
    %62 = vector.broadcast %1 : vector<1x32xf32> to vector<8x32xf32>
    %63 = arith.addf %61, %62 : vector<8x32xf32>
    %64 = math.tanh %63 : vector<8x32xf32>
    %65 = vector.broadcast %9 : f32 to vector<8x32xf32>
    %66 = arith.mulf %65, %64 : vector<8x32xf32>
    %67 = arith.addf %46, %66 : vector<8x32xf32>
    %cst_20 = arith.constant dense<0.000000e+00> : vector<8x32xf32>
    %68 = tpu.matmul %67, %0, %cst_20 {dimension_numbers = #tpu.dot_dimension_numbers<[1], [0], [0], [1], [0, 0, 1, 1], [], []>} : vector<8x32xf32>, vector<32x32xf32>, vector<8x32xf32> -> vector<8x32xf32>
    %69 = vector.broadcast %1 : vector<1x32xf32> to vector<8x32xf32>
    %70 = arith.addf %68, %69 : vector<8x32xf32>
    %71 = math.tanh %70 : vector<8x32xf32>
    %cst_21 = arith.constant 2.000000e+00 : f32
    %72 = vector.broadcast %cst_21 : f32 to vector<8x32xf32>
    %73 = arith.mulf %72, %57 : vector<8x32xf32>
    %74 = arith.addf %50, %73 : vector<8x32xf32>
    %cst_22 = arith.constant 2.000000e+00 : f32
    %75 = vector.broadcast %cst_22 : f32 to vector<8x32xf32>
    %76 = arith.mulf %75, %64 : vector<8x32xf32>
    %77 = arith.addf %74, %76 : vector<8x32xf32>
    %78 = arith.addf %77, %71 : vector<8x32xf32>
    %79 = vector.broadcast %11 : f32 to vector<8x32xf32>
    %80 = arith.mulf %79, %78 : vector<8x32xf32>
    %81 = arith.addf %46, %80 : vector<8x32xf32>
    %cst_23 = arith.constant dense<0.000000e+00> : vector<8x32xf32>
    %82 = tpu.matmul %81, %0, %cst_23 {dimension_numbers = #tpu.dot_dimension_numbers<[1], [0], [0], [1], [0, 0, 1, 1], [], []>} : vector<8x32xf32>, vector<32x32xf32>, vector<8x32xf32> -> vector<8x32xf32>
    %83 = vector.broadcast %1 : vector<1x32xf32> to vector<8x32xf32>
    %84 = arith.addf %82, %83 : vector<8x32xf32>
    %85 = math.tanh %84 : vector<8x32xf32>
    %86 = vector.broadcast %10 : f32 to vector<8x32xf32>
    %87 = arith.mulf %86, %85 : vector<8x32xf32>
    %88 = arith.addf %81, %87 : vector<8x32xf32>
    %cst_24 = arith.constant dense<0.000000e+00> : vector<8x32xf32>
    %89 = tpu.matmul %88, %0, %cst_24 {dimension_numbers = #tpu.dot_dimension_numbers<[1], [0], [0], [1], [0, 0, 1, 1], [], []>} : vector<8x32xf32>, vector<32x32xf32>, vector<8x32xf32> -> vector<8x32xf32>
    %90 = vector.broadcast %1 : vector<1x32xf32> to vector<8x32xf32>
    %91 = arith.addf %89, %90 : vector<8x32xf32>
    %92 = math.tanh %91 : vector<8x32xf32>
    %93 = vector.broadcast %10 : f32 to vector<8x32xf32>
    %94 = arith.mulf %93, %92 : vector<8x32xf32>
    %95 = arith.addf %81, %94 : vector<8x32xf32>
    %cst_25 = arith.constant dense<0.000000e+00> : vector<8x32xf32>
    %96 = tpu.matmul %95, %0, %cst_25 {dimension_numbers = #tpu.dot_dimension_numbers<[1], [0], [0], [1], [0, 0, 1, 1], [], []>} : vector<8x32xf32>, vector<32x32xf32>, vector<8x32xf32> -> vector<8x32xf32>
    %97 = vector.broadcast %1 : vector<1x32xf32> to vector<8x32xf32>
    %98 = arith.addf %96, %97 : vector<8x32xf32>
    %99 = math.tanh %98 : vector<8x32xf32>
    %100 = vector.broadcast %9 : f32 to vector<8x32xf32>
    %101 = arith.mulf %100, %99 : vector<8x32xf32>
    %102 = arith.addf %81, %101 : vector<8x32xf32>
    %cst_26 = arith.constant dense<0.000000e+00> : vector<8x32xf32>
    %103 = tpu.matmul %102, %0, %cst_26 {dimension_numbers = #tpu.dot_dimension_numbers<[1], [0], [0], [1], [0, 0, 1, 1], [], []>} : vector<8x32xf32>, vector<32x32xf32>, vector<8x32xf32> -> vector<8x32xf32>
    %104 = vector.broadcast %1 : vector<1x32xf32> to vector<8x32xf32>
    %105 = arith.addf %103, %104 : vector<8x32xf32>
    %106 = math.tanh %105 : vector<8x32xf32>
    %cst_27 = arith.constant 2.000000e+00 : f32
    %107 = vector.broadcast %cst_27 : f32 to vector<8x32xf32>
    %108 = arith.mulf %107, %92 : vector<8x32xf32>
    %109 = arith.addf %85, %108 : vector<8x32xf32>
    %cst_28 = arith.constant 2.000000e+00 : f32
    %110 = vector.broadcast %cst_28 : f32 to vector<8x32xf32>
    %111 = arith.mulf %110, %99 : vector<8x32xf32>
    %112 = arith.addf %109, %111 : vector<8x32xf32>
    %113 = arith.addf %112, %106 : vector<8x32xf32>
    %114 = vector.broadcast %11 : f32 to vector<8x32xf32>
    %115 = arith.mulf %114, %113 : vector<8x32xf32>
    %116 = arith.addf %81, %115 : vector<8x32xf32>
    %cst_29 = arith.constant dense<0.000000e+00> : vector<8x32xf32>
    %117 = tpu.matmul %116, %0, %cst_29 {dimension_numbers = #tpu.dot_dimension_numbers<[1], [0], [0], [1], [0, 0, 1, 1], [], []>} : vector<8x32xf32>, vector<32x32xf32>, vector<8x32xf32> -> vector<8x32xf32>
    %118 = vector.broadcast %1 : vector<1x32xf32> to vector<8x32xf32>
    %119 = arith.addf %117, %118 : vector<8x32xf32>
    %120 = math.tanh %119 : vector<8x32xf32>
    %121 = vector.broadcast %10 : f32 to vector<8x32xf32>
    %122 = arith.mulf %121, %120 : vector<8x32xf32>
    %123 = arith.addf %116, %122 : vector<8x32xf32>
    %cst_30 = arith.constant dense<0.000000e+00> : vector<8x32xf32>
    %124 = tpu.matmul %123, %0, %cst_30 {dimension_numbers = #tpu.dot_dimension_numbers<[1], [0], [0], [1], [0, 0, 1, 1], [], []>} : vector<8x32xf32>, vector<32x32xf32>, vector<8x32xf32> -> vector<8x32xf32>
    %125 = vector.broadcast %1 : vector<1x32xf32> to vector<8x32xf32>
    %126 = arith.addf %124, %125 : vector<8x32xf32>
    %127 = math.tanh %126 : vector<8x32xf32>
    %128 = vector.broadcast %10 : f32 to vector<8x32xf32>
    %129 = arith.mulf %128, %127 : vector<8x32xf32>
    %130 = arith.addf %116, %129 : vector<8x32xf32>
    %cst_31 = arith.constant dense<0.000000e+00> : vector<8x32xf32>
    %131 = tpu.matmul %130, %0, %cst_31 {dimension_numbers = #tpu.dot_dimension_numbers<[1], [0], [0], [1], [0, 0, 1, 1], [], []>} : vector<8x32xf32>, vector<32x32xf32>, vector<8x32xf32> -> vector<8x32xf32>
    %132 = vector.broadcast %1 : vector<1x32xf32> to vector<8x32xf32>
    %133 = arith.addf %131, %132 : vector<8x32xf32>
    %134 = math.tanh %133 : vector<8x32xf32>
    %135 = vector.broadcast %9 : f32 to vector<8x32xf32>
    %136 = arith.mulf %135, %134 : vector<8x32xf32>
    %137 = arith.addf %116, %136 : vector<8x32xf32>
    %cst_32 = arith.constant dense<0.000000e+00> : vector<8x32xf32>
    %138 = tpu.matmul %137, %0, %cst_32 {dimension_numbers = #tpu.dot_dimension_numbers<[1], [0], [0], [1], [0, 0, 1, 1], [], []>} : vector<8x32xf32>, vector<32x32xf32>, vector<8x32xf32> -> vector<8x32xf32>
    %139 = vector.broadcast %1 : vector<1x32xf32> to vector<8x32xf32>
    %140 = arith.addf %138, %139 : vector<8x32xf32>
    %141 = math.tanh %140 : vector<8x32xf32>
    %cst_33 = arith.constant 2.000000e+00 : f32
    %142 = vector.broadcast %cst_33 : f32 to vector<8x32xf32>
    %143 = arith.mulf %142, %127 : vector<8x32xf32>
    %144 = arith.addf %120, %143 : vector<8x32xf32>
    %cst_34 = arith.constant 2.000000e+00 : f32
    %145 = vector.broadcast %cst_34 : f32 to vector<8x32xf32>
    %146 = arith.mulf %145, %134 : vector<8x32xf32>
    %147 = arith.addf %144, %146 : vector<8x32xf32>
    %148 = arith.addf %147, %141 : vector<8x32xf32>
    %149 = vector.broadcast %11 : f32 to vector<8x32xf32>
    %150 = arith.mulf %149, %148 : vector<8x32xf32>
    %151 = arith.addf %116, %150 : vector<8x32xf32>
    %c1_35 = arith.constant 1 : index
    %c0_36 = arith.constant 0 : index
    %c0_37 = arith.constant 0 : index
    %152 = vector.load %arg5[%c1_35, %c0_36, %c0_37] : memref<8x8x32xf32, #tpu.memory_space<vmem>>, vector<1x8x32xf32>
    %153 = vector.shape_cast %152 : vector<1x8x32xf32> to vector<8x32xf32>
    %154 = vector.shape_cast %151 : vector<8x32xf32> to vector<1x8x32xf32>
    tpu.vector_store %arg5[%c1_35, %c0_36, %c0_37], %154 {strides = array<i32>} : memref<8x8x32xf32, #tpu.memory_space<vmem>>, vector<1x8x32xf32>,
    %c1_38 = arith.constant 1 : index
    %155 = memref.load %arg1[%c1_38] : memref<8xf32, #tpu.memory_space<smem>>
    %c2 = arith.constant 2 : index
    %156 = memref.load %arg1[%c2] : memref<8xf32, #tpu.memory_space<smem>>
    %157 = arith.subf %156, %155 : f32
    %cst_39 = arith.constant 2.500000e-01 : f32
    %158 = arith.mulf %157, %cst_39 : f32
    %cst_40 = arith.constant 5.000000e-01 : f32
    %159 = arith.mulf %cst_40, %158 : f32
    %cst_41 = arith.constant 0.166666672 : f32
    %160 = arith.mulf %158, %cst_41 : f32
    %cst_42 = arith.constant dense<0.000000e+00> : vector<8x32xf32>
    %161 = tpu.matmul %151, %0, %cst_42 {dimension_numbers = #tpu.dot_dimension_numbers<[1], [0], [0], [1], [0, 0, 1, 1], [], []>} : vector<8x32xf32>, vector<32x32xf32>, vector<8x32xf32> -> vector<8x32xf32>
    %162 = vector.broadcast %1 : vector<1x32xf32> to vector<8x32xf32>
    %163 = arith.addf %161, %162 : vector<8x32xf32>
    %164 = math.tanh %163 : vector<8x32xf32>
    %165 = vector.broadcast %159 : f32 to vector<8x32xf32>
    %166 = arith.mulf %165, %164 : vector<8x32xf32>
    %167 = arith.addf %151, %166 : vector<8x32xf32>
    %cst_43 = arith.constant dense<0.000000e+00> : vector<8x32xf32>
    %168 = tpu.matmul %167, %0, %cst_43 {dimension_numbers = #tpu.dot_dimension_numbers<[1], [0], [0], [1], [0, 0, 1, 1], [], []>} : vector<8x32xf32>, vector<32x32xf32>, vector<8x32xf32> -> vector<8x32xf32>
    %169 = vector.broadcast %1 : vector<1x32xf32> to vector<8x32xf32>
    %170 = arith.addf %168, %169 : vector<8x32xf32>
    %171 = math.tanh %170 : vector<8x32xf32>
    %172 = vector.broadcast %159 : f32 to vector<8x32xf32>
    %173 = arith.mulf %172, %171 : vector<8x32xf32>
    %174 = arith.addf %151, %173 : vector<8x32xf32>
    %cst_44 = arith.constant dense<0.000000e+00> : vector<8x32xf32>
    %175 = tpu.matmul %174, %0, %cst_44 {dimension_numbers = #tpu.dot_dimension_numbers<[1], [0], [0], [1], [0, 0, 1, 1], [], []>} : vector<8x32xf32>, vector<32x32xf32>, vector<8x32xf32> -> vector<8x32xf32>
    %176 = vector.broadcast %1 : vector<1x32xf32> to vector<8x32xf32>
    %177 = arith.addf %175, %176 : vector<8x32xf32>
    %178 = math.tanh %177 : vector<8x32xf32>
    %179 = vector.broadcast %158 : f32 to vector<8x32xf32>
    %180 = arith.mulf %179, %178 : vector<8x32xf32>
    %181 = arith.addf %151, %180 : vector<8x32xf32>
    %cst_45 = arith.constant dense<0.000000e+00> : vector<8x32xf32>
    %182 = tpu.matmul %181, %0, %cst_45 {dimension_numbers = #tpu.dot_dimension_numbers<[1], [0], [0], [1], [0, 0, 1, 1], [], []>} : vector<8x32xf32>, vector<32x32xf32>, vector<8x32xf32> -> vector<8x32xf32>
    %183 = vector.broadcast %1 : vector<1x32xf32> to vector<8x32xf32>
    %184 = arith.addf %182, %183 : vector<8x32xf32>
    %185 = math.tanh %184 : vector<8x32xf32>
    %cst_46 = arith.constant 2.000000e+00 : f32
    %186 = vector.broadcast %cst_46 : f32 to vector<8x32xf32>
    %187 = arith.mulf %186, %171 : vector<8x32xf32>
    %188 = arith.addf %164, %187 : vector<8x32xf32>
    %cst_47 = arith.constant 2.000000e+00 : f32
    %189 = vector.broadcast %cst_47 : f32 to vector<8x32xf32>
    %190 = arith.mulf %189, %178 : vector<8x32xf32>
    %191 = arith.addf %188, %190 : vector<8x32xf32>
    %192 = arith.addf %191, %185 : vector<8x32xf32>
    %193 = vector.broadcast %160 : f32 to vector<8x32xf32>
    %194 = arith.mulf %193, %192 : vector<8x32xf32>
    %195 = arith.addf %151, %194 : vector<8x32xf32>
    %cst_48 = arith.constant dense<0.000000e+00> : vector<8x32xf32>
    %196 = tpu.matmul %195, %0, %cst_48 {dimension_numbers = #tpu.dot_dimension_numbers<[1], [0], [0], [1], [0, 0, 1, 1], [], []>} : vector<8x32xf32>, vector<32x32xf32>, vector<8x32xf32> -> vector<8x32xf32>
    %197 = vector.broadcast %1 : vector<1x32xf32> to vector<8x32xf32>
    %198 = arith.addf %196, %197 : vector<8x32xf32>
    %199 = math.tanh %198 : vector<8x32xf32>
    %200 = vector.broadcast %159 : f32 to vector<8x32xf32>
    %201 = arith.mulf %200, %199 : vector<8x32xf32>
    %202 = arith.addf %195, %201 : vector<8x32xf32>
    %cst_49 = arith.constant dense<0.000000e+00> : vector<8x32xf32>
    %203 = tpu.matmul %202, %0, %cst_49 {dimension_numbers = #tpu.dot_dimension_numbers<[1], [0], [0], [1], [0, 0, 1, 1], [], []>} : vector<8x32xf32>, vector<32x32xf32>, vector<8x32xf32> -> vector<8x32xf32>
    %204 = vector.broadcast %1 : vector<1x32xf32> to vector<8x32xf32>
    %205 = arith.addf %203, %204 : vector<8x32xf32>
    %206 = math.tanh %205 : vector<8x32xf32>
    %207 = vector.broadcast %159 : f32 to vector<8x32xf32>
    %208 = arith.mulf %207, %206 : vector<8x32xf32>
    %209 = arith.addf %195, %208 : vector<8x32xf32>
    %cst_50 = arith.constant dense<0.000000e+00> : vector<8x32xf32>
    %210 = tpu.matmul %209, %0, %cst_50 {dimension_numbers = #tpu.dot_dimension_numbers<[1], [0], [0], [1], [0, 0, 1, 1], [], []>} : vector<8x32xf32>, vector<32x32xf32>, vector<8x32xf32> -> vector<8x32xf32>
    %211 = vector.broadcast %1 : vector<1x32xf32> to vector<8x32xf32>
    %212 = arith.addf %210, %211 : vector<8x32xf32>
    %213 = math.tanh %212 : vector<8x32xf32>
    %214 = vector.broadcast %158 : f32 to vector<8x32xf32>
    %215 = arith.mulf %214, %213 : vector<8x32xf32>
    %216 = arith.addf %195, %215 : vector<8x32xf32>
    %cst_51 = arith.constant dense<0.000000e+00> : vector<8x32xf32>
    %217 = tpu.matmul %216, %0, %cst_51 {dimension_numbers = #tpu.dot_dimension_numbers<[1], [0], [0], [1], [0, 0, 1, 1], [], []>} : vector<8x32xf32>, vector<32x32xf32>, vector<8x32xf32> -> vector<8x32xf32>
    %218 = vector.broadcast %1 : vector<1x32xf32> to vector<8x32xf32>
    %219 = arith.addf %217, %218 : vector<8x32xf32>
    %220 = math.tanh %219 : vector<8x32xf32>
    %cst_52 = arith.constant 2.000000e+00 : f32
    %221 = vector.broadcast %cst_52 : f32 to vector<8x32xf32>
    %222 = arith.mulf %221, %206 : vector<8x32xf32>
    %223 = arith.addf %199, %222 : vector<8x32xf32>
    %cst_53 = arith.constant 2.000000e+00 : f32
    %224 = vector.broadcast %cst_53 : f32 to vector<8x32xf32>
    %225 = arith.mulf %224, %213 : vector<8x32xf32>
    %226 = arith.addf %223, %225 : vector<8x32xf32>
    %227 = arith.addf %226, %220 : vector<8x32xf32>
    %228 = vector.broadcast %160 : f32 to vector<8x32xf32>
    %229 = arith.mulf %228, %227 : vector<8x32xf32>
    %230 = arith.addf %195, %229 : vector<8x32xf32>
    %cst_54 = arith.constant dense<0.000000e+00> : vector<8x32xf32>
    %231 = tpu.matmul %230, %0, %cst_54 {dimension_numbers = #tpu.dot_dimension_numbers<[1], [0], [0], [1], [0, 0, 1, 1], [], []>} : vector<8x32xf32>, vector<32x32xf32>, vector<8x32xf32> -> vector<8x32xf32>
    %232 = vector.broadcast %1 : vector<1x32xf32> to vector<8x32xf32>
    %233 = arith.addf %231, %232 : vector<8x32xf32>
    %234 = math.tanh %233 : vector<8x32xf32>
    %235 = vector.broadcast %159 : f32 to vector<8x32xf32>
    %236 = arith.mulf %235, %234 : vector<8x32xf32>
    %237 = arith.addf %230, %236 : vector<8x32xf32>
    %cst_55 = arith.constant dense<0.000000e+00> : vector<8x32xf32>
    %238 = tpu.matmul %237, %0, %cst_55 {dimension_numbers = #tpu.dot_dimension_numbers<[1], [0], [0], [1], [0, 0, 1, 1], [], []>} : vector<8x32xf32>, vector<32x32xf32>, vector<8x32xf32> -> vector<8x32xf32>
    %239 = vector.broadcast %1 : vector<1x32xf32> to vector<8x32xf32>
    %240 = arith.addf %238, %239 : vector<8x32xf32>
    %241 = math.tanh %240 : vector<8x32xf32>
    %242 = vector.broadcast %159 : f32 to vector<8x32xf32>
    %243 = arith.mulf %242, %241 : vector<8x32xf32>
    %244 = arith.addf %230, %243 : vector<8x32xf32>
    %cst_56 = arith.constant dense<0.000000e+00> : vector<8x32xf32>
    %245 = tpu.matmul %244, %0, %cst_56 {dimension_numbers = #tpu.dot_dimension_numbers<[1], [0], [0], [1], [0, 0, 1, 1], [], []>} : vector<8x32xf32>, vector<32x32xf32>, vector<8x32xf32> -> vector<8x32xf32>
    %246 = vector.broadcast %1 : vector<1x32xf32> to vector<8x32xf32>
    %247 = arith.addf %245, %246 : vector<8x32xf32>
    %248 = math.tanh %247 : vector<8x32xf32>
    %249 = vector.broadcast %158 : f32 to vector<8x32xf32>
    %250 = arith.mulf %249, %248 : vector<8x32xf32>
    %251 = arith.addf %230, %250 : vector<8x32xf32>
    %cst_57 = arith.constant dense<0.000000e+00> : vector<8x32xf32>
    %252 = tpu.matmul %251, %0, %cst_57 {dimension_numbers = #tpu.dot_dimension_numbers<[1], [0], [0], [1], [0, 0, 1, 1], [], []>} : vector<8x32xf32>, vector<32x32xf32>, vector<8x32xf32> -> vector<8x32xf32>
    %253 = vector.broadcast %1 : vector<1x32xf32> to vector<8x32xf32>
    %254 = arith.addf %252, %253 : vector<8x32xf32>
    %255 = math.tanh %254 : vector<8x32xf32>
    %cst_58 = arith.constant 2.000000e+00 : f32
    %256 = vector.broadcast %cst_58 : f32 to vector<8x32xf32>
    %257 = arith.mulf %256, %241 : vector<8x32xf32>
    %258 = arith.addf %234, %257 : vector<8x32xf32>
    %cst_59 = arith.constant 2.000000e+00 : f32
    %259 = vector.broadcast %cst_59 : f32 to vector<8x32xf32>
    %260 = arith.mulf %259, %248 : vector<8x32xf32>
    %261 = arith.addf %258, %260 : vector<8x32xf32>
    %262 = arith.addf %261, %255 : vector<8x32xf32>
    %263 = vector.broadcast %160 : f32 to vector<8x32xf32>
    %264 = arith.mulf %263, %262 : vector<8x32xf32>
    %265 = arith.addf %230, %264 : vector<8x32xf32>
    %cst_60 = arith.constant dense<0.000000e+00> : vector<8x32xf32>
    %266 = tpu.matmul %265, %0, %cst_60 {dimension_numbers = #tpu.dot_dimension_numbers<[1], [0], [0], [1], [0, 0, 1, 1], [], []>} : vector<8x32xf32>, vector<32x32xf32>, vector<8x32xf32> -> vector<8x32xf32>
    %267 = vector.broadcast %1 : vector<1x32xf32> to vector<8x32xf32>
    %268 = arith.addf %266, %267 : vector<8x32xf32>
    %269 = math.tanh %268 : vector<8x32xf32>
    %270 = vector.broadcast %159 : f32 to vector<8x32xf32>
    %271 = arith.mulf %270, %269 : vector<8x32xf32>
    %272 = arith.addf %265, %271 : vector<8x32xf32>
    %cst_61 = arith.constant dense<0.000000e+00> : vector<8x32xf32>
    %273 = tpu.matmul %272, %0, %cst_61 {dimension_numbers = #tpu.dot_dimension_numbers<[1], [0], [0], [1], [0, 0, 1, 1], [], []>} : vector<8x32xf32>, vector<32x32xf32>, vector<8x32xf32> -> vector<8x32xf32>
    %274 = vector.broadcast %1 : vector<1x32xf32> to vector<8x32xf32>
    %275 = arith.addf %273, %274 : vector<8x32xf32>
    %276 = math.tanh %275 : vector<8x32xf32>
    %277 = vector.broadcast %159 : f32 to vector<8x32xf32>
    %278 = arith.mulf %277, %276 : vector<8x32xf32>
    %279 = arith.addf %265, %278 : vector<8x32xf32>
    %cst_62 = arith.constant dense<0.000000e+00> : vector<8x32xf32>
    %280 = tpu.matmul %279, %0, %cst_62 {dimension_numbers = #tpu.dot_dimension_numbers<[1], [0], [0], [1], [0, 0, 1, 1], [], []>} : vector<8x32xf32>, vector<32x32xf32>, vector<8x32xf32> -> vector<8x32xf32>
    %281 = vector.broadcast %1 : vector<1x32xf32> to vector<8x32xf32>
    %282 = arith.addf %280, %281 : vector<8x32xf32>
    %283 = math.tanh %282 : vector<8x32xf32>
    %284 = vector.broadcast %158 : f32 to vector<8x32xf32>
    %285 = arith.mulf %284, %283 : vector<8x32xf32>
    %286 = arith.addf %265, %285 : vector<8x32xf32>
    %cst_63 = arith.constant dense<0.000000e+00> : vector<8x32xf32>
    %287 = tpu.matmul %286, %0, %cst_63 {dimension_numbers = #tpu.dot_dimension_numbers<[1], [0], [0], [1], [0, 0, 1, 1], [], []>} : vector<8x32xf32>, vector<32x32xf32>, vector<8x32xf32> -> vector<8x32xf32>
    %288 = vector.broadcast %1 : vector<1x32xf32> to vector<8x32xf32>
    %289 = arith.addf %287, %288 : vector<8x32xf32>
    %290 = math.tanh %289 : vector<8x32xf32>
    %cst_64 = arith.constant 2.000000e+00 : f32
    %291 = vector.broadcast %cst_64 : f32 to vector<8x32xf32>
    %292 = arith.mulf %291, %276 : vector<8x32xf32>
    %293 = arith.addf %269, %292 : vector<8x32xf32>
    %cst_65 = arith.constant 2.000000e+00 : f32
    %294 = vector.broadcast %cst_65 : f32 to vector<8x32xf32>
    %295 = arith.mulf %294, %283 : vector<8x32xf32>
    %296 = arith.addf %293, %295 : vector<8x32xf32>
    %297 = arith.addf %296, %290 : vector<8x32xf32>
    %298 = vector.broadcast %160 : f32 to vector<8x32xf32>
    %299 = arith.mulf %298, %297 : vector<8x32xf32>
    %300 = arith.addf %265, %299 : vector<8x32xf32>
    %c2_66 = arith.constant 2 : index
    %c0_67 = arith.constant 0 : index
    %c0_68 = arith.constant 0 : index
    %301 = vector.load %arg5[%c2_66, %c0_67, %c0_68] : memref<8x8x32xf32, #tpu.memory_space<vmem>>, vector<1x8x32xf32>
    %302 = vector.shape_cast %301 : vector<1x8x32xf32> to vector<8x32xf32>
    %303 = vector.shape_cast %300 : vector<8x32xf32> to vector<1x8x32xf32>
    tpu.vector_store %arg5[%c2_66, %c0_67, %c0_68], %303 {strides = array<i32>} : memref<8x8x32xf32, #tpu.memory_space<vmem>>, vector<1x8x32xf32>,
    %c2_69 = arith.constant 2 : index
    %304 = memref.load %arg1[%c2_69] : memref<8xf32, #tpu.memory_space<smem>>
    %c3 = arith.constant 3 : index
    %305 = memref.load %arg1[%c3] : memref<8xf32, #tpu.memory_space<smem>>
    %306 = arith.subf %305, %304 : f32
    %cst_70 = arith.constant 2.500000e-01 : f32
    %307 = arith.mulf %306, %cst_70 : f32
    %cst_71 = arith.constant 5.000000e-01 : f32
    %308 = arith.mulf %cst_71, %307 : f32
    %cst_72 = arith.constant 0.166666672 : f32
    %309 = arith.mulf %307, %cst_72 : f32
    %cst_73 = arith.constant dense<0.000000e+00> : vector<8x32xf32>
    %310 = tpu.matmul %300, %0, %cst_73 {dimension_numbers = #tpu.dot_dimension_numbers<[1], [0], [0], [1], [0, 0, 1, 1], [], []>} : vector<8x32xf32>, vector<32x32xf32>, vector<8x32xf32> -> vector<8x32xf32>
    %311 = vector.broadcast %1 : vector<1x32xf32> to vector<8x32xf32>
    %312 = arith.addf %310, %311 : vector<8x32xf32>
    %313 = math.tanh %312 : vector<8x32xf32>
    %314 = vector.broadcast %308 : f32 to vector<8x32xf32>
    %315 = arith.mulf %314, %313 : vector<8x32xf32>
    %316 = arith.addf %300, %315 : vector<8x32xf32>
    %cst_74 = arith.constant dense<0.000000e+00> : vector<8x32xf32>
    %317 = tpu.matmul %316, %0, %cst_74 {dimension_numbers = #tpu.dot_dimension_numbers<[1], [0], [0], [1], [0, 0, 1, 1], [], []>} : vector<8x32xf32>, vector<32x32xf32>, vector<8x32xf32> -> vector<8x32xf32>
    %318 = vector.broadcast %1 : vector<1x32xf32> to vector<8x32xf32>
    %319 = arith.addf %317, %318 : vector<8x32xf32>
    %320 = math.tanh %319 : vector<8x32xf32>
    %321 = vector.broadcast %308 : f32 to vector<8x32xf32>
    %322 = arith.mulf %321, %320 : vector<8x32xf32>
    %323 = arith.addf %300, %322 : vector<8x32xf32>
    %cst_75 = arith.constant dense<0.000000e+00> : vector<8x32xf32>
    %324 = tpu.matmul %323, %0, %cst_75 {dimension_numbers = #tpu.dot_dimension_numbers<[1], [0], [0], [1], [0, 0, 1, 1], [], []>} : vector<8x32xf32>, vector<32x32xf32>, vector<8x32xf32> -> vector<8x32xf32>
    %325 = vector.broadcast %1 : vector<1x32xf32> to vector<8x32xf32>
    %326 = arith.addf %324, %325 : vector<8x32xf32>
    %327 = math.tanh %326 : vector<8x32xf32>
    %328 = vector.broadcast %307 : f32 to vector<8x32xf32>
    %329 = arith.mulf %328, %327 : vector<8x32xf32>
    %330 = arith.addf %300, %329 : vector<8x32xf32>
    %cst_76 = arith.constant dense<0.000000e+00> : vector<8x32xf32>
    %331 = tpu.matmul %330, %0, %cst_76 {dimension_numbers = #tpu.dot_dimension_numbers<[1], [0], [0], [1], [0, 0, 1, 1], [], []>} : vector<8x32xf32>, vector<32x32xf32>, vector<8x32xf32> -> vector<8x32xf32>
    %332 = vector.broadcast %1 : vector<1x32xf32> to vector<8x32xf32>
    %333 = arith.addf %331, %332 : vector<8x32xf32>
    %334 = math.tanh %333 : vector<8x32xf32>
    %cst_77 = arith.constant 2.000000e+00 : f32
    %335 = vector.broadcast %cst_77 : f32 to vector<8x32xf32>
    %336 = arith.mulf %335, %320 : vector<8x32xf32>
    %337 = arith.addf %313, %336 : vector<8x32xf32>
    %cst_78 = arith.constant 2.000000e+00 : f32
    %338 = vector.broadcast %cst_78 : f32 to vector<8x32xf32>
    %339 = arith.mulf %338, %327 : vector<8x32xf32>
    %340 = arith.addf %337, %339 : vector<8x32xf32>
    %341 = arith.addf %340, %334 : vector<8x32xf32>
    %342 = vector.broadcast %309 : f32 to vector<8x32xf32>
    %343 = arith.mulf %342, %341 : vector<8x32xf32>
    %344 = arith.addf %300, %343 : vector<8x32xf32>
    %cst_79 = arith.constant dense<0.000000e+00> : vector<8x32xf32>
    %345 = tpu.matmul %344, %0, %cst_79 {dimension_numbers = #tpu.dot_dimension_numbers<[1], [0], [0], [1], [0, 0, 1, 1], [], []>} : vector<8x32xf32>, vector<32x32xf32>, vector<8x32xf32> -> vector<8x32xf32>
    %346 = vector.broadcast %1 : vector<1x32xf32> to vector<8x32xf32>
    %347 = arith.addf %345, %346 : vector<8x32xf32>
    %348 = math.tanh %347 : vector<8x32xf32>
    %349 = vector.broadcast %308 : f32 to vector<8x32xf32>
    %350 = arith.mulf %349, %348 : vector<8x32xf32>
    %351 = arith.addf %344, %350 : vector<8x32xf32>
    %cst_80 = arith.constant dense<0.000000e+00> : vector<8x32xf32>
    %352 = tpu.matmul %351, %0, %cst_80 {dimension_numbers = #tpu.dot_dimension_numbers<[1], [0], [0], [1], [0, 0, 1, 1], [], []>} : vector<8x32xf32>, vector<32x32xf32>, vector<8x32xf32> -> vector<8x32xf32>
    %353 = vector.broadcast %1 : vector<1x32xf32> to vector<8x32xf32>
    %354 = arith.addf %352, %353 : vector<8x32xf32>
    %355 = math.tanh %354 : vector<8x32xf32>
    %356 = vector.broadcast %308 : f32 to vector<8x32xf32>
    %357 = arith.mulf %356, %355 : vector<8x32xf32>
    %358 = arith.addf %344, %357 : vector<8x32xf32>
    %cst_81 = arith.constant dense<0.000000e+00> : vector<8x32xf32>
    %359 = tpu.matmul %358, %0, %cst_81 {dimension_numbers = #tpu.dot_dimension_numbers<[1], [0], [0], [1], [0, 0, 1, 1], [], []>} : vector<8x32xf32>, vector<32x32xf32>, vector<8x32xf32> -> vector<8x32xf32>
    %360 = vector.broadcast %1 : vector<1x32xf32> to vector<8x32xf32>
    %361 = arith.addf %359, %360 : vector<8x32xf32>
    %362 = math.tanh %361 : vector<8x32xf32>
    %363 = vector.broadcast %307 : f32 to vector<8x32xf32>
    %364 = arith.mulf %363, %362 : vector<8x32xf32>
    %365 = arith.addf %344, %364 : vector<8x32xf32>
    %cst_82 = arith.constant dense<0.000000e+00> : vector<8x32xf32>
    %366 = tpu.matmul %365, %0, %cst_82 {dimension_numbers = #tpu.dot_dimension_numbers<[1], [0], [0], [1], [0, 0, 1, 1], [], []>} : vector<8x32xf32>, vector<32x32xf32>, vector<8x32xf32> -> vector<8x32xf32>
    %367 = vector.broadcast %1 : vector<1x32xf32> to vector<8x32xf32>
    %368 = arith.addf %366, %367 : vector<8x32xf32>
    %369 = math.tanh %368 : vector<8x32xf32>
    %cst_83 = arith.constant 2.000000e+00 : f32
    %370 = vector.broadcast %cst_83 : f32 to vector<8x32xf32>
    %371 = arith.mulf %370, %355 : vector<8x32xf32>
    %372 = arith.addf %348, %371 : vector<8x32xf32>
    %cst_84 = arith.constant 2.000000e+00 : f32
    %373 = vector.broadcast %cst_84 : f32 to vector<8x32xf32>
    %374 = arith.mulf %373, %362 : vector<8x32xf32>
    %375 = arith.addf %372, %374 : vector<8x32xf32>
    %376 = arith.addf %375, %369 : vector<8x32xf32>
    %377 = vector.broadcast %309 : f32 to vector<8x32xf32>
    %378 = arith.mulf %377, %376 : vector<8x32xf32>
    %379 = arith.addf %344, %378 : vector<8x32xf32>
    %cst_85 = arith.constant dense<0.000000e+00> : vector<8x32xf32>
    %380 = tpu.matmul %379, %0, %cst_85 {dimension_numbers = #tpu.dot_dimension_numbers<[1], [0], [0], [1], [0, 0, 1, 1], [], []>} : vector<8x32xf32>, vector<32x32xf32>, vector<8x32xf32> -> vector<8x32xf32>
    %381 = vector.broadcast %1 : vector<1x32xf32> to vector<8x32xf32>
    %382 = arith.addf %380, %381 : vector<8x32xf32>
    %383 = math.tanh %382 : vector<8x32xf32>
    %384 = vector.broadcast %308 : f32 to vector<8x32xf32>
    %385 = arith.mulf %384, %383 : vector<8x32xf32>
    %386 = arith.addf %379, %385 : vector<8x32xf32>
    %cst_86 = arith.constant dense<0.000000e+00> : vector<8x32xf32>
    %387 = tpu.matmul %386, %0, %cst_86 {dimension_numbers = #tpu.dot_dimension_numbers<[1], [0], [0], [1], [0, 0, 1, 1], [], []>} : vector<8x32xf32>, vector<32x32xf32>, vector<8x32xf32> -> vector<8x32xf32>
    %388 = vector.broadcast %1 : vector<1x32xf32> to vector<8x32xf32>
    %389 = arith.addf %387, %388 : vector<8x32xf32>
    %390 = math.tanh %389 : vector<8x32xf32>
    %391 = vector.broadcast %308 : f32 to vector<8x32xf32>
    %392 = arith.mulf %391, %390 : vector<8x32xf32>
    %393 = arith.addf %379, %392 : vector<8x32xf32>
    %cst_87 = arith.constant dense<0.000000e+00> : vector<8x32xf32>
    %394 = tpu.matmul %393, %0, %cst_87 {dimension_numbers = #tpu.dot_dimension_numbers<[1], [0], [0], [1], [0, 0, 1, 1], [], []>} : vector<8x32xf32>, vector<32x32xf32>, vector<8x32xf32> -> vector<8x32xf32>
    %395 = vector.broadcast %1 : vector<1x32xf32> to vector<8x32xf32>
    %396 = arith.addf %394, %395 : vector<8x32xf32>
    %397 = math.tanh %396 : vector<8x32xf32>
    %398 = vector.broadcast %307 : f32 to vector<8x32xf32>
    %399 = arith.mulf %398, %397 : vector<8x32xf32>
    %400 = arith.addf %379, %399 : vector<8x32xf32>
    %cst_88 = arith.constant dense<0.000000e+00> : vector<8x32xf32>
    %401 = tpu.matmul %400, %0, %cst_88 {dimension_numbers = #tpu.dot_dimension_numbers<[1], [0], [0], [1], [0, 0, 1, 1], [], []>} : vector<8x32xf32>, vector<32x32xf32>, vector<8x32xf32> -> vector<8x32xf32>
    %402 = vector.broadcast %1 : vector<1x32xf32> to vector<8x32xf32>
    %403 = arith.addf %401, %402 : vector<8x32xf32>
    %404 = math.tanh %403 : vector<8x32xf32>
    %cst_89 = arith.constant 2.000000e+00 : f32
    %405 = vector.broadcast %cst_89 : f32 to vector<8x32xf32>
    %406 = arith.mulf %405, %390 : vector<8x32xf32>
    %407 = arith.addf %383, %406 : vector<8x32xf32>
    %cst_90 = arith.constant 2.000000e+00 : f32
    %408 = vector.broadcast %cst_90 : f32 to vector<8x32xf32>
    %409 = arith.mulf %408, %397 : vector<8x32xf32>
    %410 = arith.addf %407, %409 : vector<8x32xf32>
    %411 = arith.addf %410, %404 : vector<8x32xf32>
    %412 = vector.broadcast %309 : f32 to vector<8x32xf32>
    %413 = arith.mulf %412, %411 : vector<8x32xf32>
    %414 = arith.addf %379, %413 : vector<8x32xf32>
    %cst_91 = arith.constant dense<0.000000e+00> : vector<8x32xf32>
    %415 = tpu.matmul %414, %0, %cst_91 {dimension_numbers = #tpu.dot_dimension_numbers<[1], [0], [0], [1], [0, 0, 1, 1], [], []>} : vector<8x32xf32>, vector<32x32xf32>, vector<8x32xf32> -> vector<8x32xf32>
    %416 = vector.broadcast %1 : vector<1x32xf32> to vector<8x32xf32>
    %417 = arith.addf %415, %416 : vector<8x32xf32>
    %418 = math.tanh %417 : vector<8x32xf32>
    %419 = vector.broadcast %308 : f32 to vector<8x32xf32>
    %420 = arith.mulf %419, %418 : vector<8x32xf32>
    %421 = arith.addf %414, %420 : vector<8x32xf32>
    %cst_92 = arith.constant dense<0.000000e+00> : vector<8x32xf32>
    %422 = tpu.matmul %421, %0, %cst_92 {dimension_numbers = #tpu.dot_dimension_numbers<[1], [0], [0], [1], [0, 0, 1, 1], [], []>} : vector<8x32xf32>, vector<32x32xf32>, vector<8x32xf32> -> vector<8x32xf32>
    %423 = vector.broadcast %1 : vector<1x32xf32> to vector<8x32xf32>
    %424 = arith.addf %422, %423 : vector<8x32xf32>
    %425 = math.tanh %424 : vector<8x32xf32>
    %426 = vector.broadcast %308 : f32 to vector<8x32xf32>
    %427 = arith.mulf %426, %425 : vector<8x32xf32>
    %428 = arith.addf %414, %427 : vector<8x32xf32>
    %cst_93 = arith.constant dense<0.000000e+00> : vector<8x32xf32>
    %429 = tpu.matmul %428, %0, %cst_93 {dimension_numbers = #tpu.dot_dimension_numbers<[1], [0], [0], [1], [0, 0, 1, 1], [], []>} : vector<8x32xf32>, vector<32x32xf32>, vector<8x32xf32> -> vector<8x32xf32>
    %430 = vector.broadcast %1 : vector<1x32xf32> to vector<8x32xf32>
    %431 = arith.addf %429, %430 : vector<8x32xf32>
    %432 = math.tanh %431 : vector<8x32xf32>
    %433 = vector.broadcast %307 : f32 to vector<8x32xf32>
    %434 = arith.mulf %433, %432 : vector<8x32xf32>
    %435 = arith.addf %414, %434 : vector<8x32xf32>
    %cst_94 = arith.constant dense<0.000000e+00> : vector<8x32xf32>
    %436 = tpu.matmul %435, %0, %cst_94 {dimension_numbers = #tpu.dot_dimension_numbers<[1], [0], [0], [1], [0, 0, 1, 1], [], []>} : vector<8x32xf32>, vector<32x32xf32>, vector<8x32xf32> -> vector<8x32xf32>
    %437 = vector.broadcast %1 : vector<1x32xf32> to vector<8x32xf32>
    %438 = arith.addf %436, %437 : vector<8x32xf32>
    %439 = math.tanh %438 : vector<8x32xf32>
    %cst_95 = arith.constant 2.000000e+00 : f32
    %440 = vector.broadcast %cst_95 : f32 to vector<8x32xf32>
    %441 = arith.mulf %440, %425 : vector<8x32xf32>
    %442 = arith.addf %418, %441 : vector<8x32xf32>
    %cst_96 = arith.constant 2.000000e+00 : f32
    %443 = vector.broadcast %cst_96 : f32 to vector<8x32xf32>
    %444 = arith.mulf %443, %432 : vector<8x32xf32>
    %445 = arith.addf %442, %444 : vector<8x32xf32>
    %446 = arith.addf %445, %439 : vector<8x32xf32>
    %447 = vector.broadcast %309 : f32 to vector<8x32xf32>
    %448 = arith.mulf %447, %446 : vector<8x32xf32>
    %449 = arith.addf %414, %448 : vector<8x32xf32>
    %c3_97 = arith.constant 3 : index
    %c0_98 = arith.constant 0 : index
    %c0_99 = arith.constant 0 : index
    %450 = vector.load %arg5[%c3_97, %c0_98, %c0_99] : memref<8x8x32xf32, #tpu.memory_space<vmem>>, vector<1x8x32xf32>
    %451 = vector.shape_cast %450 : vector<1x8x32xf32> to vector<8x32xf32>
    %452 = vector.shape_cast %449 : vector<8x32xf32> to vector<1x8x32xf32>
    tpu.vector_store %arg5[%c3_97, %c0_98, %c0_99], %452 {strides = array<i32>} : memref<8x8x32xf32, #tpu.memory_space<vmem>>, vector<1x8x32xf32>,
    %c3_100 = arith.constant 3 : index
    %453 = memref.load %arg1[%c3_100] : memref<8xf32, #tpu.memory_space<smem>>
    %c4 = arith.constant 4 : index
    %454 = memref.load %arg1[%c4] : memref<8xf32, #tpu.memory_space<smem>>
    %455 = arith.subf %454, %453 : f32
    %cst_101 = arith.constant 2.500000e-01 : f32
    %456 = arith.mulf %455, %cst_101 : f32
    %cst_102 = arith.constant 5.000000e-01 : f32
    %457 = arith.mulf %cst_102, %456 : f32
    %cst_103 = arith.constant 0.166666672 : f32
    %458 = arith.mulf %456, %cst_103 : f32
    %cst_104 = arith.constant dense<0.000000e+00> : vector<8x32xf32>
    %459 = tpu.matmul %449, %0, %cst_104 {dimension_numbers = #tpu.dot_dimension_numbers<[1], [0], [0], [1], [0, 0, 1, 1], [], []>} : vector<8x32xf32>, vector<32x32xf32>, vector<8x32xf32> -> vector<8x32xf32>
    %460 = vector.broadcast %1 : vector<1x32xf32> to vector<8x32xf32>
    %461 = arith.addf %459, %460 : vector<8x32xf32>
    %462 = math.tanh %461 : vector<8x32xf32>
    %463 = vector.broadcast %457 : f32 to vector<8x32xf32>
    %464 = arith.mulf %463, %462 : vector<8x32xf32>
    %465 = arith.addf %449, %464 : vector<8x32xf32>
    %cst_105 = arith.constant dense<0.000000e+00> : vector<8x32xf32>
    %466 = tpu.matmul %465, %0, %cst_105 {dimension_numbers = #tpu.dot_dimension_numbers<[1], [0], [0], [1], [0, 0, 1, 1], [], []>} : vector<8x32xf32>, vector<32x32xf32>, vector<8x32xf32> -> vector<8x32xf32>
    %467 = vector.broadcast %1 : vector<1x32xf32> to vector<8x32xf32>
    %468 = arith.addf %466, %467 : vector<8x32xf32>
    %469 = math.tanh %468 : vector<8x32xf32>
    %470 = vector.broadcast %457 : f32 to vector<8x32xf32>
    %471 = arith.mulf %470, %469 : vector<8x32xf32>
    %472 = arith.addf %449, %471 : vector<8x32xf32>
    %cst_106 = arith.constant dense<0.000000e+00> : vector<8x32xf32>
    %473 = tpu.matmul %472, %0, %cst_106 {dimension_numbers = #tpu.dot_dimension_numbers<[1], [0], [0], [1], [0, 0, 1, 1], [], []>} : vector<8x32xf32>, vector<32x32xf32>, vector<8x32xf32> -> vector<8x32xf32>
    %474 = vector.broadcast %1 : vector<1x32xf32> to vector<8x32xf32>
    %475 = arith.addf %473, %474 : vector<8x32xf32>
    %476 = math.tanh %475 : vector<8x32xf32>
    %477 = vector.broadcast %456 : f32 to vector<8x32xf32>
    %478 = arith.mulf %477, %476 : vector<8x32xf32>
    %479 = arith.addf %449, %478 : vector<8x32xf32>
    %cst_107 = arith.constant dense<0.000000e+00> : vector<8x32xf32>
    %480 = tpu.matmul %479, %0, %cst_107 {dimension_numbers = #tpu.dot_dimension_numbers<[1], [0], [0], [1], [0, 0, 1, 1], [], []>} : vector<8x32xf32>, vector<32x32xf32>, vector<8x32xf32> -> vector<8x32xf32>
    %481 = vector.broadcast %1 : vector<1x32xf32> to vector<8x32xf32>
    %482 = arith.addf %480, %481 : vector<8x32xf32>
    %483 = math.tanh %482 : vector<8x32xf32>
    %cst_108 = arith.constant 2.000000e+00 : f32
    %484 = vector.broadcast %cst_108 : f32 to vector<8x32xf32>
    %485 = arith.mulf %484, %469 : vector<8x32xf32>
    %486 = arith.addf %462, %485 : vector<8x32xf32>
    %cst_109 = arith.constant 2.000000e+00 : f32
    %487 = vector.broadcast %cst_109 : f32 to vector<8x32xf32>
    %488 = arith.mulf %487, %476 : vector<8x32xf32>
    %489 = arith.addf %486, %488 : vector<8x32xf32>
    %490 = arith.addf %489, %483 : vector<8x32xf32>
    %491 = vector.broadcast %458 : f32 to vector<8x32xf32>
    %492 = arith.mulf %491, %490 : vector<8x32xf32>
    %493 = arith.addf %449, %492 : vector<8x32xf32>
    %cst_110 = arith.constant dense<0.000000e+00> : vector<8x32xf32>
    %494 = tpu.matmul %493, %0, %cst_110 {dimension_numbers = #tpu.dot_dimension_numbers<[1], [0], [0], [1], [0, 0, 1, 1], [], []>} : vector<8x32xf32>, vector<32x32xf32>, vector<8x32xf32> -> vector<8x32xf32>
    %495 = vector.broadcast %1 : vector<1x32xf32> to vector<8x32xf32>
    %496 = arith.addf %494, %495 : vector<8x32xf32>
    %497 = math.tanh %496 : vector<8x32xf32>
    %498 = vector.broadcast %457 : f32 to vector<8x32xf32>
    %499 = arith.mulf %498, %497 : vector<8x32xf32>
    %500 = arith.addf %493, %499 : vector<8x32xf32>
    %cst_111 = arith.constant dense<0.000000e+00> : vector<8x32xf32>
    %501 = tpu.matmul %500, %0, %cst_111 {dimension_numbers = #tpu.dot_dimension_numbers<[1], [0], [0], [1], [0, 0, 1, 1], [], []>} : vector<8x32xf32>, vector<32x32xf32>, vector<8x32xf32> -> vector<8x32xf32>
    %502 = vector.broadcast %1 : vector<1x32xf32> to vector<8x32xf32>
    %503 = arith.addf %501, %502 : vector<8x32xf32>
    %504 = math.tanh %503 : vector<8x32xf32>
    %505 = vector.broadcast %457 : f32 to vector<8x32xf32>
    %506 = arith.mulf %505, %504 : vector<8x32xf32>
    %507 = arith.addf %493, %506 : vector<8x32xf32>
    %cst_112 = arith.constant dense<0.000000e+00> : vector<8x32xf32>
    %508 = tpu.matmul %507, %0, %cst_112 {dimension_numbers = #tpu.dot_dimension_numbers<[1], [0], [0], [1], [0, 0, 1, 1], [], []>} : vector<8x32xf32>, vector<32x32xf32>, vector<8x32xf32> -> vector<8x32xf32>
    %509 = vector.broadcast %1 : vector<1x32xf32> to vector<8x32xf32>
    %510 = arith.addf %508, %509 : vector<8x32xf32>
    %511 = math.tanh %510 : vector<8x32xf32>
    %512 = vector.broadcast %456 : f32 to vector<8x32xf32>
    %513 = arith.mulf %512, %511 : vector<8x32xf32>
    %514 = arith.addf %493, %513 : vector<8x32xf32>
    %cst_113 = arith.constant dense<0.000000e+00> : vector<8x32xf32>
    %515 = tpu.matmul %514, %0, %cst_113 {dimension_numbers = #tpu.dot_dimension_numbers<[1], [0], [0], [1], [0, 0, 1, 1], [], []>} : vector<8x32xf32>, vector<32x32xf32>, vector<8x32xf32> -> vector<8x32xf32>
    %516 = vector.broadcast %1 : vector<1x32xf32> to vector<8x32xf32>
    %517 = arith.addf %515, %516 : vector<8x32xf32>
    %518 = math.tanh %517 : vector<8x32xf32>
    %cst_114 = arith.constant 2.000000e+00 : f32
    %519 = vector.broadcast %cst_114 : f32 to vector<8x32xf32>
    %520 = arith.mulf %519, %504 : vector<8x32xf32>
    %521 = arith.addf %497, %520 : vector<8x32xf32>
    %cst_115 = arith.constant 2.000000e+00 : f32
    %522 = vector.broadcast %cst_115 : f32 to vector<8x32xf32>
    %523 = arith.mulf %522, %511 : vector<8x32xf32>
    %524 = arith.addf %521, %523 : vector<8x32xf32>
    %525 = arith.addf %524, %518 : vector<8x32xf32>
    %526 = vector.broadcast %458 : f32 to vector<8x32xf32>
    %527 = arith.mulf %526, %525 : vector<8x32xf32>
    %528 = arith.addf %493, %527 : vector<8x32xf32>
    %cst_116 = arith.constant dense<0.000000e+00> : vector<8x32xf32>
    %529 = tpu.matmul %528, %0, %cst_116 {dimension_numbers = #tpu.dot_dimension_numbers<[1], [0], [0], [1], [0, 0, 1, 1], [], []>} : vector<8x32xf32>, vector<32x32xf32>, vector<8x32xf32> -> vector<8x32xf32>
    %530 = vector.broadcast %1 : vector<1x32xf32> to vector<8x32xf32>
    %531 = arith.addf %529, %530 : vector<8x32xf32>
    %532 = math.tanh %531 : vector<8x32xf32>
    %533 = vector.broadcast %457 : f32 to vector<8x32xf32>
    %534 = arith.mulf %533, %532 : vector<8x32xf32>
    %535 = arith.addf %528, %534 : vector<8x32xf32>
    %cst_117 = arith.constant dense<0.000000e+00> : vector<8x32xf32>
    %536 = tpu.matmul %535, %0, %cst_117 {dimension_numbers = #tpu.dot_dimension_numbers<[1], [0], [0], [1], [0, 0, 1, 1], [], []>} : vector<8x32xf32>, vector<32x32xf32>, vector<8x32xf32> -> vector<8x32xf32>
    %537 = vector.broadcast %1 : vector<1x32xf32> to vector<8x32xf32>
    %538 = arith.addf %536, %537 : vector<8x32xf32>
    %539 = math.tanh %538 : vector<8x32xf32>
    %540 = vector.broadcast %457 : f32 to vector<8x32xf32>
    %541 = arith.mulf %540, %539 : vector<8x32xf32>
    %542 = arith.addf %528, %541 : vector<8x32xf32>
    %cst_118 = arith.constant dense<0.000000e+00> : vector<8x32xf32>
    %543 = tpu.matmul %542, %0, %cst_118 {dimension_numbers = #tpu.dot_dimension_numbers<[1], [0], [0], [1], [0, 0, 1, 1], [], []>} : vector<8x32xf32>, vector<32x32xf32>, vector<8x32xf32> -> vector<8x32xf32>
    %544 = vector.broadcast %1 : vector<1x32xf32> to vector<8x32xf32>
    %545 = arith.addf %543, %544 : vector<8x32xf32>
    %546 = math.tanh %545 : vector<8x32xf32>
    %547 = vector.broadcast %456 : f32 to vector<8x32xf32>
    %548 = arith.mulf %547, %546 : vector<8x32xf32>
    %549 = arith.addf %528, %548 : vector<8x32xf32>
    %cst_119 = arith.constant dense<0.000000e+00> : vector<8x32xf32>
    %550 = tpu.matmul %549, %0, %cst_119 {dimension_numbers = #tpu.dot_dimension_numbers<[1], [0], [0], [1], [0, 0, 1, 1], [], []>} : vector<8x32xf32>, vector<32x32xf32>, vector<8x32xf32> -> vector<8x32xf32>
    %551 = vector.broadcast %1 : vector<1x32xf32> to vector<8x32xf32>
    %552 = arith.addf %550, %551 : vector<8x32xf32>
    %553 = math.tanh %552 : vector<8x32xf32>
    %cst_120 = arith.constant 2.000000e+00 : f32
    %554 = vector.broadcast %cst_120 : f32 to vector<8x32xf32>
    %555 = arith.mulf %554, %539 : vector<8x32xf32>
    %556 = arith.addf %532, %555 : vector<8x32xf32>
    %cst_121 = arith.constant 2.000000e+00 : f32
    %557 = vector.broadcast %cst_121 : f32 to vector<8x32xf32>
    %558 = arith.mulf %557, %546 : vector<8x32xf32>
    %559 = arith.addf %556, %558 : vector<8x32xf32>
    %560 = arith.addf %559, %553 : vector<8x32xf32>
    %561 = vector.broadcast %458 : f32 to vector<8x32xf32>
    %562 = arith.mulf %561, %560 : vector<8x32xf32>
    %563 = arith.addf %528, %562 : vector<8x32xf32>
    %cst_122 = arith.constant dense<0.000000e+00> : vector<8x32xf32>
    %564 = tpu.matmul %563, %0, %cst_122 {dimension_numbers = #tpu.dot_dimension_numbers<[1], [0], [0], [1], [0, 0, 1, 1], [], []>} : vector<8x32xf32>, vector<32x32xf32>, vector<8x32xf32> -> vector<8x32xf32>
    %565 = vector.broadcast %1 : vector<1x32xf32> to vector<8x32xf32>
    %566 = arith.addf %564, %565 : vector<8x32xf32>
    %567 = math.tanh %566 : vector<8x32xf32>
    %568 = vector.broadcast %457 : f32 to vector<8x32xf32>
    %569 = arith.mulf %568, %567 : vector<8x32xf32>
    %570 = arith.addf %563, %569 : vector<8x32xf32>
    %cst_123 = arith.constant dense<0.000000e+00> : vector<8x32xf32>
    %571 = tpu.matmul %570, %0, %cst_123 {dimension_numbers = #tpu.dot_dimension_numbers<[1], [0], [0], [1], [0, 0, 1, 1], [], []>} : vector<8x32xf32>, vector<32x32xf32>, vector<8x32xf32> -> vector<8x32xf32>
    %572 = vector.broadcast %1 : vector<1x32xf32> to vector<8x32xf32>
    %573 = arith.addf %571, %572 : vector<8x32xf32>
    %574 = math.tanh %573 : vector<8x32xf32>
    %575 = vector.broadcast %457 : f32 to vector<8x32xf32>
    %576 = arith.mulf %575, %574 : vector<8x32xf32>
    %577 = arith.addf %563, %576 : vector<8x32xf32>
    %cst_124 = arith.constant dense<0.000000e+00> : vector<8x32xf32>
    %578 = tpu.matmul %577, %0, %cst_124 {dimension_numbers = #tpu.dot_dimension_numbers<[1], [0], [0], [1], [0, 0, 1, 1], [], []>} : vector<8x32xf32>, vector<32x32xf32>, vector<8x32xf32> -> vector<8x32xf32>
    %579 = vector.broadcast %1 : vector<1x32xf32> to vector<8x32xf32>
    %580 = arith.addf %578, %579 : vector<8x32xf32>
    %581 = math.tanh %580 : vector<8x32xf32>
    %582 = vector.broadcast %456 : f32 to vector<8x32xf32>
    %583 = arith.mulf %582, %581 : vector<8x32xf32>
    %584 = arith.addf %563, %583 : vector<8x32xf32>
    %cst_125 = arith.constant dense<0.000000e+00> : vector<8x32xf32>
    %585 = tpu.matmul %584, %0, %cst_125 {dimension_numbers = #tpu.dot_dimension_numbers<[1], [0], [0], [1], [0, 0, 1, 1], [], []>} : vector<8x32xf32>, vector<32x32xf32>, vector<8x32xf32> -> vector<8x32xf32>
    %586 = vector.broadcast %1 : vector<1x32xf32> to vector<8x32xf32>
    %587 = arith.addf %585, %586 : vector<8x32xf32>
    %588 = math.tanh %587 : vector<8x32xf32>
    %cst_126 = arith.constant 2.000000e+00 : f32
    %589 = vector.broadcast %cst_126 : f32 to vector<8x32xf32>
    %590 = arith.mulf %589, %574 : vector<8x32xf32>
    %591 = arith.addf %567, %590 : vector<8x32xf32>
    %cst_127 = arith.constant 2.000000e+00 : f32
    %592 = vector.broadcast %cst_127 : f32 to vector<8x32xf32>
    %593 = arith.mulf %592, %581 : vector<8x32xf32>
    %594 = arith.addf %591, %593 : vector<8x32xf32>
    %595 = arith.addf %594, %588 : vector<8x32xf32>
    %596 = vector.broadcast %458 : f32 to vector<8x32xf32>
    %597 = arith.mulf %596, %595 : vector<8x32xf32>
    %598 = arith.addf %563, %597 : vector<8x32xf32>
    %c4_128 = arith.constant 4 : index
    %c0_129 = arith.constant 0 : index
    %c0_130 = arith.constant 0 : index
    %599 = vector.load %arg5[%c4_128, %c0_129, %c0_130] : memref<8x8x32xf32, #tpu.memory_space<vmem>>, vector<1x8x32xf32>
    %600 = vector.shape_cast %599 : vector<1x8x32xf32> to vector<8x32xf32>
    %601 = vector.shape_cast %598 : vector<8x32xf32> to vector<1x8x32xf32>
    tpu.vector_store %arg5[%c4_128, %c0_129, %c0_130], %601 {strides = array<i32>} : memref<8x8x32xf32, #tpu.memory_space<vmem>>, vector<1x8x32xf32>,
    %c4_131 = arith.constant 4 : index
    %602 = memref.load %arg1[%c4_131] : memref<8xf32, #tpu.memory_space<smem>>
    %c5 = arith.constant 5 : index
    %603 = memref.load %arg1[%c5] : memref<8xf32, #tpu.memory_space<smem>>
    %604 = arith.subf %603, %602 : f32
    %cst_132 = arith.constant 2.500000e-01 : f32
    %605 = arith.mulf %604, %cst_132 : f32
    %cst_133 = arith.constant 5.000000e-01 : f32
    %606 = arith.mulf %cst_133, %605 : f32
    %cst_134 = arith.constant 0.166666672 : f32
    %607 = arith.mulf %605, %cst_134 : f32
    %cst_135 = arith.constant dense<0.000000e+00> : vector<8x32xf32>
    %608 = tpu.matmul %598, %0, %cst_135 {dimension_numbers = #tpu.dot_dimension_numbers<[1], [0], [0], [1], [0, 0, 1, 1], [], []>} : vector<8x32xf32>, vector<32x32xf32>, vector<8x32xf32> -> vector<8x32xf32>
    %609 = vector.broadcast %1 : vector<1x32xf32> to vector<8x32xf32>
    %610 = arith.addf %608, %609 : vector<8x32xf32>
    %611 = math.tanh %610 : vector<8x32xf32>
    %612 = vector.broadcast %606 : f32 to vector<8x32xf32>
    %613 = arith.mulf %612, %611 : vector<8x32xf32>
    %614 = arith.addf %598, %613 : vector<8x32xf32>
    %cst_136 = arith.constant dense<0.000000e+00> : vector<8x32xf32>
    %615 = tpu.matmul %614, %0, %cst_136 {dimension_numbers = #tpu.dot_dimension_numbers<[1], [0], [0], [1], [0, 0, 1, 1], [], []>} : vector<8x32xf32>, vector<32x32xf32>, vector<8x32xf32> -> vector<8x32xf32>
    %616 = vector.broadcast %1 : vector<1x32xf32> to vector<8x32xf32>
    %617 = arith.addf %615, %616 : vector<8x32xf32>
    %618 = math.tanh %617 : vector<8x32xf32>
    %619 = vector.broadcast %606 : f32 to vector<8x32xf32>
    %620 = arith.mulf %619, %618 : vector<8x32xf32>
    %621 = arith.addf %598, %620 : vector<8x32xf32>
    %cst_137 = arith.constant dense<0.000000e+00> : vector<8x32xf32>
    %622 = tpu.matmul %621, %0, %cst_137 {dimension_numbers = #tpu.dot_dimension_numbers<[1], [0], [0], [1], [0, 0, 1, 1], [], []>} : vector<8x32xf32>, vector<32x32xf32>, vector<8x32xf32> -> vector<8x32xf32>
    %623 = vector.broadcast %1 : vector<1x32xf32> to vector<8x32xf32>
    %624 = arith.addf %622, %623 : vector<8x32xf32>
    %625 = math.tanh %624 : vector<8x32xf32>
    %626 = vector.broadcast %605 : f32 to vector<8x32xf32>
    %627 = arith.mulf %626, %625 : vector<8x32xf32>
    %628 = arith.addf %598, %627 : vector<8x32xf32>
    %cst_138 = arith.constant dense<0.000000e+00> : vector<8x32xf32>
    %629 = tpu.matmul %628, %0, %cst_138 {dimension_numbers = #tpu.dot_dimension_numbers<[1], [0], [0], [1], [0, 0, 1, 1], [], []>} : vector<8x32xf32>, vector<32x32xf32>, vector<8x32xf32> -> vector<8x32xf32>
    %630 = vector.broadcast %1 : vector<1x32xf32> to vector<8x32xf32>
    %631 = arith.addf %629, %630 : vector<8x32xf32>
    %632 = math.tanh %631 : vector<8x32xf32>
    %cst_139 = arith.constant 2.000000e+00 : f32
    %633 = vector.broadcast %cst_139 : f32 to vector<8x32xf32>
    %634 = arith.mulf %633, %618 : vector<8x32xf32>
    %635 = arith.addf %611, %634 : vector<8x32xf32>
    %cst_140 = arith.constant 2.000000e+00 : f32
    %636 = vector.broadcast %cst_140 : f32 to vector<8x32xf32>
    %637 = arith.mulf %636, %625 : vector<8x32xf32>
    %638 = arith.addf %635, %637 : vector<8x32xf32>
    %639 = arith.addf %638, %632 : vector<8x32xf32>
    %640 = vector.broadcast %607 : f32 to vector<8x32xf32>
    %641 = arith.mulf %640, %639 : vector<8x32xf32>
    %642 = arith.addf %598, %641 : vector<8x32xf32>
    %cst_141 = arith.constant dense<0.000000e+00> : vector<8x32xf32>
    %643 = tpu.matmul %642, %0, %cst_141 {dimension_numbers = #tpu.dot_dimension_numbers<[1], [0], [0], [1], [0, 0, 1, 1], [], []>} : vector<8x32xf32>, vector<32x32xf32>, vector<8x32xf32> -> vector<8x32xf32>
    %644 = vector.broadcast %1 : vector<1x32xf32> to vector<8x32xf32>
    %645 = arith.addf %643, %644 : vector<8x32xf32>
    %646 = math.tanh %645 : vector<8x32xf32>
    %647 = vector.broadcast %606 : f32 to vector<8x32xf32>
    %648 = arith.mulf %647, %646 : vector<8x32xf32>
    %649 = arith.addf %642, %648 : vector<8x32xf32>
    %cst_142 = arith.constant dense<0.000000e+00> : vector<8x32xf32>
    %650 = tpu.matmul %649, %0, %cst_142 {dimension_numbers = #tpu.dot_dimension_numbers<[1], [0], [0], [1], [0, 0, 1, 1], [], []>} : vector<8x32xf32>, vector<32x32xf32>, vector<8x32xf32> -> vector<8x32xf32>
    %651 = vector.broadcast %1 : vector<1x32xf32> to vector<8x32xf32>
    %652 = arith.addf %650, %651 : vector<8x32xf32>
    %653 = math.tanh %652 : vector<8x32xf32>
    %654 = vector.broadcast %606 : f32 to vector<8x32xf32>
    %655 = arith.mulf %654, %653 : vector<8x32xf32>
    %656 = arith.addf %642, %655 : vector<8x32xf32>
    %cst_143 = arith.constant dense<0.000000e+00> : vector<8x32xf32>
    %657 = tpu.matmul %656, %0, %cst_143 {dimension_numbers = #tpu.dot_dimension_numbers<[1], [0], [0], [1], [0, 0, 1, 1], [], []>} : vector<8x32xf32>, vector<32x32xf32>, vector<8x32xf32> -> vector<8x32xf32>
    %658 = vector.broadcast %1 : vector<1x32xf32> to vector<8x32xf32>
    %659 = arith.addf %657, %658 : vector<8x32xf32>
    %660 = math.tanh %659 : vector<8x32xf32>
    %661 = vector.broadcast %605 : f32 to vector<8x32xf32>
    %662 = arith.mulf %661, %660 : vector<8x32xf32>
    %663 = arith.addf %642, %662 : vector<8x32xf32>
    %cst_144 = arith.constant dense<0.000000e+00> : vector<8x32xf32>
    %664 = tpu.matmul %663, %0, %cst_144 {dimension_numbers = #tpu.dot_dimension_numbers<[1], [0], [0], [1], [0, 0, 1, 1], [], []>} : vector<8x32xf32>, vector<32x32xf32>, vector<8x32xf32> -> vector<8x32xf32>
    %665 = vector.broadcast %1 : vector<1x32xf32> to vector<8x32xf32>
    %666 = arith.addf %664, %665 : vector<8x32xf32>
    %667 = math.tanh %666 : vector<8x32xf32>
    %cst_145 = arith.constant 2.000000e+00 : f32
    %668 = vector.broadcast %cst_145 : f32 to vector<8x32xf32>
    %669 = arith.mulf %668, %653 : vector<8x32xf32>
    %670 = arith.addf %646, %669 : vector<8x32xf32>
    %cst_146 = arith.constant 2.000000e+00 : f32
    %671 = vector.broadcast %cst_146 : f32 to vector<8x32xf32>
    %672 = arith.mulf %671, %660 : vector<8x32xf32>
    %673 = arith.addf %670, %672 : vector<8x32xf32>
    %674 = arith.addf %673, %667 : vector<8x32xf32>
    %675 = vector.broadcast %607 : f32 to vector<8x32xf32>
    %676 = arith.mulf %675, %674 : vector<8x32xf32>
    %677 = arith.addf %642, %676 : vector<8x32xf32>
    %cst_147 = arith.constant dense<0.000000e+00> : vector<8x32xf32>
    %678 = tpu.matmul %677, %0, %cst_147 {dimension_numbers = #tpu.dot_dimension_numbers<[1], [0], [0], [1], [0, 0, 1, 1], [], []>} : vector<8x32xf32>, vector<32x32xf32>, vector<8x32xf32> -> vector<8x32xf32>
    %679 = vector.broadcast %1 : vector<1x32xf32> to vector<8x32xf32>
    %680 = arith.addf %678, %679 : vector<8x32xf32>
    %681 = math.tanh %680 : vector<8x32xf32>
    %682 = vector.broadcast %606 : f32 to vector<8x32xf32>
    %683 = arith.mulf %682, %681 : vector<8x32xf32>
    %684 = arith.addf %677, %683 : vector<8x32xf32>
    %cst_148 = arith.constant dense<0.000000e+00> : vector<8x32xf32>
    %685 = tpu.matmul %684, %0, %cst_148 {dimension_numbers = #tpu.dot_dimension_numbers<[1], [0], [0], [1], [0, 0, 1, 1], [], []>} : vector<8x32xf32>, vector<32x32xf32>, vector<8x32xf32> -> vector<8x32xf32>
    %686 = vector.broadcast %1 : vector<1x32xf32> to vector<8x32xf32>
    %687 = arith.addf %685, %686 : vector<8x32xf32>
    %688 = math.tanh %687 : vector<8x32xf32>
    %689 = vector.broadcast %606 : f32 to vector<8x32xf32>
    %690 = arith.mulf %689, %688 : vector<8x32xf32>
    %691 = arith.addf %677, %690 : vector<8x32xf32>
    %cst_149 = arith.constant dense<0.000000e+00> : vector<8x32xf32>
    %692 = tpu.matmul %691, %0, %cst_149 {dimension_numbers = #tpu.dot_dimension_numbers<[1], [0], [0], [1], [0, 0, 1, 1], [], []>} : vector<8x32xf32>, vector<32x32xf32>, vector<8x32xf32> -> vector<8x32xf32>
    %693 = vector.broadcast %1 : vector<1x32xf32> to vector<8x32xf32>
    %694 = arith.addf %692, %693 : vector<8x32xf32>
    %695 = math.tanh %694 : vector<8x32xf32>
    %696 = vector.broadcast %605 : f32 to vector<8x32xf32>
    %697 = arith.mulf %696, %695 : vector<8x32xf32>
    %698 = arith.addf %677, %697 : vector<8x32xf32>
    %cst_150 = arith.constant dense<0.000000e+00> : vector<8x32xf32>
    %699 = tpu.matmul %698, %0, %cst_150 {dimension_numbers = #tpu.dot_dimension_numbers<[1], [0], [0], [1], [0, 0, 1, 1], [], []>} : vector<8x32xf32>, vector<32x32xf32>, vector<8x32xf32> -> vector<8x32xf32>
    %700 = vector.broadcast %1 : vector<1x32xf32> to vector<8x32xf32>
    %701 = arith.addf %699, %700 : vector<8x32xf32>
    %702 = math.tanh %701 : vector<8x32xf32>
    %cst_151 = arith.constant 2.000000e+00 : f32
    %703 = vector.broadcast %cst_151 : f32 to vector<8x32xf32>
    %704 = arith.mulf %703, %688 : vector<8x32xf32>
    %705 = arith.addf %681, %704 : vector<8x32xf32>
    %cst_152 = arith.constant 2.000000e+00 : f32
    %706 = vector.broadcast %cst_152 : f32 to vector<8x32xf32>
    %707 = arith.mulf %706, %695 : vector<8x32xf32>
    %708 = arith.addf %705, %707 : vector<8x32xf32>
    %709 = arith.addf %708, %702 : vector<8x32xf32>
    %710 = vector.broadcast %607 : f32 to vector<8x32xf32>
    %711 = arith.mulf %710, %709 : vector<8x32xf32>
    %712 = arith.addf %677, %711 : vector<8x32xf32>
    %cst_153 = arith.constant dense<0.000000e+00> : vector<8x32xf32>
    %713 = tpu.matmul %712, %0, %cst_153 {dimension_numbers = #tpu.dot_dimension_numbers<[1], [0], [0], [1], [0, 0, 1, 1], [], []>} : vector<8x32xf32>, vector<32x32xf32>, vector<8x32xf32> -> vector<8x32xf32>
    %714 = vector.broadcast %1 : vector<1x32xf32> to vector<8x32xf32>
    %715 = arith.addf %713, %714 : vector<8x32xf32>
    %716 = math.tanh %715 : vector<8x32xf32>
    %717 = vector.broadcast %606 : f32 to vector<8x32xf32>
    %718 = arith.mulf %717, %716 : vector<8x32xf32>
    %719 = arith.addf %712, %718 : vector<8x32xf32>
    %cst_154 = arith.constant dense<0.000000e+00> : vector<8x32xf32>
    %720 = tpu.matmul %719, %0, %cst_154 {dimension_numbers = #tpu.dot_dimension_numbers<[1], [0], [0], [1], [0, 0, 1, 1], [], []>} : vector<8x32xf32>, vector<32x32xf32>, vector<8x32xf32> -> vector<8x32xf32>
    %721 = vector.broadcast %1 : vector<1x32xf32> to vector<8x32xf32>
    %722 = arith.addf %720, %721 : vector<8x32xf32>
    %723 = math.tanh %722 : vector<8x32xf32>
    %724 = vector.broadcast %606 : f32 to vector<8x32xf32>
    %725 = arith.mulf %724, %723 : vector<8x32xf32>
    %726 = arith.addf %712, %725 : vector<8x32xf32>
    %cst_155 = arith.constant dense<0.000000e+00> : vector<8x32xf32>
    %727 = tpu.matmul %726, %0, %cst_155 {dimension_numbers = #tpu.dot_dimension_numbers<[1], [0], [0], [1], [0, 0, 1, 1], [], []>} : vector<8x32xf32>, vector<32x32xf32>, vector<8x32xf32> -> vector<8x32xf32>
    %728 = vector.broadcast %1 : vector<1x32xf32> to vector<8x32xf32>
    %729 = arith.addf %727, %728 : vector<8x32xf32>
    %730 = math.tanh %729 : vector<8x32xf32>
    %731 = vector.broadcast %605 : f32 to vector<8x32xf32>
    %732 = arith.mulf %731, %730 : vector<8x32xf32>
    %733 = arith.addf %712, %732 : vector<8x32xf32>
    %cst_156 = arith.constant dense<0.000000e+00> : vector<8x32xf32>
    %734 = tpu.matmul %733, %0, %cst_156 {dimension_numbers = #tpu.dot_dimension_numbers<[1], [0], [0], [1], [0, 0, 1, 1], [], []>} : vector<8x32xf32>, vector<32x32xf32>, vector<8x32xf32> -> vector<8x32xf32>
    %735 = vector.broadcast %1 : vector<1x32xf32> to vector<8x32xf32>
    %736 = arith.addf %734, %735 : vector<8x32xf32>
    %737 = math.tanh %736 : vector<8x32xf32>
    %cst_157 = arith.constant 2.000000e+00 : f32
    %738 = vector.broadcast %cst_157 : f32 to vector<8x32xf32>
    %739 = arith.mulf %738, %723 : vector<8x32xf32>
    %740 = arith.addf %716, %739 : vector<8x32xf32>
    %cst_158 = arith.constant 2.000000e+00 : f32
    %741 = vector.broadcast %cst_158 : f32 to vector<8x32xf32>
    %742 = arith.mulf %741, %730 : vector<8x32xf32>
    %743 = arith.addf %740, %742 : vector<8x32xf32>
    %744 = arith.addf %743, %737 : vector<8x32xf32>
    %745 = vector.broadcast %607 : f32 to vector<8x32xf32>
    %746 = arith.mulf %745, %744 : vector<8x32xf32>
    %747 = arith.addf %712, %746 : vector<8x32xf32>
    %c5_159 = arith.constant 5 : index
    %c0_160 = arith.constant 0 : index
    %c0_161 = arith.constant 0 : index
    %748 = vector.load %arg5[%c5_159, %c0_160, %c0_161] : memref<8x8x32xf32, #tpu.memory_space<vmem>>, vector<1x8x32xf32>
    %749 = vector.shape_cast %748 : vector<1x8x32xf32> to vector<8x32xf32>
    %750 = vector.shape_cast %747 : vector<8x32xf32> to vector<1x8x32xf32>
    tpu.vector_store %arg5[%c5_159, %c0_160, %c0_161], %750 {strides = array<i32>} : memref<8x8x32xf32, #tpu.memory_space<vmem>>, vector<1x8x32xf32>,
    %c5_162 = arith.constant 5 : index
    %751 = memref.load %arg1[%c5_162] : memref<8xf32, #tpu.memory_space<smem>>
    %c6 = arith.constant 6 : index
    %752 = memref.load %arg1[%c6] : memref<8xf32, #tpu.memory_space<smem>>
    %753 = arith.subf %752, %751 : f32
    %cst_163 = arith.constant 2.500000e-01 : f32
    %754 = arith.mulf %753, %cst_163 : f32
    %cst_164 = arith.constant 5.000000e-01 : f32
    %755 = arith.mulf %cst_164, %754 : f32
    %cst_165 = arith.constant 0.166666672 : f32
    %756 = arith.mulf %754, %cst_165 : f32
    %cst_166 = arith.constant dense<0.000000e+00> : vector<8x32xf32>
    %757 = tpu.matmul %747, %0, %cst_166 {dimension_numbers = #tpu.dot_dimension_numbers<[1], [0], [0], [1], [0, 0, 1, 1], [], []>} : vector<8x32xf32>, vector<32x32xf32>, vector<8x32xf32> -> vector<8x32xf32>
    %758 = vector.broadcast %1 : vector<1x32xf32> to vector<8x32xf32>
    %759 = arith.addf %757, %758 : vector<8x32xf32>
    %760 = math.tanh %759 : vector<8x32xf32>
    %761 = vector.broadcast %755 : f32 to vector<8x32xf32>
    %762 = arith.mulf %761, %760 : vector<8x32xf32>
    %763 = arith.addf %747, %762 : vector<8x32xf32>
    %cst_167 = arith.constant dense<0.000000e+00> : vector<8x32xf32>
    %764 = tpu.matmul %763, %0, %cst_167 {dimension_numbers = #tpu.dot_dimension_numbers<[1], [0], [0], [1], [0, 0, 1, 1], [], []>} : vector<8x32xf32>, vector<32x32xf32>, vector<8x32xf32> -> vector<8x32xf32>
    %765 = vector.broadcast %1 : vector<1x32xf32> to vector<8x32xf32>
    %766 = arith.addf %764, %765 : vector<8x32xf32>
    %767 = math.tanh %766 : vector<8x32xf32>
    %768 = vector.broadcast %755 : f32 to vector<8x32xf32>
    %769 = arith.mulf %768, %767 : vector<8x32xf32>
    %770 = arith.addf %747, %769 : vector<8x32xf32>
    %cst_168 = arith.constant dense<0.000000e+00> : vector<8x32xf32>
    %771 = tpu.matmul %770, %0, %cst_168 {dimension_numbers = #tpu.dot_dimension_numbers<[1], [0], [0], [1], [0, 0, 1, 1], [], []>} : vector<8x32xf32>, vector<32x32xf32>, vector<8x32xf32> -> vector<8x32xf32>
    %772 = vector.broadcast %1 : vector<1x32xf32> to vector<8x32xf32>
    %773 = arith.addf %771, %772 : vector<8x32xf32>
    %774 = math.tanh %773 : vector<8x32xf32>
    %775 = vector.broadcast %754 : f32 to vector<8x32xf32>
    %776 = arith.mulf %775, %774 : vector<8x32xf32>
    %777 = arith.addf %747, %776 : vector<8x32xf32>
    %cst_169 = arith.constant dense<0.000000e+00> : vector<8x32xf32>
    %778 = tpu.matmul %777, %0, %cst_169 {dimension_numbers = #tpu.dot_dimension_numbers<[1], [0], [0], [1], [0, 0, 1, 1], [], []>} : vector<8x32xf32>, vector<32x32xf32>, vector<8x32xf32> -> vector<8x32xf32>
    %779 = vector.broadcast %1 : vector<1x32xf32> to vector<8x32xf32>
    %780 = arith.addf %778, %779 : vector<8x32xf32>
    %781 = math.tanh %780 : vector<8x32xf32>
    %cst_170 = arith.constant 2.000000e+00 : f32
    %782 = vector.broadcast %cst_170 : f32 to vector<8x32xf32>
    %783 = arith.mulf %782, %767 : vector<8x32xf32>
    %784 = arith.addf %760, %783 : vector<8x32xf32>
    %cst_171 = arith.constant 2.000000e+00 : f32
    %785 = vector.broadcast %cst_171 : f32 to vector<8x32xf32>
    %786 = arith.mulf %785, %774 : vector<8x32xf32>
    %787 = arith.addf %784, %786 : vector<8x32xf32>
    %788 = arith.addf %787, %781 : vector<8x32xf32>
    %789 = vector.broadcast %756 : f32 to vector<8x32xf32>
    %790 = arith.mulf %789, %788 : vector<8x32xf32>
    %791 = arith.addf %747, %790 : vector<8x32xf32>
    %cst_172 = arith.constant dense<0.000000e+00> : vector<8x32xf32>
    %792 = tpu.matmul %791, %0, %cst_172 {dimension_numbers = #tpu.dot_dimension_numbers<[1], [0], [0], [1], [0, 0, 1, 1], [], []>} : vector<8x32xf32>, vector<32x32xf32>, vector<8x32xf32> -> vector<8x32xf32>
    %793 = vector.broadcast %1 : vector<1x32xf32> to vector<8x32xf32>
    %794 = arith.addf %792, %793 : vector<8x32xf32>
    %795 = math.tanh %794 : vector<8x32xf32>
    %796 = vector.broadcast %755 : f32 to vector<8x32xf32>
    %797 = arith.mulf %796, %795 : vector<8x32xf32>
    %798 = arith.addf %791, %797 : vector<8x32xf32>
    %cst_173 = arith.constant dense<0.000000e+00> : vector<8x32xf32>
    %799 = tpu.matmul %798, %0, %cst_173 {dimension_numbers = #tpu.dot_dimension_numbers<[1], [0], [0], [1], [0, 0, 1, 1], [], []>} : vector<8x32xf32>, vector<32x32xf32>, vector<8x32xf32> -> vector<8x32xf32>
    %800 = vector.broadcast %1 : vector<1x32xf32> to vector<8x32xf32>
    %801 = arith.addf %799, %800 : vector<8x32xf32>
    %802 = math.tanh %801 : vector<8x32xf32>
    %803 = vector.broadcast %755 : f32 to vector<8x32xf32>
    %804 = arith.mulf %803, %802 : vector<8x32xf32>
    %805 = arith.addf %791, %804 : vector<8x32xf32>
    %cst_174 = arith.constant dense<0.000000e+00> : vector<8x32xf32>
    %806 = tpu.matmul %805, %0, %cst_174 {dimension_numbers = #tpu.dot_dimension_numbers<[1], [0], [0], [1], [0, 0, 1, 1], [], []>} : vector<8x32xf32>, vector<32x32xf32>, vector<8x32xf32> -> vector<8x32xf32>
    %807 = vector.broadcast %1 : vector<1x32xf32> to vector<8x32xf32>
    %808 = arith.addf %806, %807 : vector<8x32xf32>
    %809 = math.tanh %808 : vector<8x32xf32>
    %810 = vector.broadcast %754 : f32 to vector<8x32xf32>
    %811 = arith.mulf %810, %809 : vector<8x32xf32>
    %812 = arith.addf %791, %811 : vector<8x32xf32>
    %cst_175 = arith.constant dense<0.000000e+00> : vector<8x32xf32>
    %813 = tpu.matmul %812, %0, %cst_175 {dimension_numbers = #tpu.dot_dimension_numbers<[1], [0], [0], [1], [0, 0, 1, 1], [], []>} : vector<8x32xf32>, vector<32x32xf32>, vector<8x32xf32> -> vector<8x32xf32>
    %814 = vector.broadcast %1 : vector<1x32xf32> to vector<8x32xf32>
    %815 = arith.addf %813, %814 : vector<8x32xf32>
    %816 = math.tanh %815 : vector<8x32xf32>
    %cst_176 = arith.constant 2.000000e+00 : f32
    %817 = vector.broadcast %cst_176 : f32 to vector<8x32xf32>
    %818 = arith.mulf %817, %802 : vector<8x32xf32>
    %819 = arith.addf %795, %818 : vector<8x32xf32>
    %cst_177 = arith.constant 2.000000e+00 : f32
    %820 = vector.broadcast %cst_177 : f32 to vector<8x32xf32>
    %821 = arith.mulf %820, %809 : vector<8x32xf32>
    %822 = arith.addf %819, %821 : vector<8x32xf32>
    %823 = arith.addf %822, %816 : vector<8x32xf32>
    %824 = vector.broadcast %756 : f32 to vector<8x32xf32>
    %825 = arith.mulf %824, %823 : vector<8x32xf32>
    %826 = arith.addf %791, %825 : vector<8x32xf32>
    %cst_178 = arith.constant dense<0.000000e+00> : vector<8x32xf32>
    %827 = tpu.matmul %826, %0, %cst_178 {dimension_numbers = #tpu.dot_dimension_numbers<[1], [0], [0], [1], [0, 0, 1, 1], [], []>} : vector<8x32xf32>, vector<32x32xf32>, vector<8x32xf32> -> vector<8x32xf32>
    %828 = vector.broadcast %1 : vector<1x32xf32> to vector<8x32xf32>
    %829 = arith.addf %827, %828 : vector<8x32xf32>
    %830 = math.tanh %829 : vector<8x32xf32>
    %831 = vector.broadcast %755 : f32 to vector<8x32xf32>
    %832 = arith.mulf %831, %830 : vector<8x32xf32>
    %833 = arith.addf %826, %832 : vector<8x32xf32>
    %cst_179 = arith.constant dense<0.000000e+00> : vector<8x32xf32>
    %834 = tpu.matmul %833, %0, %cst_179 {dimension_numbers = #tpu.dot_dimension_numbers<[1], [0], [0], [1], [0, 0, 1, 1], [], []>} : vector<8x32xf32>, vector<32x32xf32>, vector<8x32xf32> -> vector<8x32xf32>
    %835 = vector.broadcast %1 : vector<1x32xf32> to vector<8x32xf32>
    %836 = arith.addf %834, %835 : vector<8x32xf32>
    %837 = math.tanh %836 : vector<8x32xf32>
    %838 = vector.broadcast %755 : f32 to vector<8x32xf32>
    %839 = arith.mulf %838, %837 : vector<8x32xf32>
    %840 = arith.addf %826, %839 : vector<8x32xf32>
    %cst_180 = arith.constant dense<0.000000e+00> : vector<8x32xf32>
    %841 = tpu.matmul %840, %0, %cst_180 {dimension_numbers = #tpu.dot_dimension_numbers<[1], [0], [0], [1], [0, 0, 1, 1], [], []>} : vector<8x32xf32>, vector<32x32xf32>, vector<8x32xf32> -> vector<8x32xf32>
    %842 = vector.broadcast %1 : vector<1x32xf32> to vector<8x32xf32>
    %843 = arith.addf %841, %842 : vector<8x32xf32>
    %844 = math.tanh %843 : vector<8x32xf32>
    %845 = vector.broadcast %754 : f32 to vector<8x32xf32>
    %846 = arith.mulf %845, %844 : vector<8x32xf32>
    %847 = arith.addf %826, %846 : vector<8x32xf32>
    %cst_181 = arith.constant dense<0.000000e+00> : vector<8x32xf32>
    %848 = tpu.matmul %847, %0, %cst_181 {dimension_numbers = #tpu.dot_dimension_numbers<[1], [0], [0], [1], [0, 0, 1, 1], [], []>} : vector<8x32xf32>, vector<32x32xf32>, vector<8x32xf32> -> vector<8x32xf32>
    %849 = vector.broadcast %1 : vector<1x32xf32> to vector<8x32xf32>
    %850 = arith.addf %848, %849 : vector<8x32xf32>
    %851 = math.tanh %850 : vector<8x32xf32>
    %cst_182 = arith.constant 2.000000e+00 : f32
    %852 = vector.broadcast %cst_182 : f32 to vector<8x32xf32>
    %853 = arith.mulf %852, %837 : vector<8x32xf32>
    %854 = arith.addf %830, %853 : vector<8x32xf32>
    %cst_183 = arith.constant 2.000000e+00 : f32
    %855 = vector.broadcast %cst_183 : f32 to vector<8x32xf32>
    %856 = arith.mulf %855, %844 : vector<8x32xf32>
    %857 = arith.addf %854, %856 : vector<8x32xf32>
    %858 = arith.addf %857, %851 : vector<8x32xf32>
    %859 = vector.broadcast %756 : f32 to vector<8x32xf32>
    %860 = arith.mulf %859, %858 : vector<8x32xf32>
    %861 = arith.addf %826, %860 : vector<8x32xf32>
    %cst_184 = arith.constant dense<0.000000e+00> : vector<8x32xf32>
    %862 = tpu.matmul %861, %0, %cst_184 {dimension_numbers = #tpu.dot_dimension_numbers<[1], [0], [0], [1], [0, 0, 1, 1], [], []>} : vector<8x32xf32>, vector<32x32xf32>, vector<8x32xf32> -> vector<8x32xf32>
    %863 = vector.broadcast %1 : vector<1x32xf32> to vector<8x32xf32>
    %864 = arith.addf %862, %863 : vector<8x32xf32>
    %865 = math.tanh %864 : vector<8x32xf32>
    %866 = vector.broadcast %755 : f32 to vector<8x32xf32>
    %867 = arith.mulf %866, %865 : vector<8x32xf32>
    %868 = arith.addf %861, %867 : vector<8x32xf32>
    %cst_185 = arith.constant dense<0.000000e+00> : vector<8x32xf32>
    %869 = tpu.matmul %868, %0, %cst_185 {dimension_numbers = #tpu.dot_dimension_numbers<[1], [0], [0], [1], [0, 0, 1, 1], [], []>} : vector<8x32xf32>, vector<32x32xf32>, vector<8x32xf32> -> vector<8x32xf32>
    %870 = vector.broadcast %1 : vector<1x32xf32> to vector<8x32xf32>
    %871 = arith.addf %869, %870 : vector<8x32xf32>
    %872 = math.tanh %871 : vector<8x32xf32>
    %873 = vector.broadcast %755 : f32 to vector<8x32xf32>
    %874 = arith.mulf %873, %872 : vector<8x32xf32>
    %875 = arith.addf %861, %874 : vector<8x32xf32>
    %cst_186 = arith.constant dense<0.000000e+00> : vector<8x32xf32>
    %876 = tpu.matmul %875, %0, %cst_186 {dimension_numbers = #tpu.dot_dimension_numbers<[1], [0], [0], [1], [0, 0, 1, 1], [], []>} : vector<8x32xf32>, vector<32x32xf32>, vector<8x32xf32> -> vector<8x32xf32>
    %877 = vector.broadcast %1 : vector<1x32xf32> to vector<8x32xf32>
    %878 = arith.addf %876, %877 : vector<8x32xf32>
    %879 = math.tanh %878 : vector<8x32xf32>
    %880 = vector.broadcast %754 : f32 to vector<8x32xf32>
    %881 = arith.mulf %880, %879 : vector<8x32xf32>
    %882 = arith.addf %861, %881 : vector<8x32xf32>
    %cst_187 = arith.constant dense<0.000000e+00> : vector<8x32xf32>
    %883 = tpu.matmul %882, %0, %cst_187 {dimension_numbers = #tpu.dot_dimension_numbers<[1], [0], [0], [1], [0, 0, 1, 1], [], []>} : vector<8x32xf32>, vector<32x32xf32>, vector<8x32xf32> -> vector<8x32xf32>
    %884 = vector.broadcast %1 : vector<1x32xf32> to vector<8x32xf32>
    %885 = arith.addf %883, %884 : vector<8x32xf32>
    %886 = math.tanh %885 : vector<8x32xf32>
    %cst_188 = arith.constant 2.000000e+00 : f32
    %887 = vector.broadcast %cst_188 : f32 to vector<8x32xf32>
    %888 = arith.mulf %887, %872 : vector<8x32xf32>
    %889 = arith.addf %865, %888 : vector<8x32xf32>
    %cst_189 = arith.constant 2.000000e+00 : f32
    %890 = vector.broadcast %cst_189 : f32 to vector<8x32xf32>
    %891 = arith.mulf %890, %879 : vector<8x32xf32>
    %892 = arith.addf %889, %891 : vector<8x32xf32>
    %893 = arith.addf %892, %886 : vector<8x32xf32>
    %894 = vector.broadcast %756 : f32 to vector<8x32xf32>
    %895 = arith.mulf %894, %893 : vector<8x32xf32>
    %896 = arith.addf %861, %895 : vector<8x32xf32>
    %c6_190 = arith.constant 6 : index
    %c0_191 = arith.constant 0 : index
    %c0_192 = arith.constant 0 : index
    %897 = vector.load %arg5[%c6_190, %c0_191, %c0_192] : memref<8x8x32xf32, #tpu.memory_space<vmem>>, vector<1x8x32xf32>
    %898 = vector.shape_cast %897 : vector<1x8x32xf32> to vector<8x32xf32>
    %899 = vector.shape_cast %896 : vector<8x32xf32> to vector<1x8x32xf32>
    tpu.vector_store %arg5[%c6_190, %c0_191, %c0_192], %899 {strides = array<i32>} : memref<8x8x32xf32, #tpu.memory_space<vmem>>, vector<1x8x32xf32>,
    %c6_193 = arith.constant 6 : index
    %900 = memref.load %arg1[%c6_193] : memref<8xf32, #tpu.memory_space<smem>>
    %c7 = arith.constant 7 : index
    %901 = memref.load %arg1[%c7] : memref<8xf32, #tpu.memory_space<smem>>
    %902 = arith.subf %901, %900 : f32
    %cst_194 = arith.constant 2.500000e-01 : f32
    %903 = arith.mulf %902, %cst_194 : f32
    %cst_195 = arith.constant 5.000000e-01 : f32
    %904 = arith.mulf %cst_195, %903 : f32
    %cst_196 = arith.constant 0.166666672 : f32
    %905 = arith.mulf %903, %cst_196 : f32
    %cst_197 = arith.constant dense<0.000000e+00> : vector<8x32xf32>
    %906 = tpu.matmul %896, %0, %cst_197 {dimension_numbers = #tpu.dot_dimension_numbers<[1], [0], [0], [1], [0, 0, 1, 1], [], []>} : vector<8x32xf32>, vector<32x32xf32>, vector<8x32xf32> -> vector<8x32xf32>
    %907 = vector.broadcast %1 : vector<1x32xf32> to vector<8x32xf32>
    %908 = arith.addf %906, %907 : vector<8x32xf32>
    %909 = math.tanh %908 : vector<8x32xf32>
    %910 = vector.broadcast %904 : f32 to vector<8x32xf32>
    %911 = arith.mulf %910, %909 : vector<8x32xf32>
    %912 = arith.addf %896, %911 : vector<8x32xf32>
    %cst_198 = arith.constant dense<0.000000e+00> : vector<8x32xf32>
    %913 = tpu.matmul %912, %0, %cst_198 {dimension_numbers = #tpu.dot_dimension_numbers<[1], [0], [0], [1], [0, 0, 1, 1], [], []>} : vector<8x32xf32>, vector<32x32xf32>, vector<8x32xf32> -> vector<8x32xf32>
    %914 = vector.broadcast %1 : vector<1x32xf32> to vector<8x32xf32>
    %915 = arith.addf %913, %914 : vector<8x32xf32>
    %916 = math.tanh %915 : vector<8x32xf32>
    %917 = vector.broadcast %904 : f32 to vector<8x32xf32>
    %918 = arith.mulf %917, %916 : vector<8x32xf32>
    %919 = arith.addf %896, %918 : vector<8x32xf32>
    %cst_199 = arith.constant dense<0.000000e+00> : vector<8x32xf32>
    %920 = tpu.matmul %919, %0, %cst_199 {dimension_numbers = #tpu.dot_dimension_numbers<[1], [0], [0], [1], [0, 0, 1, 1], [], []>} : vector<8x32xf32>, vector<32x32xf32>, vector<8x32xf32> -> vector<8x32xf32>
    %921 = vector.broadcast %1 : vector<1x32xf32> to vector<8x32xf32>
    %922 = arith.addf %920, %921 : vector<8x32xf32>
    %923 = math.tanh %922 : vector<8x32xf32>
    %924 = vector.broadcast %903 : f32 to vector<8x32xf32>
    %925 = arith.mulf %924, %923 : vector<8x32xf32>
    %926 = arith.addf %896, %925 : vector<8x32xf32>
    %cst_200 = arith.constant dense<0.000000e+00> : vector<8x32xf32>
    %927 = tpu.matmul %926, %0, %cst_200 {dimension_numbers = #tpu.dot_dimension_numbers<[1], [0], [0], [1], [0, 0, 1, 1], [], []>} : vector<8x32xf32>, vector<32x32xf32>, vector<8x32xf32> -> vector<8x32xf32>
    %928 = vector.broadcast %1 : vector<1x32xf32> to vector<8x32xf32>
    %929 = arith.addf %927, %928 : vector<8x32xf32>
    %930 = math.tanh %929 : vector<8x32xf32>
    %cst_201 = arith.constant 2.000000e+00 : f32
    %931 = vector.broadcast %cst_201 : f32 to vector<8x32xf32>
    %932 = arith.mulf %931, %916 : vector<8x32xf32>
    %933 = arith.addf %909, %932 : vector<8x32xf32>
    %cst_202 = arith.constant 2.000000e+00 : f32
    %934 = vector.broadcast %cst_202 : f32 to vector<8x32xf32>
    %935 = arith.mulf %934, %923 : vector<8x32xf32>
    %936 = arith.addf %933, %935 : vector<8x32xf32>
    %937 = arith.addf %936, %930 : vector<8x32xf32>
    %938 = vector.broadcast %905 : f32 to vector<8x32xf32>
    %939 = arith.mulf %938, %937 : vector<8x32xf32>
    %940 = arith.addf %896, %939 : vector<8x32xf32>
    %cst_203 = arith.constant dense<0.000000e+00> : vector<8x32xf32>
    %941 = tpu.matmul %940, %0, %cst_203 {dimension_numbers = #tpu.dot_dimension_numbers<[1], [0], [0], [1], [0, 0, 1, 1], [], []>} : vector<8x32xf32>, vector<32x32xf32>, vector<8x32xf32> -> vector<8x32xf32>
    %942 = vector.broadcast %1 : vector<1x32xf32> to vector<8x32xf32>
    %943 = arith.addf %941, %942 : vector<8x32xf32>
    %944 = math.tanh %943 : vector<8x32xf32>
    %945 = vector.broadcast %904 : f32 to vector<8x32xf32>
    %946 = arith.mulf %945, %944 : vector<8x32xf32>
    %947 = arith.addf %940, %946 : vector<8x32xf32>
    %cst_204 = arith.constant dense<0.000000e+00> : vector<8x32xf32>
    %948 = tpu.matmul %947, %0, %cst_204 {dimension_numbers = #tpu.dot_dimension_numbers<[1], [0], [0], [1], [0, 0, 1, 1], [], []>} : vector<8x32xf32>, vector<32x32xf32>, vector<8x32xf32> -> vector<8x32xf32>
    %949 = vector.broadcast %1 : vector<1x32xf32> to vector<8x32xf32>
    %950 = arith.addf %948, %949 : vector<8x32xf32>
    %951 = math.tanh %950 : vector<8x32xf32>
    %952 = vector.broadcast %904 : f32 to vector<8x32xf32>
    %953 = arith.mulf %952, %951 : vector<8x32xf32>
    %954 = arith.addf %940, %953 : vector<8x32xf32>
    %cst_205 = arith.constant dense<0.000000e+00> : vector<8x32xf32>
    %955 = tpu.matmul %954, %0, %cst_205 {dimension_numbers = #tpu.dot_dimension_numbers<[1], [0], [0], [1], [0, 0, 1, 1], [], []>} : vector<8x32xf32>, vector<32x32xf32>, vector<8x32xf32> -> vector<8x32xf32>
    %956 = vector.broadcast %1 : vector<1x32xf32> to vector<8x32xf32>
    %957 = arith.addf %955, %956 : vector<8x32xf32>
    %958 = math.tanh %957 : vector<8x32xf32>
    %959 = vector.broadcast %903 : f32 to vector<8x32xf32>
    %960 = arith.mulf %959, %958 : vector<8x32xf32>
    %961 = arith.addf %940, %960 : vector<8x32xf32>
    %cst_206 = arith.constant dense<0.000000e+00> : vector<8x32xf32>
    %962 = tpu.matmul %961, %0, %cst_206 {dimension_numbers = #tpu.dot_dimension_numbers<[1], [0], [0], [1], [0, 0, 1, 1], [], []>} : vector<8x32xf32>, vector<32x32xf32>, vector<8x32xf32> -> vector<8x32xf32>
    %963 = vector.broadcast %1 : vector<1x32xf32> to vector<8x32xf32>
    %964 = arith.addf %962, %963 : vector<8x32xf32>
    %965 = math.tanh %964 : vector<8x32xf32>
    %cst_207 = arith.constant 2.000000e+00 : f32
    %966 = vector.broadcast %cst_207 : f32 to vector<8x32xf32>
    %967 = arith.mulf %966, %951 : vector<8x32xf32>
    %968 = arith.addf %944, %967 : vector<8x32xf32>
    %cst_208 = arith.constant 2.000000e+00 : f32
    %969 = vector.broadcast %cst_208 : f32 to vector<8x32xf32>
    %970 = arith.mulf %969, %958 : vector<8x32xf32>
    %971 = arith.addf %968, %970 : vector<8x32xf32>
    %972 = arith.addf %971, %965 : vector<8x32xf32>
    %973 = vector.broadcast %905 : f32 to vector<8x32xf32>
    %974 = arith.mulf %973, %972 : vector<8x32xf32>
    %975 = arith.addf %940, %974 : vector<8x32xf32>
    %cst_209 = arith.constant dense<0.000000e+00> : vector<8x32xf32>
    %976 = tpu.matmul %975, %0, %cst_209 {dimension_numbers = #tpu.dot_dimension_numbers<[1], [0], [0], [1], [0, 0, 1, 1], [], []>} : vector<8x32xf32>, vector<32x32xf32>, vector<8x32xf32> -> vector<8x32xf32>
    %977 = vector.broadcast %1 : vector<1x32xf32> to vector<8x32xf32>
    %978 = arith.addf %976, %977 : vector<8x32xf32>
    %979 = math.tanh %978 : vector<8x32xf32>
    %980 = vector.broadcast %904 : f32 to vector<8x32xf32>
    %981 = arith.mulf %980, %979 : vector<8x32xf32>
    %982 = arith.addf %975, %981 : vector<8x32xf32>
    %cst_210 = arith.constant dense<0.000000e+00> : vector<8x32xf32>
    %983 = tpu.matmul %982, %0, %cst_210 {dimension_numbers = #tpu.dot_dimension_numbers<[1], [0], [0], [1], [0, 0, 1, 1], [], []>} : vector<8x32xf32>, vector<32x32xf32>, vector<8x32xf32> -> vector<8x32xf32>
    %984 = vector.broadcast %1 : vector<1x32xf32> to vector<8x32xf32>
    %985 = arith.addf %983, %984 : vector<8x32xf32>
    %986 = math.tanh %985 : vector<8x32xf32>
    %987 = vector.broadcast %904 : f32 to vector<8x32xf32>
    %988 = arith.mulf %987, %986 : vector<8x32xf32>
    %989 = arith.addf %975, %988 : vector<8x32xf32>
    %cst_211 = arith.constant dense<0.000000e+00> : vector<8x32xf32>
    %990 = tpu.matmul %989, %0, %cst_211 {dimension_numbers = #tpu.dot_dimension_numbers<[1], [0], [0], [1], [0, 0, 1, 1], [], []>} : vector<8x32xf32>, vector<32x32xf32>, vector<8x32xf32> -> vector<8x32xf32>
    %991 = vector.broadcast %1 : vector<1x32xf32> to vector<8x32xf32>
    %992 = arith.addf %990, %991 : vector<8x32xf32>
    %993 = math.tanh %992 : vector<8x32xf32>
    %994 = vector.broadcast %903 : f32 to vector<8x32xf32>
    %995 = arith.mulf %994, %993 : vector<8x32xf32>
    %996 = arith.addf %975, %995 : vector<8x32xf32>
    %cst_212 = arith.constant dense<0.000000e+00> : vector<8x32xf32>
    %997 = tpu.matmul %996, %0, %cst_212 {dimension_numbers = #tpu.dot_dimension_numbers<[1], [0], [0], [1], [0, 0, 1, 1], [], []>} : vector<8x32xf32>, vector<32x32xf32>, vector<8x32xf32> -> vector<8x32xf32>
    %998 = vector.broadcast %1 : vector<1x32xf32> to vector<8x32xf32>
    %999 = arith.addf %997, %998 : vector<8x32xf32>
    %1000 = math.tanh %999 : vector<8x32xf32>
    %cst_213 = arith.constant 2.000000e+00 : f32
    %1001 = vector.broadcast %cst_213 : f32 to vector<8x32xf32>
    %1002 = arith.mulf %1001, %986 : vector<8x32xf32>
    %1003 = arith.addf %979, %1002 : vector<8x32xf32>
    %cst_214 = arith.constant 2.000000e+00 : f32
    %1004 = vector.broadcast %cst_214 : f32 to vector<8x32xf32>
    %1005 = arith.mulf %1004, %993 : vector<8x32xf32>
    %1006 = arith.addf %1003, %1005 : vector<8x32xf32>
    %1007 = arith.addf %1006, %1000 : vector<8x32xf32>
    %1008 = vector.broadcast %905 : f32 to vector<8x32xf32>
    %1009 = arith.mulf %1008, %1007 : vector<8x32xf32>
    %1010 = arith.addf %975, %1009 : vector<8x32xf32>
    %cst_215 = arith.constant dense<0.000000e+00> : vector<8x32xf32>
    %1011 = tpu.matmul %1010, %0, %cst_215 {dimension_numbers = #tpu.dot_dimension_numbers<[1], [0], [0], [1], [0, 0, 1, 1], [], []>} : vector<8x32xf32>, vector<32x32xf32>, vector<8x32xf32> -> vector<8x32xf32>
    %1012 = vector.broadcast %1 : vector<1x32xf32> to vector<8x32xf32>
    %1013 = arith.addf %1011, %1012 : vector<8x32xf32>
    %1014 = math.tanh %1013 : vector<8x32xf32>
    %1015 = vector.broadcast %904 : f32 to vector<8x32xf32>
    %1016 = arith.mulf %1015, %1014 : vector<8x32xf32>
    %1017 = arith.addf %1010, %1016 : vector<8x32xf32>
    %cst_216 = arith.constant dense<0.000000e+00> : vector<8x32xf32>
    %1018 = tpu.matmul %1017, %0, %cst_216 {dimension_numbers = #tpu.dot_dimension_numbers<[1], [0], [0], [1], [0, 0, 1, 1], [], []>} : vector<8x32xf32>, vector<32x32xf32>, vector<8x32xf32> -> vector<8x32xf32>
    %1019 = vector.broadcast %1 : vector<1x32xf32> to vector<8x32xf32>
    %1020 = arith.addf %1018, %1019 : vector<8x32xf32>
    %1021 = math.tanh %1020 : vector<8x32xf32>
    %1022 = vector.broadcast %904 : f32 to vector<8x32xf32>
    %1023 = arith.mulf %1022, %1021 : vector<8x32xf32>
    %1024 = arith.addf %1010, %1023 : vector<8x32xf32>
    %cst_217 = arith.constant dense<0.000000e+00> : vector<8x32xf32>
    %1025 = tpu.matmul %1024, %0, %cst_217 {dimension_numbers = #tpu.dot_dimension_numbers<[1], [0], [0], [1], [0, 0, 1, 1], [], []>} : vector<8x32xf32>, vector<32x32xf32>, vector<8x32xf32> -> vector<8x32xf32>
    %1026 = vector.broadcast %1 : vector<1x32xf32> to vector<8x32xf32>
    %1027 = arith.addf %1025, %1026 : vector<8x32xf32>
    %1028 = math.tanh %1027 : vector<8x32xf32>
    %1029 = vector.broadcast %903 : f32 to vector<8x32xf32>
    %1030 = arith.mulf %1029, %1028 : vector<8x32xf32>
    %1031 = arith.addf %1010, %1030 : vector<8x32xf32>
    %cst_218 = arith.constant dense<0.000000e+00> : vector<8x32xf32>
    %1032 = tpu.matmul %1031, %0, %cst_218 {dimension_numbers = #tpu.dot_dimension_numbers<[1], [0], [0], [1], [0, 0, 1, 1], [], []>} : vector<8x32xf32>, vector<32x32xf32>, vector<8x32xf32> -> vector<8x32xf32>
    %1033 = vector.broadcast %1 : vector<1x32xf32> to vector<8x32xf32>
    %1034 = arith.addf %1032, %1033 : vector<8x32xf32>
    %1035 = math.tanh %1034 : vector<8x32xf32>
    %cst_219 = arith.constant 2.000000e+00 : f32
    %1036 = vector.broadcast %cst_219 : f32 to vector<8x32xf32>
    %1037 = arith.mulf %1036, %1021 : vector<8x32xf32>
    %1038 = arith.addf %1014, %1037 : vector<8x32xf32>
    %cst_220 = arith.constant 2.000000e+00 : f32
    %1039 = vector.broadcast %cst_220 : f32 to vector<8x32xf32>
    %1040 = arith.mulf %1039, %1028 : vector<8x32xf32>
    %1041 = arith.addf %1038, %1040 : vector<8x32xf32>
    %1042 = arith.addf %1041, %1035 : vector<8x32xf32>
    %1043 = vector.broadcast %905 : f32 to vector<8x32xf32>
    %1044 = arith.mulf %1043, %1042 : vector<8x32xf32>
    %1045 = arith.addf %1010, %1044 : vector<8x32xf32>
    %c7_221 = arith.constant 7 : index
    %c0_222 = arith.constant 0 : index
    %c0_223 = arith.constant 0 : index
    %1046 = vector.load %arg5[%c7_221, %c0_222, %c0_223] : memref<8x8x32xf32, #tpu.memory_space<vmem>>, vector<1x8x32xf32>
    %1047 = vector.shape_cast %1046 : vector<1x8x32xf32> to vector<8x32xf32>
    %1048 = vector.shape_cast %1045 : vector<8x32xf32> to vector<1x8x32xf32>
    tpu.vector_store %arg5[%c7_221, %c0_222, %c0_223], %1048 {strides = array<i32>} : memref<8x8x32xf32, #tpu.memory_space<vmem>>, vector<1x8x32xf32>,
    return
  }
  func.func @transform_0(%arg0: i32) -> i32 {
    %c0_i32 = arith.constant 0 : i32
    %c0_i32_0 = arith.constant 0 : i32
    return %c0_i32 : i32
  }
  func.func @transform_1(%arg0: i32) -> (i32, i32) {
    %c0_i32 = arith.constant 0 : i32
    %c0_i32_0 = arith.constant 0 : i32
    return %arg0, %c0_i32 : i32, i32
  }
  func.func @transform_2(%arg0: i32) -> (i32, i32) {
    %c0_i32 = arith.constant 0 : i32
    %c0_i32_0 = arith.constant 0 : i32
    %c0_i32_1 = arith.constant 0 : i32
    return %c0_i32, %c0_i32_0 : i32, i32
  }
  func.func @transform_3(%arg0: i32) -> (i32, i32) {
    %c0_i32 = arith.constant 0 : i32
    %c0_i32_0 = arith.constant 0 : i32
    %c0_i32_1 = arith.constant 0 : i32
    return %c0_i32, %c0_i32_0 : i32, i32
  }
  func.func @transform_4(%arg0: i32) -> (i32, i32, i32) {
    %c0_i32 = arith.constant 0 : i32
    %c0_i32_0 = arith.constant 0 : i32
    %c0_i32_1 = arith.constant 0 : i32
    return %c0_i32, %arg0, %c0_i32_0 : i32, i32, i32
  }
}

</mosaic_0001>

<bundles_post_ra>
// kernel: tpu_custom_call.1
= control target key start
LH: loop header
LB: loop body
LE: loop exit
PB: predicated region body
PF: predicated region fallthrough
CT: control target
= control target key end

     0   :  { %9 = vsyncpa [#allocation5], 0  ;;  %s13522_s0 = inlined_call_operand.hbm [shape: f32[8], index: 0, kind: input, shape index: {}]   ;;  %s13523_s1 = inlined_call_operand.hbm [shape: f32[16,32], index: 1, kind: input, shape index: {}]   ;;  %s13524_s2 = inlined_call_operand.hbm [shape: f32[32,32], index: 2, kind: input, shape index: {}]   ;;  %s13525_s3 = inlined_call_operand.vmem [shape: f32[1,32], index: 3, kind: input, shape index: {}]   ;;  %s13526_s4 = inlined_call_operand.hbm [shape: f32[8,16,32], index: 4, kind: output, shape index: {}]  }
   0x1   :  { %10 = vsyncpa [#allocation3], 0 }
   0x2   :  { %12 = vsyncpa [#allocation3 + $0x1], 0 }
   0x3   :  { %13 = vsyncpa [#allocation8], 0 }
   0x4   :  { %14 = vsyncpa [#allocation4], 0 }
   0x5   :  { %16 = vsyncpa [#allocation4 + $0x1], 0  ;;  %s11523_s15 = smov 0   ;;  %s11525_s16 = smov 0  }
   0x6   :  { %s11527_s17 = smov 0   ;;  %s11529_s18 = smov 0  }
   0x7 LB: > { %s11544_s19 = sadd.s32 4294967295, %s11485_s18   ;;  %s9091_s20 = sadd.s32 4294967294, %s11485_s18   ;;  %s11485_s18 = sphi %s11529_s18, %s13549_s18   ;;  %s11481_s17 = sphi %s11527_s17, %s13548_s17   ;;  %s11477_s16 = sphi %s11525_s16, %s13547_s16   ;;  %s11473_s15 = sphi %s11523_s15, %s13546_s15  }
   0x8   : > { %p63_p0 = scmp.ne.s32.totalorder %s11477_s16, %s11473_s15  ;;  %p13527_p1 = scmp.eq.s32.totalorder %s11544_s19, 0 }
   0x9   : > { %p129_p2 = scmp.eq.s32.totalorder %s11544_s19, 1  ;;  %p135_p3 = scmp.eq.s32.totalorder %s9091_s20, 1 }
   0xa   : > { %p11553_p4 = por %p13527_p1, %p63_p0  ;;  %p9092_p5 = scmp.ge.s32.totalorder %s11485_s18, 1 }
   0xb   : > { %p11558_p6 = por %p135_p3, %p63_p0  ;;  %p142_p7 = scmp.lt.s32.totalorder %s11485_s18, 3 }
   0xc   : > { %s13531_s21 = scalar_select %p11553_p4, 1, 0 }
   0xd   : > { %s13532_s22 = scalar_select %p11558_p6, 1, 0 }
   0xe   : > { %p11563_p8 = pnand %p9092_p5, %p142_p7  ;;  %s11487_s24 = smov [#allocation7]  }
   0xf   : > { %s163_s25 = sshll.u32 %s11487_s24, 4  ;;  %s11577_s27 = sadd.s32 1, %s11485_s18   ;;  %s164_s25 = int_to_ptr.vmem [resolvable:$true] %s163_s25 }
  0x10   : > { %s13533_s23 = scalar_select %p11563_p8, 1, 0 }
  0x11   : > { %p11044_p10 = pneg %p11563_p8  ;;  %s47_s28 = ssub.s32 %s11485_s18, %s11577_s27 }
  0x12   : > { %s11488_s29 = smov [#allocation2]   ;;  %s11370_s6 = scalar_lea.vmem %s164_s25, 512 }
  0x13   : > { %p11572_p11 = pnand %p11044_p10, %p13527_p1  ;;  %p11371_p13 = scmp.ne.s32.totalorder %s164_s25, %s11370_s6 }
  0x14   : > { %p11378_p5 = scmp.lt.s32.totalorder %s164_s25, %s164_s25  ;;  %p11379_p7 = scmp.lt.s32.totalorder %s11370_s6, %s11370_s6 }
  0x15   : > { %11047 = dma.hbm_to_smem (!%p11572_p11), %s13522_s0, 16, %s11488_s29, [#allocation5]  }
  0x16   : > { %p11361_p12 = pneg %p11572_p11  ;;  %p11380_p10 = por %p11379_p7, %p11378_p5 }
  0x18   : > { %p11373_p0 = pnand %p11371_p13, %p11361_p12 }
  0x1a   : > { %p11374_p3 = pneg %p11373_p0 }
  0x1c   : > { %p11381_p9 = pnand %p11380_p10, %p11374_p3 }
  0x1e   : > { %11384 = shalt.err (!%p11381_p9)
}
  0x1f   : > { %s11489_s7 = smov 128   ;;  %s11490_s8 = smov 8  }
  0x20   : > { %11050 = dma.hbm_to_vmem [thread:$0]  (!%p11572_p11), %s13524_s2, 512, %s164_s25, [#allocation8], %s11489_s7, %s11489_s7, %s11490_s8  }
  0x21   : > { %p48_p12 = scmp.eq.s32.totalorder %s47_s28, 0  ;;  %s50_s11 = sadd.s32 1, %s11481_s17 }
  0x22   : > { %p57_p9 = scmp.ne.s32.totalorder %s11481_s17, %s11477_s16  ;;  %p58_p13 = scmp.eq.s32.totalorder %s11485_s18, 0 }
  0x23   : > { %s11598_s12 = scalar_select %p48_p12, %s11481_s17, %s50_s11  }
  0x24   : > { %p59_p0 = por %p58_p13, %p57_p9  ;;  %p11602_p3 = por %p129_p2, %p57_p9 }
  0x25   : > { %p11061_p5 = scmp.lt.s32.totalorder %s11485_s18, 2  ;;  %s180_s14 = sand.u32 1, %s11481_s17  }
  0x26   : > { %s13535_s13 = scalar_select %p11602_p3, 1, 0 }
  0x27   : > { %s9096_s20 = sshll.u32 %s180_s14, 3  ;;  %s9097_s24 = sshll.u32 %s11485_s18, 7 }
  0x28   : > { %s11612_s25 = scalar_lea.hbm %s13523_s1, %s9097_s24  ;;  %s184_s28 = scalar_lea.vmem [#allocation6], %s9096_s20 }
  0x29   : > { %s191_s30 = sshll.u32 %s184_s28, 4  ;;  %p11614_p11 = pnand %p11061_p5, %p59_p0  ;;  %s192_s30 = int_to_ptr.vmem [resolvable:$true] %s191_s30 }
  0x2a   : > { %s181_s6 = scalar_lea.sflag [#allocation3], %s180_s14  ;;  %s11385_s7 = scalar_lea.hbm %s11612_s25, 128 }
  0x2b   : > { %p11386_p2 = scmp.ne.s32.totalorder %s11612_s25, %s11385_s7  ;;  %p11387_p7 = pneg %p11614_p11 }
  0x2c   : > { %s11390_s10 = scalar_lea.hbm %s13523_s1, 256  ;;  %p11391_p9 = scmp.lt.s32.totalorder %s11612_s25, %s13523_s1 }
  0x2d   : > { %p11388_p10 = pnand %p11387_p7, %p11386_p2  ;;  %p11392_p13 = scmp.lt.s32.totalorder %s11390_s10, %s11385_s7 }
  0x2f   : > { %p11389_p12 = pneg %p11388_p10  ;;  %p11393_p0 = por %p11392_p13, %p11391_p9 }
  0x31   : > { %p11394_p5 = pnand %p11393_p0, %p11389_p12 }
  0x33   : > { %11397 = shalt.err (!%p11394_p5)
}
  0x34   : > { %s11398_s24 = scalar_lea.vmem %s192_s30, 128  ;;  %s11491_s14 = smov [#allocation6]  }
  0x35   : > { %p11399_p1 = scmp.ne.s32.totalorder %s192_s30, %s11398_s24  ;;  %s11403_s26 = sshll.u32 %s11491_s14, 4  ;;  %s11404_s26 = int_to_ptr.vmem [resolvable:$false] %s11403_s26 }
  0x36   : > { %s11405_s29 = scalar_lea.vmem %s11404_s26, 256  ;;  %p11406_p2 = scmp.lt.s32.totalorder %s192_s30, %s11404_s26 }
  0x37   : > { %p11401_p6 = pnand %p11399_p1, %p11387_p7  ;;  %p11407_p10 = scmp.lt.s32.totalorder %s11405_s29, %s11398_s24 }
  0x39   : > { %p11402_p3 = pneg %p11401_p6  ;;  %p11408_p4 = por %p11407_p10, %p11406_p2 }
  0x3b   : > { %p11409_p8 = pnand %p11408_p4, %p11402_p3 }
  0x3d   : > { %11412 = shalt.err (!%p11409_p8)
}
  0x3e   : > { %11054 = dma.hbm_to_vmem [thread:$0]  (!%p11614_p11), %s11612_s25, 128, %s192_s30, %s181_s6  }
  0x3f   : > { %p13537_p12 = scmp.ne.s32.totalorder %s13533_s23, 0 }
  0x40   : > { %p13538_p9 = scmp.eq.s32.totalorder (!%p13537_p12), %s11544_s19, 0 }
  0x41   : > { %200 = sbr.rel (%p13537_p12) target bundleno = 24016 (0x5dd0), region = 36 }
  0x46   : > { %11456 = dma.done.wait (%p13538_p9), [#allocation5], 16   ;;  %p13539_p1 = pmov %p13538_p9 }
  0x47   : > { %s11639_s28 = sand.u32 1, %s11477_s16   ;;  %p13540_p4 = scmp.ne.s32.totalorder %s13531_s21, 0 }
  0x48   : > { %11458 = vsyncadd (%p13539_p1), [#allocation5], 4294967280  ;;  %s9100_s7 = sshll.u32 %s11639_s28, 3  ;;  %s207_s8 = scalar_lea.sflag [#allocation3], %s11639_s28 }
  0x49   : > { %s210_s5 = scalar_lea.vmem [#allocation6], %s9100_s7 }
  0x4a   : > { %11460 = dma.done.wait (%p13540_p4), %s207_s8, 128  }
  0x4b   : > { %11462 = vsyncadd (%p13540_p4), %s207_s8, 4294967168  ;;  %p13541_p6 = pmov %p13539_p1 }
  0x4c   : > { %p13542_p8 = pmov %p13539_p1 }
  0x4d   : > { %11464 = dma.done.wait (%p13541_p6), [#allocation8], 512  }
  0x4e   : > { %11466 = vsyncadd (%p13542_p8), [#allocation8], 4294966784 }
  0x4f   : > { %219 = sfence }
  0x50   : > { %v11651_v0 = vld [vmem:[#allocation7 + $0x18] sm:$0xff]  ;;  %s9102_s23 = sshll.u32 %s11639_s28, 6  ;;  %v11492_v1 = vmov 0.0   ;;  %v11655_v2 = vld [vmem:[#allocation7 + $0x10] sm:$0xff]  ;;  %vm11493_vm0 = vmmov 0   ;;  %vm246_vm1 = vcmask 261120  }
  0x51   : > { %9800 = vmatprep.subr.mxu0 %v11492_v1  ;;  %9808 = vmatprep.mubr.msk.f32.mxu0 %vm11493_vm0, %v11492_v1  ;;  %v11659_v3 = vld [vmem:[%s210_s5] sm:$0xff]  ;;  %s11662_s21 = scalar_lea.vmem [#allocation9], %s9102_s23  ;;  %v11669_v4 = vld [vmem:[#allocation7 + $0x8] sm:$0xff]  ;;  %v11675_v5 = vld [vmem:[#allocation7] sm:$0xff]  ;;  %s248_s25 = sld [smem:[#allocation2]] }
  0x52   : > { %9801 = vmatpush3.msra.mxu0 %v11651_v0  ;;  %247 = vst.msk [vmem:[%s11662_s21] sm:$0xff] %vm246_vm1, %v11659_v3  ;;  %9811 = vmatprep.subr.mxu1 %v11492_v1  ;;  %s11701_s30 = sld [smem:[#allocation2 + $0x1]]  ;;  %v11706_v6 = vld [vmem:[%s13525_s3] ss:$0 sm:$0xff]  ;;  %p13543_p11 = scmp.ne.s32.totalorder %s13535_s13, 0 }
  0x53   : > { %9802 = vmatprep.subr.mxu0 %v11492_v1  ;;  %9812 = vmatpush3.msra.mxu1 %v11651_v0  ;;  %s11959_s14 = sld [smem:[#allocation2 + $0x2]] }
  0x54   : > { %9803 = vmatpush3.msra.mxu0 %v11655_v2  ;;  %9813 = vmatprep.subr.mxu1 %v11492_v1 }
  0x55   : > { %9804 = vmatprep.subr.mxu0 %v11492_v1  ;;  %9814 = vmatpush3.msra.mxu1 %v11655_v2 }
  0x56   : > { %9805 = vmatpush3.msra.mxu0 %v11669_v4  ;;  %9815 = vmatprep.subr.mxu1 %v11492_v1 }
  0x57   : > { %9806 = vmatprep.subr.mxu0 %v11492_v1  ;;  %9816 = vmatpush3.msra.mxu1 %v11669_v4 }
  0x58   : > { %9807 = vmatpush3.msra.mxu0 %v11675_v5  ;;  %9817 = vmatprep.subr.mxu1 %v11492_v1  ;;  %s250_s10 = ssub.f32 %s11701_s30, %s248_s25 }
  0x59   : > { %9809 = vmatmul.mubr.msk.f32.vlgmr.msra.gmra.mxu0 %vm246_vm1, %v11659_v3  ;;  %9818 = vmatpush3.msra.mxu1 %v11675_v5  ;;  %s1503_s26 = ssub.f32 %s11959_s14, %s11701_s30 }
  0x5a   : > { %9819 = vmatprep.mubr.msk.f32.mxu1 %vm11493_vm0, %v11492_v1  ;;  %9822 = vmatprep.subr.mxu0 %v11492_v1  ;;  %s11710_s11 = smul.f32 0.25, %s250_s10  ;;  %s12226_s25 = sld [smem:[#allocation2 + $0x3]] }
  0x5b   : > { %9823 = vmatpush3.msra.mxu0 %v11651_v0  ;;  %9830 = vmatprep.mubr.msk.f32.mxu0 %vm11493_vm0, %v11492_v1  ;;  %s11964_s29 = smul.f32 0.25, %s1503_s26 }
  0x5c   : > { %9824 = vmatprep.subr.mxu0 %v11492_v1  ;;  %9833 = vmatprep.subr.mxu1 %v11492_v1  ;;  %s252_s20 = smul.f32 0.5, %s11710_s11  ;;  %v11744_v24 = vstv %s11710_s11 }
  0x5d   : > { %9825 = vmatpush3.msra.mxu0 %v11655_v2  ;;  %s253_s24 = smul.f32 0.16666667, %s11710_s11  ;;  %s12480_s11 = sld [smem:[#allocation2 + $0x4]] }
  0x5e   : > { %9826 = vmatprep.subr.mxu0 %v11492_v1  ;;  %v11713_v10 = vstv %s252_s20  ;;  %s1505_s7 = smul.f32 0.5, %s11964_s29 }
  0x5f   : > { %9827 = vmatpush3.msra.mxu0 %v11669_v4  ;;  %v11761_v35 = vstv %s253_s24  ;;  %s1506_s8 = smul.f32 0.16666667, %s11964_s29 }
  0x60   : > { %9828 = vmatprep.subr.mxu0 %v11492_v1  ;;  %s2750_s30 = ssub.f32 %s12226_s25, %s11959_s14 }
  0x61   : > { %9829 = vmatpush3.msra.mxu0 %v11675_v5 }
  0x62   : > { %9844 = vmatprep.subr.mxu0 %v11492_v1  ;;  %s12231_s6 = smul.f32 0.25, %s2750_s30 }
  0x63   : > { %s3997_s20 = ssub.f32 %s12480_s11, %s12226_s25 }
  0x64   : > { %s2752_s9 = smul.f32 0.5, %s12231_s6 }
  0x65   : > { %s2753_s10 = smul.f32 0.16666667, %s12231_s6 }
  0x66   : > { %s12485_s24 = smul.f32 0.25, %s3997_s20 }
  0x68   : > { %s3999_s14 = smul.f32 0.5, %s12485_s24 }
  0x69   : > { %s4000_s26 = smul.f32 0.16666667, %s12485_s24 }
 0x119   : > { %v329_v7 = vpop.f32.mrf.mxu0 }
 0x11a   : > { %v330_v8 = vadd.f32 %v11706_v6, %v329_v7 }
 0x11b   : > { %v9810_v9 = vpop.f32.mrf.mxu0 }
 0x11c   : > { %11106 = vtanh.f32 %v330_v8 }
 0x129   : > { %v11107_v11 = vpop.eup %11106 }
 0x12a   : > { %v335_v12 = vmul.f32 %v11107_v11, %v11713_v10 }
 0x12c   : > { %v336_v13 = vadd.f32 %v335_v12, %v11659_v3 }
 0x12e   : > { %9820 = vmatmul.mubr.msk.f32.vlgmr.msra.gmra.mxu1 %vm246_vm1, %v336_v13 }
 0x12f   : > { %9834 = vmatpush3.msra.mxu1 %v11651_v0  ;;  %9841 = vmatprep.mubr.msk.f32.mxu1 %vm11493_vm0, %v11492_v1 }
 0x130   : > { %9835 = vmatprep.subr.mxu1 %v11492_v1 }
 0x131   : > { %9836 = vmatpush3.msra.mxu1 %v11655_v2 }
 0x132   : > { %9837 = vmatprep.subr.mxu1 %v11492_v1 }
 0x133   : > { %9838 = vmatpush3.msra.mxu1 %v11669_v4 }
 0x134   : > { %9839 = vmatprep.subr.mxu1 %v11492_v1 }
 0x135   : > { %9840 = vmatpush3.msra.mxu1 %v11675_v5 }
 0x136   : > { %9855 = vmatprep.subr.mxu1 %v11492_v1 }
 0x1ee   : > { %v406_v14 = vpop.f32.mrf.mxu1 }
 0x1ef   : > { %v407_v15 = vadd.f32 %v11706_v6, %v406_v14 }
 0x1f0   : > { %v9821_v16 = vpop.f32.mrf.mxu1 }
 0x1f1   : > { %11108 = vtanh.f32 %v407_v15 }
 0x1fe   : > { %v11109_v17 = vpop.eup %11108 }
 0x1ff   : > { %v411_v18 = vmul.f32 %v11109_v17, %v11713_v10  ;;  %v564_v23 = vmul.f32 2.0, %v11109_v17 }
 0x201   : > { %v412_v19 = vadd.f32 %v411_v18, %v11659_v3  ;;  %v565_v26 = vadd.f32 %v11107_v11, %v564_v23 }
 0x203   : > { %9831 = vmatmul.mubr.msk.f32.vlgmr.msra.gmra.mxu0 %vm246_vm1, %v412_v19 }
 0x204   : > { %9845 = vmatpush3.msra.mxu0 %v11651_v0  ;;  %9852 = vmatprep.mubr.msk.f32.mxu0 %vm11493_vm0, %v11492_v1 }
 0x205   : > { %9846 = vmatprep.subr.mxu0 %v11492_v1 }
 0x206   : > { %9847 = vmatpush3.msra.mxu0 %v11655_v2 }
 0x207   : > { %9848 = vmatprep.subr.mxu0 %v11492_v1 }
 0x208   : > { %9849 = vmatpush3.msra.mxu0 %v11669_v4 }
 0x209   : > { %9850 = vmatprep.subr.mxu0 %v11492_v1 }
 0x20a   : > { %9851 = vmatpush3.msra.mxu0 %v11675_v5 }
 0x20b   : > { %9866 = vmatprep.subr.mxu0 %v11492_v1 }
 0x2c3   : > { %v482_v20 = vpop.f32.mrf.mxu0 }
 0x2c4   : > { %v483_v21 = vadd.f32 %v11706_v6, %v482_v20 }
 0x2c5   : > { %v9832_v22 = vpop.f32.mrf.mxu0 }
 0x2c6   : > { %11110 = vtanh.f32 %v483_v21 }
 0x2d3   : > { %v11111_v25 = vpop.eup %11110 }
 0x2d4   : > { %v566_v27 = vmul.f32 2.0, %v11111_v25  ;;  %v488_v28 = vmul.f32 %v11111_v25, %v11744_v24 }
 0x2d6   : > { %v489_v29 = vadd.f32 %v488_v28, %v11659_v3  ;;  %v567_v30 = vadd.f32 %v566_v27, %v565_v26 }
 0x2d8   : > { %9842 = vmatmul.mubr.msk.f32.vlgmr.msra.gmra.mxu1 %vm246_vm1, %v489_v29 }
 0x2d9   : > { %9856 = vmatpush3.msra.mxu1 %v11651_v0  ;;  %9863 = vmatprep.mubr.msk.f32.mxu1 %vm11493_vm0, %v11492_v1 }
 0x2da   : > { %9857 = vmatprep.subr.mxu1 %v11492_v1 }
 0x2db   : > { %9858 = vmatpush3.msra.mxu1 %v11655_v2 }
 0x2dc   : > { %9859 = vmatprep.subr.mxu1 %v11492_v1 }
 0x2dd   : > { %9860 = vmatpush3.msra.mxu1 %v11669_v4 }
 0x2de   : > { %9861 = vmatprep.subr.mxu1 %v11492_v1 }
 0x2df   : > { %9862 = vmatpush3.msra.mxu1 %v11675_v5 }
 0x2e0   : > { %9877 = vmatprep.subr.mxu1 %v11492_v1 }
 0x398   : > { %v559_v31 = vpop.f32.mrf.mxu1 }
 0x399   : > { %v560_v32 = vadd.f32 %v11706_v6, %v559_v31 }
 0x39a   : > { %v9843_v33 = vpop.f32.mrf.mxu1 }
 0x39b   : > { %11112 = vtanh.f32 %v560_v32 }
 0x3a8   : > { %v11113_v34 = vpop.eup %11112 }
 0x3a9   : > { %v568_v36 = vadd.f32 %v11113_v34, %v567_v30 }
 0x3ab   : > { %v570_v37 = vmul.f32 %v11761_v35, %v568_v36 }
 0x3ad   : > { %v11765_v38 = vadd.f32 %v570_v37, %v11659_v3 }
 0x3af   : > { %9853 = vmatmul.mubr.msk.f32.vlgmr.msra.gmra.mxu0 %vm246_vm1, %v11765_v38 }
 0x3b0   : > { %9867 = vmatpush3.msra.mxu0 %v11651_v0  ;;  %9874 = vmatprep.mubr.msk.f32.mxu0 %vm11493_vm0, %v11492_v1 }
 0x3b1   : > { %9868 = vmatprep.subr.mxu0 %v11492_v1 }
 0x3b2   : > { %9869 = vmatpush3.msra.mxu0 %v11655_v2 }
 0x3b3   : > { %9870 = vmatprep.subr.mxu0 %v11492_v1 }
 0x3b4   : > { %9871 = vmatpush3.msra.mxu0 %v11669_v4 }
 0x3b5   : > { %9872 = vmatprep.subr.mxu0 %v11492_v1 }
 0x3b6   : > { %9873 = vmatpush3.msra.mxu0 %v11675_v5 }
 0x3b7   : > { %9888 = vmatprep.subr.mxu0 %v11492_v1 }
 0x46f   : > { %v641_v39 = vpop.f32.mrf.mxu0 }
 0x470   : > { %v642_v40 = vadd.f32 %v11706_v6, %v641_v39 }
 0x471   : > { %v9854_v41 = vpop.f32.mrf.mxu0 }
 0x472   : > { %11114 = vtanh.f32 %v642_v40 }
 0x47f   : > { %v11115_v42 = vpop.eup %11114 }
 0x480   : > { %v646_v43 = vmul.f32 %v11115_v42, %v11713_v10 }
 0x482   : > { %v647_v44 = vadd.f32 %v646_v43, %v11765_v38 }
 0x484   : > { %9864 = vmatmul.mubr.msk.f32.vlgmr.msra.gmra.mxu1 %vm246_vm1, %v647_v44 }
 0x485   : > { %9878 = vmatpush3.msra.mxu1 %v11651_v0  ;;  %9885 = vmatprep.mubr.msk.f32.mxu1 %vm11493_vm0, %v11492_v1 }
 0x486   : > { %9879 = vmatprep.subr.mxu1 %v11492_v1 }
 0x487   : > { %9880 = vmatpush3.msra.mxu1 %v11655_v2 }
 0x488   : > { %9881 = vmatprep.subr.mxu1 %v11492_v1 }
 0x489   : > { %9882 = vmatpush3.msra.mxu1 %v11669_v4 }
 0x48a   : > { %9883 = vmatprep.subr.mxu1 %v11492_v1 }
 0x48b   : > { %9884 = vmatpush3.msra.mxu1 %v11675_v5 }
 0x48c   : > { %9899 = vmatprep.subr.mxu1 %v11492_v1 }
 0x544   : > { %v717_v45 = vpop.f32.mrf.mxu1 }
 0x545   : > { %v718_v46 = vadd.f32 %v11706_v6, %v717_v45 }
 0x546   : > { %v9865_v47 = vpop.f32.mrf.mxu1 }
 0x547   : > { %11116 = vtanh.f32 %v718_v46 }
 0x554   : > { %v11117_v48 = vpop.eup %11116 }
 0x555   : > { %v722_v49 = vmul.f32 %v11117_v48, %v11713_v10  ;;  %v874_v54 = vmul.f32 2.0, %v11117_v48 }
 0x557   : > { %v723_v50 = vadd.f32 %v722_v49, %v11765_v38  ;;  %v875_v56 = vadd.f32 %v11115_v42, %v874_v54 }
 0x559   : > { %9875 = vmatmul.mubr.msk.f32.vlgmr.msra.gmra.mxu0 %vm246_vm1, %v723_v50 }
 0x55a   : > { %9889 = vmatpush3.msra.mxu0 %v11651_v0  ;;  %9896 = vmatprep.mubr.msk.f32.mxu0 %vm11493_vm0, %v11492_v1 }
 0x55b   : > { %9890 = vmatprep.subr.mxu0 %v11492_v1 }
 0x55c   : > { %9891 = vmatpush3.msra.mxu0 %v11655_v2 }
 0x55d   : > { %9892 = vmatprep.subr.mxu0 %v11492_v1 }
 0x55e   : > { %9893 = vmatpush3.msra.mxu0 %v11669_v4 }
 0x55f   : > { %9894 = vmatprep.subr.mxu0 %v11492_v1 }
 0x560   : > { %9895 = vmatpush3.msra.mxu0 %v11675_v5 }
 0x561   : > { %9910 = vmatprep.subr.mxu0 %v11492_v1 }
 0x619   : > { %v793_v51 = vpop.f32.mrf.mxu0 }
 0x61a   : > { %v794_v52 = vadd.f32 %v11706_v6, %v793_v51 }
 0x61b   : > { %v9876_v53 = vpop.f32.mrf.mxu0 }
 0x61c   : > { %11118 = vtanh.f32 %v794_v52 }
 0x629   : > { %v11119_v55 = vpop.eup %11118 }
 0x62a   : > { %v876_v57 = vmul.f32 2.0, %v11119_v55  ;;  %v798_v58 = vmul.f32 %v11119_v55, %v11744_v24 }
 0x62c   : > { %v799_v59 = vadd.f32 %v798_v58, %v11765_v38  ;;  %v877_v60 = vadd.f32 %v876_v57, %v875_v56 }
 0x62e   : > { %9886 = vmatmul.mubr.msk.f32.vlgmr.msra.gmra.mxu1 %vm246_vm1, %v799_v59 }
 0x62f   : > { %9900 = vmatpush3.msra.mxu1 %v11651_v0  ;;  %9907 = vmatprep.mubr.msk.f32.mxu1 %vm11493_vm0, %v11492_v1 }
 0x630   : > { %9901 = vmatprep.subr.mxu1 %v11492_v1 }
 0x631   : > { %9902 = vmatpush3.msra.mxu1 %v11655_v2 }
 0x632   : > { %9903 = vmatprep.subr.mxu1 %v11492_v1 }
 0x633   : > { %9904 = vmatpush3.msra.mxu1 %v11669_v4 }
 0x634   : > { %9905 = vmatprep.subr.mxu1 %v11492_v1 }
 0x635   : > { %9906 = vmatpush3.msra.mxu1 %v11675_v5 }
 0x636   : > { %9921 = vmatprep.subr.mxu1 %v11492_v1 }
 0x6ee   : > { %v869_v61 = vpop.f32.mrf.mxu1 }
 0x6ef   : > { %v870_v62 = vadd.f32 %v11706_v6, %v869_v61 }
 0x6f0   : > { %v9887_v63 = vpop.f32.mrf.mxu1 }
 0x6f1   : > { %11120 = vtanh.f32 %v870_v62 }
 0x6fe   : > { %v11121_v3 = vpop.eup %11120 }
 0x6ff   : > { %v878_v7 = vadd.f32 %v11121_v3, %v877_v60 }
 0x701   : > { %v879_v8 = vmul.f32 %v878_v7, %v11761_v35 }
 0x703   : > { %v11824_v9 = vadd.f32 %v879_v8, %v11765_v38 }
 0x705   : > { %9897 = vmatmul.mubr.msk.f32.vlgmr.msra.gmra.mxu0 %vm246_vm1, %v11824_v9 }
 0x706   : > { %9911 = vmatpush3.msra.mxu0 %v11651_v0  ;;  %9918 = vmatprep.mubr.msk.f32.mxu0 %vm11493_vm0, %v11492_v1 }
 0x707   : > { %9912 = vmatprep.subr.mxu0 %v11492_v1 }
 0x708   : > { %9913 = vmatpush3.msra.mxu0 %v11655_v2 }
 0x709   : > { %9914 = vmatprep.subr.mxu0 %v11492_v1 }
 0x70a   : > { %9915 = vmatpush3.msra.mxu0 %v11669_v4 }
 0x70b   : > { %9916 = vmatprep.subr.mxu0 %v11492_v1 }
 0x70c   : > { %9917 = vmatpush3.msra.mxu0 %v11675_v5 }
 0x70d   : > { %9932 = vmatprep.subr.mxu0 %v11492_v1 }
 0x7c5   : > { %v950_v11 = vpop.f32.mrf.mxu0 }
 0x7c6   : > { %v951_v12 = vadd.f32 %v11706_v6, %v950_v11 }
 0x7c7   : > { %v9898_v13 = vpop.f32.mrf.mxu0 }
 0x7c8   : > { %11122 = vtanh.f32 %v951_v12 }
 0x7d5   : > { %v11123_v14 = vpop.eup %11122 }
 0x7d6   : > { %v955_v15 = vmul.f32 %v11123_v14, %v11713_v10 }
 0x7d8   : > { %v956_v16 = vadd.f32 %v955_v15, %v11824_v9 }
 0x7da   : > { %9908 = vmatmul.mubr.msk.f32.vlgmr.msra.gmra.mxu1 %vm246_vm1, %v956_v16 }
 0x7db   : > { %9922 = vmatpush3.msra.mxu1 %v11651_v0  ;;  %9929 = vmatprep.mubr.msk.f32.mxu1 %vm11493_vm0, %v11492_v1 }
 0x7dc   : > { %9923 = vmatprep.subr.mxu1 %v11492_v1 }
 0x7dd   : > { %9924 = vmatpush3.msra.mxu1 %v11655_v2 }
 0x7de   : > { %9925 = vmatprep.subr.mxu1 %v11492_v1 }
 0x7df   : > { %9926 = vmatpush3.msra.mxu1 %v11669_v4 }
 0x7e0   : > { %9927 = vmatprep.subr.mxu1 %v11492_v1 }
 0x7e1   : > { %9928 = vmatpush3.msra.mxu1 %v11675_v5 }
 0x7e2   : > { %9943 = vmatprep.subr.mxu1 %v11492_v1 }
 0x89a   : > { %v1026_v17 = vpop.f32.mrf.mxu1 }
 0x89b   : > { %v1027_v18 = vadd.f32 %v11706_v6, %v1026_v17 }
 0x89c   : > { %v9909_v19 = vpop.f32.mrf.mxu1 }
 0x89d   : > { %11124 = vtanh.f32 %v1027_v18 }
 0x8aa   : > { %v11125_v20 = vpop.eup %11124 }
 0x8ab   : > { %v1031_v21 = vmul.f32 %v11125_v20, %v11713_v10  ;;  %v1183_v27 = vmul.f32 2.0, %v11125_v20 }
 0x8ad   : > { %v1032_v22 = vadd.f32 %v1031_v21, %v11824_v9  ;;  %v1184_v29 = vadd.f32 %v11123_v14, %v1183_v27  ;;  %v11967_v14 = vstv %s1505_s7 }
 0x8af   : > { %9919 = vmatmul.mubr.msk.f32.vlgmr.msra.gmra.mxu0 %vm246_vm1, %v1032_v22 }
 0x8b0   : > { %9933 = vmatpush3.msra.mxu0 %v11651_v0  ;;  %9940 = vmatprep.mubr.msk.f32.mxu0 %vm11493_vm0, %v11492_v1 }
 0x8b1   : > { %9934 = vmatprep.subr.mxu0 %v11492_v1 }
 0x8b2   : > { %9935 = vmatpush3.msra.mxu0 %v11655_v2 }
 0x8b3   : > { %9936 = vmatprep.subr.mxu0 %v11492_v1 }
 0x8b4   : > { %9937 = vmatpush3.msra.mxu0 %v11669_v4 }
 0x8b5   : > { %9938 = vmatprep.subr.mxu0 %v11492_v1 }
 0x8b6   : > { %9939 = vmatpush3.msra.mxu0 %v11675_v5 }
 0x8b7   : > { %9954 = vmatprep.subr.mxu0 %v11492_v1 }
 0x96f   : > { %v1102_v23 = vpop.f32.mrf.mxu0 }
 0x970   : > { %v1103_v25 = vadd.f32 %v11706_v6, %v1102_v23 }
 0x971   : > { %v9920_v26 = vpop.f32.mrf.mxu0 }
 0x972   : > { %11126 = vtanh.f32 %v1103_v25 }
 0x97f   : > { %v11127_v28 = vpop.eup %11126 }
 0x980   : > { %v1185_v30 = vmul.f32 2.0, %v11127_v28  ;;  %v1107_v31 = vmul.f32 %v11127_v28, %v11744_v24 }
 0x982   : > { %v1108_v32 = vadd.f32 %v1107_v31, %v11824_v9  ;;  %v1186_v33 = vadd.f32 %v1185_v30, %v1184_v29  ;;  %v11998_v29 = vstv %s11964_s29 }
 0x984   : > { %9930 = vmatmul.mubr.msk.f32.vlgmr.msra.gmra.mxu1 %vm246_vm1, %v1108_v32 }
 0x985   : > { %9944 = vmatpush3.msra.mxu1 %v11651_v0  ;;  %9951 = vmatprep.mubr.msk.f32.mxu1 %vm11493_vm0, %v11492_v1 }
 0x986   : > { %9945 = vmatprep.subr.mxu1 %v11492_v1 }
 0x987   : > { %9946 = vmatpush3.msra.mxu1 %v11655_v2 }
 0x988   : > { %9947 = vmatprep.subr.mxu1 %v11492_v1 }
 0x989   : > { %9948 = vmatpush3.msra.mxu1 %v11669_v4 }
 0x98a   : > { %9949 = vmatprep.subr.mxu1 %v11492_v1 }
 0x98b   : > { %9950 = vmatpush3.msra.mxu1 %v11675_v5 }
 0x98c   : > { %9965 = vmatprep.subr.mxu1 %v11492_v1 }
 0xa44   : > { %v1178_v34 = vpop.f32.mrf.mxu1 }
 0xa45   : > { %v1179_v36 = vadd.f32 %v11706_v6, %v1178_v34 }
 0xa46   : > { %v9931_v37 = vpop.f32.mrf.mxu1 }
 0xa47   : > { %11128 = vtanh.f32 %v1179_v36 }
 0xa54   : > { %v11129_v38 = vpop.eup %11128 }
 0xa55   : > { %v1187_v39 = vadd.f32 %v11129_v38, %v1186_v33 }
 0xa57   : > { %v1188_v40 = vmul.f32 %v1187_v39, %v11761_v35 }
 0xa59   : > { %v11883_v41 = vadd.f32 %v1188_v40, %v11824_v9 }
 0xa5b   : > { %9941 = vmatmul.mubr.msk.f32.vlgmr.msra.gmra.mxu0 %vm246_vm1, %v11883_v41 }
 0xa5c   : > { %9955 = vmatpush3.msra.mxu0 %v11651_v0  ;;  %9962 = vmatprep.mubr.msk.f32.mxu0 %vm11493_vm0, %v11492_v1 }
 0xa5d   : > { %9956 = vmatprep.subr.mxu0 %v11492_v1 }
 0xa5e   : > { %9957 = vmatpush3.msra.mxu0 %v11655_v2 }
 0xa5f   : > { %9958 = vmatprep.subr.mxu0 %v11492_v1 }
 0xa60   : > { %9959 = vmatpush3.msra.mxu0 %v11669_v4 }
 0xa61   : > { %9960 = vmatprep.subr.mxu0 %v11492_v1 }
 0xa62   : > { %9961 = vmatpush3.msra.mxu0 %v11675_v5 }
 0xa63   : > { %9976 = vmatprep.subr.mxu0 %v11492_v1 }
 0xb1b   : > { %v1259_v42 = vpop.f32.mrf.mxu0 }
 0xb1c   : > { %v1260_v43 = vadd.f32 %v11706_v6, %v1259_v42 }
 0xb1d   : > { %v9942_v44 = vpop.f32.mrf.mxu0 }
 0xb1e   : > { %11130 = vtanh.f32 %v1260_v43 }
 0xb2b   : > { %v11131_v45 = vpop.eup %11130 }
 0xb2c   : > { %v1264_v46 = vmul.f32 %v11131_v45, %v11713_v10 }
 0xb2e   : > { %v1265_v47 = vadd.f32 %v1264_v46, %v11883_v41 }
 0xb30   : > { %9952 = vmatmul.mubr.msk.f32.vlgmr.msra.gmra.mxu1 %vm246_vm1, %v1265_v47 }
 0xb31   : > { %9966 = vmatpush3.msra.mxu1 %v11651_v0  ;;  %9973 = vmatprep.mubr.msk.f32.mxu1 %vm11493_vm0, %v11492_v1 }
 0xb32   : > { %9967 = vmatprep.subr.mxu1 %v11492_v1 }
 0xb33   : > { %9968 = vmatpush3.msra.mxu1 %v11655_v2 }
 0xb34   : > { %9969 = vmatprep.subr.mxu1 %v11492_v1 }
 0xb35   : > { %9970 = vmatpush3.msra.mxu1 %v11669_v4 }
 0xb36   : > { %9971 = vmatprep.subr.mxu1 %v11492_v1 }
 0xb37   : > { %9972 = vmatpush3.msra.mxu1 %v11675_v5 }
 0xb38   : > { %9987 = vmatprep.subr.mxu1 %v11492_v1 }
 0xbf0   : > { %v1335_v48 = vpop.f32.mrf.mxu1 }
 0xbf1   : > { %v1336_v49 = vadd.f32 %v11706_v6, %v1335_v48 }
 0xbf2   : > { %v9953_v50 = vpop.f32.mrf.mxu1 }
 0xbf3   : > { %11132 = vtanh.f32 %v1336_v49 }
 0xc00   : > { %v11133_v51 = vpop.eup %11132 }
 0xc01   : > { %v1340_v52 = vmul.f32 %v11133_v51, %v11713_v10  ;;  %v1492_v56 = vmul.f32 2.0, %v11133_v51 }
 0xc03   : > { %v1341_v53 = vadd.f32 %v1340_v52, %v11883_v41  ;;  %v1493_v58 = vadd.f32 %v11131_v45, %v1492_v56 }
 0xc05   : > { %9963 = vmatmul.mubr.msk.f32.vlgmr.msra.gmra.mxu0 %vm246_vm1, %v1341_v53 }
 0xc06   : > { %9977 = vmatpush3.msra.mxu0 %v11651_v0  ;;  %9984 = vmatprep.mubr.msk.f32.mxu0 %vm11493_vm0, %v11492_v1 }
 0xc07   : > { %9978 = vmatprep.subr.mxu0 %v11492_v1 }
 0xc08   : > { %9979 = vmatpush3.msra.mxu0 %v11655_v2 }
 0xc09   : > { %9980 = vmatprep.subr.mxu0 %v11492_v1 }
 0xc0a   : > { %9981 = vmatpush3.msra.mxu0 %v11669_v4 }
 0xc0b   : > { %9982 = vmatprep.subr.mxu0 %v11492_v1 }
 0xc0c   : > { %9983 = vmatpush3.msra.mxu0 %v11675_v5 }
 0xc0d   : > { %9998 = vmatprep.subr.mxu0 %v11492_v1 }
 0xcc5   : > { %v1411_v10 = vpop.f32.mrf.mxu0 }
 0xcc6   : > { %v1412_v54 = vadd.f32 %v11706_v6, %v1411_v10 }
 0xcc7   : > { %v9964_v55 = vpop.f32.mrf.mxu0 }
 0xcc8   : > { %11134 = vtanh.f32 %v1412_v54 }
 0xcd5   : > { %v11135_v57 = vpop.eup %11134 }
 0xcd6   : > { %v1494_v59 = vmul.f32 2.0, %v11135_v57  ;;  %v1416_v60 = vmul.f32 %v11135_v57, %v11744_v24 }
 0xcd8   : > { %v1417_v61 = vadd.f32 %v1416_v60, %v11883_v41  ;;  %v1495_v62 = vadd.f32 %v1494_v59, %v1493_v58 }
 0xcda   : > { %9974 = vmatmul.mubr.msk.f32.vlgmr.msra.gmra.mxu1 %vm246_vm1, %v1417_v61 }
 0xcdb   : > { %9988 = vmatpush3.msra.mxu1 %v11651_v0  ;;  %9995 = vmatprep.mubr.msk.f32.mxu1 %vm11493_vm0, %v11492_v1 }
 0xcdc   : > { %9989 = vmatprep.subr.mxu1 %v11492_v1 }
 0xcdd   : > { %9990 = vmatpush3.msra.mxu1 %v11655_v2 }
 0xcde   : > { %9991 = vmatprep.subr.mxu1 %v11492_v1 }
 0xcdf   : > { %9992 = vmatpush3.msra.mxu1 %v11669_v4 }
 0xce0   : > { %9993 = vmatprep.subr.mxu1 %v11492_v1 }
 0xce1   : > { %9994 = vmatpush3.msra.mxu1 %v11675_v5 }
 0xce2   : > { %10009 = vmatprep.subr.mxu1 %v11492_v1 }
 0xd9a   : > { %v1487_v24 = vpop.f32.mrf.mxu1 }
 0xd9b   : > { %v1488_v63 = vadd.f32 %v11706_v6, %v1487_v24 }
 0xd9c   : > { %v9975_v3 = vpop.f32.mrf.mxu1 }
 0xd9d   : > { %11136 = vtanh.f32 %v1488_v63 }
 0xdaa   : > { %v11137_v7 = vpop.eup %11136 }
 0xdab   : > { %v1496_v8 = vadd.f32 %v11137_v7, %v1495_v62 }
 0xdad   : > { %v1497_v9 = vmul.f32 %v1496_v8, %v11761_v35 }
 0xdaf   : > { %v11942_v11 = vadd.f32 %v1497_v9, %v11883_v41  ;;  %v12015_v41 = vstv %s1506_s8  ;;  %s12747_s8 = sld [smem:[#allocation2 + $0x5]] }
 0xdb1   : > { %9121 = vst.msk [vmem:[%s11662_s21 + $0x8] sm:$0xff] %vm246_vm1, %v11942_v11  ;;  %9985 = vmatmul.mubr.msk.f32.vlgmr.msra.gmra.mxu0 %vm246_vm1, %v11942_v11 }
 0xdb2   : > { %9999 = vmatpush3.msra.mxu0 %v11651_v0  ;;  %10006 = vmatprep.mubr.msk.f32.mxu0 %vm11493_vm0, %v11492_v1 }
 0xdb3   : > { %10000 = vmatprep.subr.mxu0 %v11492_v1 }
 0xdb4   : > { %10001 = vmatpush3.msra.mxu0 %v11655_v2 }
 0xdb5   : > { %10002 = vmatprep.subr.mxu0 %v11492_v1  ;;  %s5244_s5 = ssub.f32 %s12747_s8, %s12480_s11 }
 0xdb6   : > { %10003 = vmatpush3.msra.mxu0 %v11669_v4 }
 0xdb7   : > { %10004 = vmatprep.subr.mxu0 %v11492_v1  ;;  %s12752_s23 = smul.f32 0.25, %s5244_s5 }
 0xdb8   : > { %10005 = vmatpush3.msra.mxu0 %v11675_v5 }
 0xdb9   : > { %10020 = vmatprep.subr.mxu0 %v11492_v1  ;;  %s5246_s25 = smul.f32 0.5, %s12752_s23 }
 0xdba   : > { %s5247_s30 = smul.f32 0.16666667, %s12752_s23 }
 0xe71   : > { %v1576_v35 = vpop.f32.mrf.mxu0 }
 0xe72   : > { %v1577_v12 = vadd.f32 %v11706_v6, %v1576_v35 }
 0xe73   : > { %v9986_v13 = vpop.f32.mrf.mxu0 }
 0xe74   : > { %11138 = vtanh.f32 %v1577_v12 }
 0xe81   : > { %v11139_v15 = vpop.eup %11138 }
 0xe82   : > { %v1582_v16 = vmul.f32 %v11139_v15, %v11967_v14 }
 0xe84   : > { %v1583_v17 = vadd.f32 %v1582_v16, %v11942_v11 }
 0xe86   : > { %9996 = vmatmul.mubr.msk.f32.vlgmr.msra.gmra.mxu1 %vm246_vm1, %v1583_v17 }
 0xe87   : > { %10010 = vmatpush3.msra.mxu1 %v11651_v0  ;;  %10017 = vmatprep.mubr.msk.f32.mxu1 %vm11493_vm0, %v11492_v1 }
 0xe88   : > { %10011 = vmatprep.subr.mxu1 %v11492_v1 }
 0xe89   : > { %10012 = vmatpush3.msra.mxu1 %v11655_v2 }
 0xe8a   : > { %10013 = vmatprep.subr.mxu1 %v11492_v1 }
 0xe8b   : > { %10014 = vmatpush3.msra.mxu1 %v11669_v4 }
 0xe8c   : > { %10015 = vmatprep.subr.mxu1 %v11492_v1 }
 0xe8d   : > { %10016 = vmatpush3.msra.mxu1 %v11675_v5 }
 0xe8e   : > { %10031 = vmatprep.subr.mxu1 %v11492_v1 }
 0xf46   : > { %v1653_v18 = vpop.f32.mrf.mxu1 }
 0xf47   : > { %v1654_v19 = vadd.f32 %v11706_v6, %v1653_v18 }
 0xf48   : > { %v9997_v20 = vpop.f32.mrf.mxu1 }
 0xf49   : > { %11140 = vtanh.f32 %v1654_v19 }
 0xf56   : > { %v11141_v21 = vpop.eup %11140 }
 0xf57   : > { %v1658_v22 = vmul.f32 %v11141_v21, %v11967_v14  ;;  %v1811_v28 = vmul.f32 2.0, %v11141_v21 }
 0xf59   : > { %v1659_v23 = vadd.f32 %v1658_v22, %v11942_v11  ;;  %v1812_v31 = vadd.f32 %v11139_v15, %v1811_v28 }
 0xf5b   : > { %10007 = vmatmul.mubr.msk.f32.vlgmr.msra.gmra.mxu0 %vm246_vm1, %v1659_v23 }
 0xf5c   : > { %10021 = vmatpush3.msra.mxu0 %v11651_v0  ;;  %10028 = vmatprep.mubr.msk.f32.mxu0 %vm11493_vm0, %v11492_v1 }
 0xf5d   : > { %10022 = vmatprep.subr.mxu0 %v11492_v1 }
 0xf5e   : > { %10023 = vmatpush3.msra.mxu0 %v11655_v2 }
 0xf5f   : > { %10024 = vmatprep.subr.mxu0 %v11492_v1 }
 0xf60   : > { %10025 = vmatpush3.msra.mxu0 %v11669_v4 }
 0xf61   : > { %10026 = vmatprep.subr.mxu0 %v11492_v1 }
 0xf62   : > { %10027 = vmatpush3.msra.mxu0 %v11675_v5 }
 0xf63   : > { %10042 = vmatprep.subr.mxu0 %v11492_v1 }
0x101b   : > { %v1729_v25 = vpop.f32.mrf.mxu0 }
0x101c   : > { %v1730_v26 = vadd.f32 %v11706_v6, %v1729_v25 }
0x101d   : > { %v10008_v27 = vpop.f32.mrf.mxu0 }
0x101e   : > { %11142 = vtanh.f32 %v1730_v26  ;;  %v12110_v26 = vld [vmem:[#allocation7 + $0x18] sm:$0xff]  ;;  %v12120_v27 = vld [vmem:[#allocation7 + $0x8] sm:$0xff] }
0x102b   : > { %v11143_v30 = vpop.eup %11142 }
0x102c   : > { %v1813_v32 = vmul.f32 2.0, %v11143_v30  ;;  %v1735_v33 = vmul.f32 %v11143_v30, %v11998_v29 }
0x102e   : > { %v1736_v34 = vadd.f32 %v1735_v33, %v11942_v11  ;;  %v1814_v36 = vadd.f32 %v1813_v32, %v1812_v31 }
0x1030   : > { %10018 = vmatmul.mubr.msk.f32.vlgmr.msra.gmra.mxu1 %vm246_vm1, %v1736_v34 }
0x1031   : > { %10032 = vmatpush3.msra.mxu1 %v11651_v0  ;;  %10039 = vmatprep.mubr.msk.f32.mxu1 %vm11493_vm0, %v11492_v1 }
0x1032   : > { %10033 = vmatprep.subr.mxu1 %v11492_v1 }
0x1033   : > { %10034 = vmatpush3.msra.mxu1 %v11655_v2 }
0x1034   : > { %10035 = vmatprep.subr.mxu1 %v11492_v1 }
0x1035   : > { %10036 = vmatpush3.msra.mxu1 %v11669_v4 }
0x1036   : > { %10037 = vmatprep.subr.mxu1 %v11492_v1 }
0x1037   : > { %10038 = vmatpush3.msra.mxu1 %v11675_v5 }
0x1038   : > { %10053 = vmatprep.subr.mxu1 %v11492_v1 }
0x10f0   : > { %v1806_v37 = vpop.f32.mrf.mxu1 }
0x10f1   : > { %v1807_v38 = vadd.f32 %v11706_v6, %v1806_v37 }
0x10f2   : > { %v10019_v39 = vpop.f32.mrf.mxu1 }
0x10f3   : > { %11144 = vtanh.f32 %v1807_v38 }
0x1100   : > { %v11145_v40 = vpop.eup %11144 }
0x1101   : > { %v1815_v42 = vadd.f32 %v11145_v40, %v1814_v36 }
0x1103   : > { %v1817_v43 = vmul.f32 %v12015_v41, %v1815_v42 }
0x1105   : > { %v12019_v44 = vadd.f32 %v1817_v43, %v11942_v11 }
0x1107   : > { %10029 = vmatmul.mubr.msk.f32.vlgmr.msra.gmra.mxu0 %vm246_vm1, %v12019_v44 }
0x1108   : > { %10043 = vmatpush3.msra.mxu0 %v11651_v0  ;;  %10050 = vmatprep.mubr.msk.f32.mxu0 %vm11493_vm0, %v11492_v1 }
0x1109   : > { %10044 = vmatprep.subr.mxu0 %v11492_v1 }
0x110a   : > { %10045 = vmatpush3.msra.mxu0 %v11655_v2 }
0x110b   : > { %10046 = vmatprep.subr.mxu0 %v11492_v1 }
0x110c   : > { %10047 = vmatpush3.msra.mxu0 %v11669_v4 }
0x110d   : > { %10048 = vmatprep.subr.mxu0 %v11492_v1 }
0x110e   : > { %10049 = vmatpush3.msra.mxu0 %v11675_v5 }
0x110f   : > { %10064 = vmatprep.subr.mxu0 %v11492_v1 }
0x11c7   : > { %v1888_v45 = vpop.f32.mrf.mxu0 }
0x11c8   : > { %v1889_v46 = vadd.f32 %v11706_v6, %v1888_v45 }
0x11c9   : > { %v10030_v47 = vpop.f32.mrf.mxu0 }
0x11ca   : > { %11146 = vtanh.f32 %v1889_v46 }
0x11d7   : > { %v11147_v48 = vpop.eup %11146 }
0x11d8   : > { %v1893_v49 = vmul.f32 %v11147_v48, %v11967_v14 }
0x11da   : > { %v1894_v50 = vadd.f32 %v1893_v49, %v12019_v44 }
0x11dc   : > { %10040 = vmatmul.mubr.msk.f32.vlgmr.msra.gmra.mxu1 %vm246_vm1, %v1894_v50 }
0x11dd   : > { %10054 = vmatpush3.msra.mxu1 %v11651_v0  ;;  %10061 = vmatprep.mubr.msk.f32.mxu1 %vm11493_vm0, %v11492_v1 }
0x11de   : > { %10055 = vmatprep.subr.mxu1 %v11492_v1 }
0x11df   : > { %10056 = vmatpush3.msra.mxu1 %v11655_v2 }
0x11e0   : > { %10057 = vmatprep.subr.mxu1 %v11492_v1 }
0x11e1   : > { %10058 = vmatpush3.msra.mxu1 %v11669_v4 }
0x11e2   : > { %10059 = vmatprep.subr.mxu1 %v11492_v1 }
0x11e3   : > { %10060 = vmatpush3.msra.mxu1 %v11675_v5 }
0x11e4   : > { %10075 = vmatprep.subr.mxu1 %v11492_v1 }
0x129c   : > { %v1964_v51 = vpop.f32.mrf.mxu1 }
0x129d   : > { %v1965_v52 = vadd.f32 %v11706_v6, %v1964_v51 }
0x129e   : > { %v10041_v53 = vpop.f32.mrf.mxu1 }
0x129f   : > { %11148 = vtanh.f32 %v1965_v52 }
0x12ac   : > { %v11149_v10 = vpop.eup %11148 }
0x12ad   : > { %v1969_v54 = vmul.f32 %v11149_v10, %v11967_v14  ;;  %v2121_v59 = vmul.f32 2.0, %v11149_v10 }
0x12af   : > { %v1970_v55 = vadd.f32 %v1969_v54, %v12019_v44  ;;  %v2122_v61 = vadd.f32 %v11147_v48, %v2121_v59  ;;  %v12162_v48 = vld [vmem:[%s13525_s3] ss:$0 sm:$0xff] }
0x12b1   : > { %10051 = vmatmul.mubr.msk.f32.vlgmr.msra.gmra.mxu0 %vm246_vm1, %v1970_v55 }
0x12b2   : > { %10065 = vmatpush3.msra.mxu0 %v11651_v0  ;;  %10072 = vmatprep.mubr.msk.f32.mxu0 %vm11493_vm0, %v11492_v1 }
0x12b3   : > { %10066 = vmatprep.subr.mxu0 %v11492_v1 }
0x12b4   : > { %10067 = vmatpush3.msra.mxu0 %v11655_v2 }
0x12b5   : > { %10068 = vmatprep.subr.mxu0 %v11492_v1 }
0x12b6   : > { %10069 = vmatpush3.msra.mxu0 %v11669_v4 }
0x12b7   : > { %10070 = vmatprep.subr.mxu0 %v11492_v1 }
0x12b8   : > { %10071 = vmatpush3.msra.mxu0 %v11675_v5 }
0x12b9   : > { %10086 = vmatprep.subr.mxu0 %v11492_v1 }
0x1371   : > { %v2040_v56 = vpop.f32.mrf.mxu0 }
0x1372   : > { %v2041_v57 = vadd.f32 %v11706_v6, %v2040_v56 }
0x1373   : > { %v10052_v58 = vpop.f32.mrf.mxu0 }
0x1374   : > { %11150 = vtanh.f32 %v2041_v57 }
0x1381   : > { %v11151_v60 = vpop.eup %11150 }
0x1382   : > { %v2123_v62 = vmul.f32 2.0, %v11151_v60  ;;  %v2045_v24 = vmul.f32 %v11151_v60, %v11998_v29 }
0x1384   : > { %v2046_v63 = vadd.f32 %v2045_v24, %v12019_v44  ;;  %v2124_v3 = vadd.f32 %v2123_v62, %v2122_v61 }
0x1386   : > { %10062 = vmatmul.mubr.msk.f32.vlgmr.msra.gmra.mxu1 %vm246_vm1, %v2046_v63 }
0x1387   : > { %10076 = vmatpush3.msra.mxu1 %v11651_v0  ;;  %10083 = vmatprep.mubr.msk.f32.mxu1 %vm11493_vm0, %v11492_v1 }
0x1388   : > { %10077 = vmatprep.subr.mxu1 %v11492_v1 }
0x1389   : > { %10078 = vmatpush3.msra.mxu1 %v11655_v2 }
0x138a   : > { %10079 = vmatprep.subr.mxu1 %v11492_v1 }
0x138b   : > { %10080 = vmatpush3.msra.mxu1 %v11669_v4 }
0x138c   : > { %10081 = vmatprep.subr.mxu1 %v11492_v1 }
0x138d   : > { %10082 = vmatpush3.msra.mxu1 %v11675_v5 }
0x138e   : > { %10097 = vmatprep.subr.mxu1 %v11492_v1 }
0x1446   : > { %v2116_v7 = vpop.f32.mrf.mxu1 }
0x1447   : > { %v2117_v8 = vadd.f32 %v11706_v6, %v2116_v7 }
0x1448   : > { %v10063_v9 = vpop.f32.mrf.mxu1 }
0x1449   : > { %11152 = vtanh.f32 %v2117_v8 }
0x1456   : > { %v11153_v11 = vpop.eup %11152 }
0x1457   : > { %v2125_v35 = vadd.f32 %v11153_v11, %v2124_v3 }
0x1459   : > { %v2126_v12 = vmul.f32 %v2125_v35, %v12015_v41 }
0x145b   : > { %v12078_v13 = vadd.f32 %v2126_v12, %v12019_v44 }
0x145d   : > { %10073 = vmatmul.mubr.msk.f32.vlgmr.msra.gmra.mxu0 %vm246_vm1, %v12078_v13 }
0x145e   : > { %10087 = vmatpush3.msra.mxu0 %v11651_v0  ;;  %10094 = vmatprep.mubr.msk.f32.mxu0 %vm11493_vm0, %v11492_v1 }
0x145f   : > { %10088 = vmatprep.subr.mxu0 %v11492_v1 }
0x1460   : > { %10089 = vmatpush3.msra.mxu0 %v11655_v2 }
0x1461   : > { %10090 = vmatprep.subr.mxu0 %v11492_v1 }
0x1462   : > { %10091 = vmatpush3.msra.mxu0 %v11669_v4 }
0x1463   : > { %10092 = vmatprep.subr.mxu0 %v11492_v1 }
0x1464   : > { %10093 = vmatpush3.msra.mxu0 %v11675_v5 }
0x1465   : > { %10108 = vmatprep.subr.mxu0 %v11492_v1 }
0x151d   : > { %v2197_v15 = vpop.f32.mrf.mxu0 }
0x151e   : > { %v2198_v16 = vadd.f32 %v11706_v6, %v2197_v15 }
0x151f   : > { %v10074_v17 = vpop.f32.mrf.mxu0 }
0x1520   : > { %11154 = vtanh.f32 %v2198_v16 }
0x152d   : > { %v11155_v18 = vpop.eup %11154 }
0x152e   : > { %v2202_v19 = vmul.f32 %v11155_v18, %v11967_v14 }
0x1530   : > { %v2203_v20 = vadd.f32 %v2202_v19, %v12078_v13 }
0x1532   : > { %10084 = vmatmul.mubr.msk.f32.vlgmr.msra.gmra.mxu1 %vm246_vm1, %v2203_v20 }
0x1533   : > { %10098 = vmatpush3.msra.mxu1 %v11651_v0  ;;  %10105 = vmatprep.mubr.msk.f32.mxu1 %vm11493_vm0, %v11492_v1 }
0x1534   : > { %10099 = vmatprep.subr.mxu1 %v11492_v1 }
0x1535   : > { %10100 = vmatpush3.msra.mxu1 %v11655_v2 }
0x1536   : > { %10101 = vmatprep.subr.mxu1 %v11492_v1 }
0x1537   : > { %10102 = vmatpush3.msra.mxu1 %v11669_v4  ;;  %v12116_v4 = vld [vmem:[#allocation7 + $0x10] sm:$0xff] }
0x1538   : > { %10103 = vmatprep.subr.mxu1 %v11492_v1 }
0x1539   : > { %10104 = vmatpush3.msra.mxu1 %v11675_v5 }
0x153a   : > { %10119 = vmatprep.subr.mxu1 %v11492_v1 }
0x15f2   : > { %v2273_v21 = vpop.f32.mrf.mxu1 }
0x15f3   : > { %v2274_v0 = vadd.f32 %v11706_v6, %v2273_v21 }
0x15f4   : > { %v10085_v22 = vpop.f32.mrf.mxu1 }
0x15f5   : > { %11156 = vtanh.f32 %v2274_v0 }
0x1602   : > { %v11157_v23 = vpop.eup %11156 }
0x1603   : > { %v2278_v25 = vmul.f32 %v11157_v23, %v11967_v14  ;;  %v2430_v32 = vmul.f32 2.0, %v11157_v23 }
0x1605   : > { %v2279_v2 = vadd.f32 %v2278_v25, %v12078_v13  ;;  %v2431_v34 = vadd.f32 %v11155_v18, %v2430_v32  ;;  %v12234_v18 = vstv %s2752_s9 }
0x1607   : > { %10095 = vmatmul.mubr.msk.f32.vlgmr.msra.gmra.mxu0 %vm246_vm1, %v2279_v2 }
0x1608   : > { %10109 = vmatpush3.msra.mxu0 %v12110_v26  ;;  %10116 = vmatprep.mubr.msk.f32.mxu0 %vm11493_vm0, %v11492_v1 }
0x1609   : > { %10110 = vmatprep.subr.mxu0 %v11492_v1 }
0x160a   : > { %10111 = vmatpush3.msra.mxu0 %v12116_v4 }
0x160b   : > { %10112 = vmatprep.subr.mxu0 %v11492_v1 }
0x160c   : > { %10113 = vmatpush3.msra.mxu0 %v12120_v27 }
0x160d   : > { %10114 = vmatprep.subr.mxu0 %v11492_v1 }
0x160e   : > { %10115 = vmatpush3.msra.mxu0 %v11675_v5  ;;  %v12138_v5 = vld [vmem:[#allocation7] sm:$0xff] }
0x160f   : > { %10130 = vmatprep.subr.mxu0 %v11492_v1 }
0x16c7   : > { %v2349_v28 = vpop.f32.mrf.mxu0 }
0x16c8   : > { %v2350_v30 = vadd.f32 %v11706_v6, %v2349_v28 }
0x16c9   : > { %v10096_v31 = vpop.f32.mrf.mxu0 }
0x16ca   : > { %11158 = vtanh.f32 %v2350_v30 }
0x16d7   : > { %v11159_v33 = vpop.eup %11158 }
0x16d8   : > { %v2432_v36 = vmul.f32 2.0, %v11159_v33  ;;  %v2354_v37 = vmul.f32 %v11159_v33, %v11998_v29 }
0x16da   : > { %v2355_v38 = vadd.f32 %v2354_v37, %v12078_v13  ;;  %v2433_v39 = vadd.f32 %v2432_v36, %v2431_v34  ;;  %v12265_v34 = vstv %s12231_s6  ;;  %s13001_s6 = sld [smem:[#allocation2 + $0x6]] }
0x16dc   : > { %10106 = vmatmul.mubr.msk.f32.vlgmr.msra.gmra.mxu1 %vm246_vm1, %v2355_v38 }
0x16dd   : > { %10120 = vmatpush3.msra.mxu1 %v12110_v26  ;;  %10127 = vmatprep.mubr.msk.f32.mxu1 %vm11493_vm0, %v11492_v1 }
0x16de   : > { %10121 = vmatprep.subr.mxu1 %v11492_v1 }
0x16df   : > { %10122 = vmatpush3.msra.mxu1 %v12116_v4 }
0x16e0   : > { %10123 = vmatprep.subr.mxu1 %v11492_v1  ;;  %s6491_s9 = ssub.f32 %s13001_s6, %s12747_s8 }
0x16e1   : > { %10124 = vmatpush3.msra.mxu1 %v12120_v27 }
0x16e2   : > { %10125 = vmatprep.subr.mxu1 %v11492_v1 }
0x16e3   : > { %10126 = vmatpush3.msra.mxu1 %v12138_v5 }
0x16e4   : > { %10141 = vmatprep.subr.mxu1 %v11492_v1 }
0x179c   : > { %v2425_v40 = vpop.f32.mrf.mxu1 }
0x179d   : > { %v2426_v42 = vadd.f32 %v11706_v6, %v2425_v40 }
0x179e   : > { %v10107_v43 = vpop.f32.mrf.mxu1 }
0x179f   : > { %11160 = vtanh.f32 %v2426_v42 }
0x17ac   : > { %v11161_v44 = vpop.eup %11160 }
0x17ad   : > { %v2434_v45 = vadd.f32 %v11161_v44, %v2433_v39 }
0x17af   : > { %v2435_v46 = vmul.f32 %v2434_v45, %v12015_v41 }
0x17b1   : > { %v12145_v47 = vadd.f32 %v2435_v46, %v12078_v13 }
0x17b3   : > { %10117 = vmatmul.mubr.msk.f32.vlgmr.msra.gmra.mxu0 %vm246_vm1, %v12145_v47 }
0x17b4   : > { %10131 = vmatpush3.msra.mxu0 %v12110_v26  ;;  %10138 = vmatprep.mubr.msk.f32.mxu0 %vm11493_vm0, %v11492_v1 }
0x17b5   : > { %10132 = vmatprep.subr.mxu0 %v11492_v1 }
0x17b6   : > { %10133 = vmatpush3.msra.mxu0 %v12116_v4 }
0x17b7   : > { %10134 = vmatprep.subr.mxu0 %v11492_v1 }
0x17b8   : > { %10135 = vmatpush3.msra.mxu0 %v12120_v27 }
0x17b9   : > { %10136 = vmatprep.subr.mxu0 %v11492_v1 }
0x17ba   : > { %10137 = vmatpush3.msra.mxu0 %v12138_v5 }
0x17bb   : > { %10152 = vmatprep.subr.mxu0 %v11492_v1 }
0x1873   : > { %v2506_v6 = vpop.f32.mrf.mxu0 }
0x1874   : > { %v2507_v49 = vadd.f32 %v12162_v48, %v2506_v6 }
0x1875   : > { %v10118_v50 = vpop.f32.mrf.mxu0 }
0x1876   : > { %11162 = vtanh.f32 %v2507_v49 }
0x1883   : > { %v11163_v51 = vpop.eup %11162 }
0x1884   : > { %v2511_v52 = vmul.f32 %v11163_v51, %v11967_v14 }
0x1886   : > { %v2512_v53 = vadd.f32 %v2511_v52, %v12145_v47 }
0x1888   : > { %10128 = vmatmul.mubr.msk.f32.vlgmr.msra.gmra.mxu1 %vm246_vm1, %v2512_v53 }
0x1889   : > { %10142 = vmatpush3.msra.mxu1 %v12110_v26  ;;  %10149 = vmatprep.mubr.msk.f32.mxu1 %vm11493_vm0, %v11492_v1 }
0x188a   : > { %10143 = vmatprep.subr.mxu1 %v11492_v1 }
0x188b   : > { %10144 = vmatpush3.msra.mxu1 %v12116_v4 }
0x188c   : > { %10145 = vmatprep.subr.mxu1 %v11492_v1 }
0x188d   : > { %10146 = vmatpush3.msra.mxu1 %v12120_v27 }
0x188e   : > { %10147 = vmatprep.subr.mxu1 %v11492_v1 }
0x188f   : > { %10148 = vmatpush3.msra.mxu1 %v12138_v5 }
0x1890   : > { %10163 = vmatprep.subr.mxu1 %v11492_v1 }
0x1948   : > { %v2582_v10 = vpop.f32.mrf.mxu1 }
0x1949   : > { %v2583_v54 = vadd.f32 %v12162_v48, %v2582_v10 }
0x194a   : > { %v10129_v55 = vpop.f32.mrf.mxu1 }
0x194b   : > { %11164 = vtanh.f32 %v2583_v54 }
0x1958   : > { %v11165_v56 = vpop.eup %11164 }
0x1959   : > { %v2587_v57 = vmul.f32 %v11165_v56, %v11967_v14  ;;  %v2739_v61 = vmul.f32 2.0, %v11165_v56 }
0x195b   : > { %v2588_v58 = vadd.f32 %v2587_v57, %v12145_v47  ;;  %v2740_v24 = vadd.f32 %v11163_v51, %v2739_v61 }
0x195d   : > { %10139 = vmatmul.mubr.msk.f32.vlgmr.msra.gmra.mxu0 %vm246_vm1, %v2588_v58 }
0x195e   : > { %10153 = vmatpush3.msra.mxu0 %v12110_v26  ;;  %10160 = vmatprep.mubr.msk.f32.mxu0 %vm11493_vm0, %v11492_v1 }
0x195f   : > { %10154 = vmatprep.subr.mxu0 %v11492_v1 }
0x1960   : > { %10155 = vmatpush3.msra.mxu0 %v12116_v4 }
0x1961   : > { %10156 = vmatprep.subr.mxu0 %v11492_v1 }
0x1962   : > { %10157 = vmatpush3.msra.mxu0 %v12120_v27 }
0x1963   : > { %10158 = vmatprep.subr.mxu0 %v11492_v1 }
0x1964   : > { %10159 = vmatpush3.msra.mxu0 %v12138_v5 }
0x1965   : > { %10174 = vmatprep.subr.mxu0 %v11492_v1 }
0x1a1d   : > { %v2658_v14 = vpop.f32.mrf.mxu0 }
0x1a1e   : > { %v2659_v59 = vadd.f32 %v12162_v48, %v2658_v14 }
0x1a1f   : > { %v10140_v60 = vpop.f32.mrf.mxu0 }
0x1a20   : > { %11166 = vtanh.f32 %v2659_v59 }
0x1a2d   : > { %v11167_v62 = vpop.eup %11166 }
0x1a2e   : > { %v2741_v63 = vmul.f32 2.0, %v11167_v62  ;;  %v2663_v3 = vmul.f32 %v11167_v62, %v11998_v29 }
0x1a30   : > { %v2664_v7 = vadd.f32 %v2663_v3, %v12145_v47  ;;  %v2742_v8 = vadd.f32 %v2741_v63, %v2740_v24 }
0x1a32   : > { %10150 = vmatmul.mubr.msk.f32.vlgmr.msra.gmra.mxu1 %vm246_vm1, %v2664_v7 }
0x1a33   : > { %10164 = vmatpush3.msra.mxu1 %v12110_v26  ;;  %10171 = vmatprep.mubr.msk.f32.mxu1 %vm11493_vm0, %v11492_v1 }
0x1a34   : > { %10165 = vmatprep.subr.mxu1 %v11492_v1 }
0x1a35   : > { %10166 = vmatpush3.msra.mxu1 %v12116_v4 }
0x1a36   : > { %10167 = vmatprep.subr.mxu1 %v11492_v1 }
0x1a37   : > { %10168 = vmatpush3.msra.mxu1 %v12120_v27 }
0x1a38   : > { %10169 = vmatprep.subr.mxu1 %v11492_v1 }
0x1a39   : > { %10170 = vmatpush3.msra.mxu1 %v12138_v5 }
0x1a3a   : > { %10185 = vmatprep.subr.mxu1 %v11492_v1 }
0x1af2   : > { %v2734_v29 = vpop.f32.mrf.mxu1 }
0x1af3   : > { %v2735_v9 = vadd.f32 %v12162_v48, %v2734_v29 }
0x1af4   : > { %v10151_v11 = vpop.f32.mrf.mxu1 }
0x1af5   : > { %11168 = vtanh.f32 %v2735_v9 }
0x1b02   : > { %v11169_v35 = vpop.eup %11168 }
0x1b03   : > { %v2743_v12 = vadd.f32 %v11169_v35, %v2742_v8 }
0x1b05   : > { %v2744_v13 = vmul.f32 %v2743_v12, %v12015_v41 }
0x1b07   : > { %v12209_v15 = vadd.f32 %v2744_v13, %v12145_v47  ;;  %v12282_v47 = vstv %s2753_s10  ;;  %s13006_s10 = smul.f32 0.25, %s6491_s9 }
0x1b09   : > { %9140 = vst.msk [vmem:[%s11662_s21 + $0x10] sm:$0xff] %vm246_vm1, %v12209_v15  ;;  %10161 = vmatmul.mubr.msk.f32.vlgmr.msra.gmra.mxu0 %vm246_vm1, %v12209_v15  ;;  %s6493_s11 = smul.f32 0.5, %s13006_s10 }
0x1b0a   : > { %10175 = vmatpush3.msra.mxu0 %v12110_v26  ;;  %10182 = vmatprep.mubr.msk.f32.mxu0 %vm11493_vm0, %v11492_v1  ;;  %s6494_s20 = smul.f32 0.16666667, %s13006_s10 }
0x1b0b   : > { %10176 = vmatprep.subr.mxu0 %v11492_v1 }
0x1b0c   : > { %10177 = vmatpush3.msra.mxu0 %v12116_v4 }
0x1b0d   : > { %10178 = vmatprep.subr.mxu0 %v11492_v1 }
0x1b0e   : > { %10179 = vmatpush3.msra.mxu0 %v12120_v27 }
0x1b0f   : > { %10180 = vmatprep.subr.mxu0 %v11492_v1 }
0x1b10   : > { %10181 = vmatpush3.msra.mxu0 %v12138_v5 }
0x1b11   : > { %10196 = vmatprep.subr.mxu0 %v11492_v1 }
0x1bc9   : > { %v2823_v41 = vpop.f32.mrf.mxu0 }
0x1bca   : > { %v2824_v16 = vadd.f32 %v12162_v48, %v2823_v41 }
0x1bcb   : > { %v10162_v17 = vpop.f32.mrf.mxu0 }
0x1bcc   : > { %11170 = vtanh.f32 %v2824_v16 }
0x1bd9   : > { %v11171_v19 = vpop.eup %11170 }
0x1bda   : > { %v2829_v20 = vmul.f32 %v11171_v19, %v12234_v18 }
0x1bdc   : > { %v2830_v21 = vadd.f32 %v2829_v20, %v12209_v15 }
0x1bde   : > { %10172 = vmatmul.mubr.msk.f32.vlgmr.msra.gmra.mxu1 %vm246_vm1, %v2830_v21 }
0x1bdf   : > { %10186 = vmatpush3.msra.mxu1 %v12110_v26  ;;  %10193 = vmatprep.mubr.msk.f32.mxu1 %vm11493_vm0, %v11492_v1 }
0x1be0   : > { %10187 = vmatprep.subr.mxu1 %v11492_v1 }
0x1be1   : > { %10188 = vmatpush3.msra.mxu1 %v12116_v4 }
0x1be2   : > { %10189 = vmatprep.subr.mxu1 %v11492_v1 }
0x1be3   : > { %10190 = vmatpush3.msra.mxu1 %v12120_v27 }
0x1be4   : > { %10191 = vmatprep.subr.mxu1 %v11492_v1 }
0x1be5   : > { %10192 = vmatpush3.msra.mxu1 %v12138_v5 }
0x1be6   : > { %10207 = vmatprep.subr.mxu1 %v11492_v1 }
0x1c9e   : > { %v2900_v0 = vpop.f32.mrf.mxu1 }
0x1c9f   : > { %v2901_v22 = vadd.f32 %v12162_v48, %v2900_v0 }
0x1ca0   : > { %v10173_v23 = vpop.f32.mrf.mxu1 }
0x1ca1   : > { %11172 = vtanh.f32 %v2901_v22 }
0x1cae   : > { %v11173_v25 = vpop.eup %11172 }
0x1caf   : > { %v2905_v2 = vmul.f32 %v11173_v25, %v12234_v18  ;;  %v3058_v33 = vmul.f32 2.0, %v11173_v25 }
0x1cb1   : > { %v2906_v28 = vadd.f32 %v2905_v2, %v12209_v15  ;;  %v3059_v37 = vadd.f32 %v11171_v19, %v3058_v33 }
0x1cb3   : > { %10183 = vmatmul.mubr.msk.f32.vlgmr.msra.gmra.mxu0 %vm246_vm1, %v2906_v28 }
0x1cb4   : > { %10197 = vmatpush3.msra.mxu0 %v12110_v26  ;;  %10204 = vmatprep.mubr.msk.f32.mxu0 %vm11493_vm0, %v11492_v1 }
0x1cb5   : > { %10198 = vmatprep.subr.mxu0 %v11492_v1 }
0x1cb6   : > { %10199 = vmatpush3.msra.mxu0 %v12116_v4 }
0x1cb7   : > { %10200 = vmatprep.subr.mxu0 %v11492_v1 }
0x1cb8   : > { %10201 = vmatpush3.msra.mxu0 %v12120_v27 }
0x1cb9   : > { %10202 = vmatprep.subr.mxu0 %v11492_v1 }
0x1cba   : > { %10203 = vmatpush3.msra.mxu0 %v12138_v5 }
0x1cbb   : > { %10218 = vmatprep.subr.mxu0 %v11492_v1 }
0x1d73   : > { %v2976_v30 = vpop.f32.mrf.mxu0 }
0x1d74   : > { %v2977_v31 = vadd.f32 %v12162_v48, %v2976_v30 }
0x1d75   : > { %v10184_v32 = vpop.f32.mrf.mxu0 }
0x1d76   : > { %11174 = vtanh.f32 %v2977_v31 }
0x1d83   : > { %v11175_v36 = vpop.eup %11174 }
0x1d84   : > { %v3060_v38 = vmul.f32 2.0, %v11175_v36  ;;  %v2982_v39 = vmul.f32 %v11175_v36, %v12265_v34 }
0x1d86   : > { %v2983_v40 = vadd.f32 %v2982_v39, %v12209_v15  ;;  %v3061_v42 = vadd.f32 %v3060_v38, %v3059_v37 }
0x1d88   : > { %10194 = vmatmul.mubr.msk.f32.vlgmr.msra.gmra.mxu1 %vm246_vm1, %v2983_v40 }
0x1d89   : > { %10208 = vmatpush3.msra.mxu1 %v12110_v26  ;;  %10215 = vmatprep.mubr.msk.f32.mxu1 %vm11493_vm0, %v11492_v1 }
0x1d8a   : > { %10209 = vmatprep.subr.mxu1 %v11492_v1 }
0x1d8b   : > { %10210 = vmatpush3.msra.mxu1 %v12116_v4 }
0x1d8c   : > { %10211 = vmatprep.subr.mxu1 %v11492_v1 }
0x1d8d   : > { %10212 = vmatpush3.msra.mxu1 %v12120_v27 }
0x1d8e   : > { %10213 = vmatprep.subr.mxu1 %v11492_v1 }
0x1d8f   : > { %10214 = vmatpush3.msra.mxu1 %v12138_v5 }
0x1d90   : > { %10229 = vmatprep.subr.mxu1 %v11492_v1 }
0x1e48   : > { %v3053_v43 = vpop.f32.mrf.mxu1 }
0x1e49   : > { %v3054_v44 = vadd.f32 %v12162_v48, %v3053_v43 }
0x1e4a   : > { %v10195_v45 = vpop.f32.mrf.mxu1 }
0x1e4b   : > { %11176 = vtanh.f32 %v3054_v44 }
0x1e58   : > { %v11177_v46 = vpop.eup %11176 }
0x1e59   : > { %v3062_v6 = vadd.f32 %v11177_v46, %v3061_v42 }
0x1e5b   : > { %v3064_v49 = vmul.f32 %v12282_v47, %v3062_v6 }
0x1e5d   : > { %v12286_v50 = vadd.f32 %v3064_v49, %v12209_v15 }
0x1e5f   : > { %10205 = vmatmul.mubr.msk.f32.vlgmr.msra.gmra.mxu0 %vm246_vm1, %v12286_v50 }
0x1e60   : > { %10219 = vmatpush3.msra.mxu0 %v12110_v26  ;;  %10226 = vmatprep.mubr.msk.f32.mxu0 %vm11493_vm0, %v11492_v1 }
0x1e61   : > { %10220 = vmatprep.subr.mxu0 %v11492_v1 }
0x1e62   : > { %10221 = vmatpush3.msra.mxu0 %v12116_v4 }
0x1e63   : > { %10222 = vmatprep.subr.mxu0 %v11492_v1 }
0x1e64   : > { %10223 = vmatpush3.msra.mxu0 %v12120_v27 }
0x1e65   : > { %10224 = vmatprep.subr.mxu0 %v11492_v1 }
0x1e66   : > { %10225 = vmatpush3.msra.mxu0 %v12138_v5 }
0x1e67   : > { %10240 = vmatprep.subr.mxu0 %v11492_v1 }
0x1f1f   : > { %v3135_v51 = vpop.f32.mrf.mxu0 }
0x1f20   : > { %v3136_v52 = vadd.f32 %v12162_v48, %v3135_v51 }
0x1f21   : > { %v10206_v53 = vpop.f32.mrf.mxu0 }
0x1f22   : > { %11178 = vtanh.f32 %v3136_v52 }
0x1f2f   : > { %v11179_v10 = vpop.eup %11178 }
0x1f30   : > { %v3140_v54 = vmul.f32 %v11179_v10, %v12234_v18 }
0x1f32   : > { %v3141_v55 = vadd.f32 %v3140_v54, %v12286_v50 }
0x1f34   : > { %10216 = vmatmul.mubr.msk.f32.vlgmr.msra.gmra.mxu1 %vm246_vm1, %v3141_v55 }
0x1f35   : > { %10230 = vmatpush3.msra.mxu1 %v12110_v26  ;;  %10237 = vmatprep.mubr.msk.f32.mxu1 %vm11493_vm0, %v11492_v1 }
0x1f36   : > { %10231 = vmatprep.subr.mxu1 %v11492_v1 }
0x1f37   : > { %10232 = vmatpush3.msra.mxu1 %v12116_v4 }
0x1f38   : > { %10233 = vmatprep.subr.mxu1 %v11492_v1 }
0x1f39   : > { %10234 = vmatpush3.msra.mxu1 %v12120_v27 }
0x1f3a   : > { %10235 = vmatprep.subr.mxu1 %v11492_v1 }
0x1f3b   : > { %10236 = vmatpush3.msra.mxu1 %v12138_v5 }
0x1f3c   : > { %10251 = vmatprep.subr.mxu1 %v11492_v1 }
0x1ff4   : > { %v3211_v56 = vpop.f32.mrf.mxu1 }
0x1ff5   : > { %v3212_v57 = vadd.f32 %v12162_v48, %v3211_v56 }
0x1ff6   : > { %v10217_v58 = vpop.f32.mrf.mxu1 }
0x1ff7   : > { %11180 = vtanh.f32 %v3212_v57 }
0x2004   : > { %v11181_v14 = vpop.eup %11180 }
0x2005   : > { %v3216_v59 = vmul.f32 %v11181_v14, %v12234_v18  ;;  %v3368_v63 = vmul.f32 2.0, %v11181_v14 }
0x2007   : > { %v3217_v60 = vadd.f32 %v3216_v59, %v12286_v50  ;;  %v3369_v7 = vadd.f32 %v11179_v10, %v3368_v63 }
0x2009   : > { %10227 = vmatmul.mubr.msk.f32.vlgmr.msra.gmra.mxu0 %vm246_vm1, %v3217_v60 }
0x200a   : > { %10241 = vmatpush3.msra.mxu0 %v12110_v26  ;;  %10248 = vmatprep.mubr.msk.f32.mxu0 %vm11493_vm0, %v11492_v1 }
0x200b   : > { %10242 = vmatprep.subr.mxu0 %v11492_v1 }
0x200c   : > { %10243 = vmatpush3.msra.mxu0 %v12116_v4 }
0x200d   : > { %10244 = vmatprep.subr.mxu0 %v11492_v1 }
0x200e   : > { %10245 = vmatpush3.msra.mxu0 %v12120_v27 }
0x200f   : > { %10246 = vmatprep.subr.mxu0 %v11492_v1 }
0x2010   : > { %10247 = vmatpush3.msra.mxu0 %v12138_v5 }
0x2011   : > { %10262 = vmatprep.subr.mxu0 %v11492_v1 }
0x20c9   : > { %v3287_v61 = vpop.f32.mrf.mxu0 }
0x20ca   : > { %v3288_v62 = vadd.f32 %v12162_v48, %v3287_v61 }
0x20cb   : > { %v10228_v24 = vpop.f32.mrf.mxu0 }
0x20cc   : > { %11182 = vtanh.f32 %v3288_v62 }
0x20d9   : > { %v11183_v3 = vpop.eup %11182 }
0x20da   : > { %v3370_v8 = vmul.f32 2.0, %v11183_v3  ;;  %v3292_v29 = vmul.f32 %v11183_v3, %v12265_v34 }
0x20dc   : > { %v3293_v9 = vadd.f32 %v3292_v29, %v12286_v50  ;;  %v3371_v11 = vadd.f32 %v3370_v8, %v3369_v7 }
0x20de   : > { %10238 = vmatmul.mubr.msk.f32.vlgmr.msra.gmra.mxu1 %vm246_vm1, %v3293_v9 }
0x20df   : > { %10252 = vmatpush3.msra.mxu1 %v12110_v26  ;;  %10259 = vmatprep.mubr.msk.f32.mxu1 %vm11493_vm0, %v11492_v1 }
0x20e0   : > { %10253 = vmatprep.subr.mxu1 %v11492_v1 }
0x20e1   : > { %10254 = vmatpush3.msra.mxu1 %v12116_v4 }
0x20e2   : > { %10255 = vmatprep.subr.mxu1 %v11492_v1 }
0x20e3   : > { %10256 = vmatpush3.msra.mxu1 %v12120_v27 }
0x20e4   : > { %10257 = vmatprep.subr.mxu1 %v11492_v1 }
0x20e5   : > { %10258 = vmatpush3.msra.mxu1 %v12138_v5 }
0x20e6   : > { %10273 = vmatprep.subr.mxu1 %v11492_v1 }
0x219e   : > { %v3363_v35 = vpop.f32.mrf.mxu1 }
0x219f   : > { %v3364_v12 = vadd.f32 %v12162_v48, %v3363_v35 }
0x21a0   : > { %v10239_v13 = vpop.f32.mrf.mxu1 }
0x21a1   : > { %11184 = vtanh.f32 %v3364_v12 }
0x21ae   : > { %v11185_v15 = vpop.eup %11184 }
0x21af   : > { %v3372_v41 = vadd.f32 %v11185_v15, %v3371_v11 }
0x21b1   : > { %v3373_v16 = vmul.f32 %v3372_v41, %v12282_v47 }
0x21b3   : > { %v12345_v17 = vadd.f32 %v3373_v16, %v12286_v50 }
0x21b5   : > { %10249 = vmatmul.mubr.msk.f32.vlgmr.msra.gmra.mxu0 %vm246_vm1, %v12345_v17 }
0x21b6   : > { %10263 = vmatpush3.msra.mxu0 %v12110_v26  ;;  %10270 = vmatprep.mubr.msk.f32.mxu0 %vm11493_vm0, %v11492_v1 }
0x21b7   : > { %10264 = vmatprep.subr.mxu0 %v11492_v1 }
0x21b8   : > { %10265 = vmatpush3.msra.mxu0 %v12116_v4 }
0x21b9   : > { %10266 = vmatprep.subr.mxu0 %v11492_v1 }
0x21ba   : > { %10267 = vmatpush3.msra.mxu0 %v12120_v27 }
0x21bb   : > { %10268 = vmatprep.subr.mxu0 %v11492_v1 }
0x21bc   : > { %10269 = vmatpush3.msra.mxu0 %v12138_v5 }
0x21bd   : > { %10284 = vmatprep.subr.mxu0 %v11492_v1 }
0x2275   : > { %v3444_v19 = vpop.f32.mrf.mxu0 }
0x2276   : > { %v3445_v20 = vadd.f32 %v12162_v48, %v3444_v19 }
0x2277   : > { %v10250_v21 = vpop.f32.mrf.mxu0 }
0x2278   : > { %11186 = vtanh.f32 %v3445_v20 }
0x2285   : > { %v11187_v0 = vpop.eup %11186 }
0x2286   : > { %v3449_v22 = vmul.f32 %v11187_v0, %v12234_v18 }
0x2288   : > { %v3450_v23 = vadd.f32 %v3449_v22, %v12345_v17 }
0x228a   : > { %10260 = vmatmul.mubr.msk.f32.vlgmr.msra.gmra.mxu1 %vm246_vm1, %v3450_v23 }
0x228b   : > { %10274 = vmatpush3.msra.mxu1 %v12110_v26  ;;  %10281 = vmatprep.mubr.msk.f32.mxu1 %vm11493_vm0, %v11492_v1 }
0x228c   : > { %10275 = vmatprep.subr.mxu1 %v11492_v1 }
0x228d   : > { %10276 = vmatpush3.msra.mxu1 %v12116_v4 }
0x228e   : > { %10277 = vmatprep.subr.mxu1 %v11492_v1 }
0x228f   : > { %10278 = vmatpush3.msra.mxu1 %v12120_v27 }
0x2290   : > { %10279 = vmatprep.subr.mxu1 %v11492_v1 }
0x2291   : > { %10280 = vmatpush3.msra.mxu1 %v12138_v5 }
0x2292   : > { %10295 = vmatprep.subr.mxu1 %v11492_v1 }
0x234a   : > { %v3520_v25 = vpop.f32.mrf.mxu1 }
0x234b   : > { %v3521_v2 = vadd.f32 %v12162_v48, %v3520_v25 }
0x234c   : > { %v10261_v28 = vpop.f32.mrf.mxu1 }
0x234d   : > { %11188 = vtanh.f32 %v3521_v2 }
0x235a   : > { %v11189_v30 = vpop.eup %11188 }
0x235b   : > { %v3525_v31 = vmul.f32 %v11189_v30, %v12234_v18  ;;  %v3677_v38 = vmul.f32 2.0, %v11189_v30 }
0x235d   : > { %v3526_v32 = vadd.f32 %v3525_v31, %v12345_v17  ;;  %v3678_v40 = vadd.f32 %v11187_v0, %v3677_v38  ;;  %v12488_v0 = vstv %s3999_s14 }
0x235f   : > { %10271 = vmatmul.mubr.msk.f32.vlgmr.msra.gmra.mxu0 %vm246_vm1, %v3526_v32 }
0x2360   : > { %10285 = vmatpush3.msra.mxu0 %v12110_v26  ;;  %10292 = vmatprep.mubr.msk.f32.mxu0 %vm11493_vm0, %v11492_v1 }
0x2361   : > { %10286 = vmatprep.subr.mxu0 %v11492_v1 }
0x2362   : > { %10287 = vmatpush3.msra.mxu0 %v12116_v4 }
0x2363   : > { %10288 = vmatprep.subr.mxu0 %v11492_v1 }
0x2364   : > { %10289 = vmatpush3.msra.mxu0 %v12120_v27 }
0x2365   : > { %10290 = vmatprep.subr.mxu0 %v11492_v1 }
0x2366   : > { %10291 = vmatpush3.msra.mxu0 %v12138_v5 }
0x2367   : > { %10306 = vmatprep.subr.mxu0 %v11492_v1 }
0x241f   : > { %v3596_v33 = vpop.f32.mrf.mxu0 }
0x2420   : > { %v3597_v36 = vadd.f32 %v12162_v48, %v3596_v33 }
0x2421   : > { %v10272_v37 = vpop.f32.mrf.mxu0 }
0x2422   : > { %11190 = vtanh.f32 %v3597_v36 }
0x242f   : > { %v11191_v39 = vpop.eup %11190 }
0x2430   : > { %v3679_v42 = vmul.f32 2.0, %v11191_v39  ;;  %v3601_v43 = vmul.f32 %v11191_v39, %v12265_v34 }
0x2432   : > { %v3602_v44 = vadd.f32 %v3601_v43, %v12345_v17  ;;  %v3680_v45 = vadd.f32 %v3679_v42, %v3678_v40  ;;  %v12519_v40 = vstv %s12485_s24 }
0x2434   : > { %10282 = vmatmul.mubr.msk.f32.vlgmr.msra.gmra.mxu1 %vm246_vm1, %v3602_v44 }
0x2435   : > { %10296 = vmatpush3.msra.mxu1 %v12110_v26  ;;  %10303 = vmatprep.mubr.msk.f32.mxu1 %vm11493_vm0, %v11492_v1 }
0x2436   : > { %10297 = vmatprep.subr.mxu1 %v11492_v1 }
0x2437   : > { %10298 = vmatpush3.msra.mxu1 %v12116_v4 }
0x2438   : > { %10299 = vmatprep.subr.mxu1 %v11492_v1 }
0x2439   : > { %10300 = vmatpush3.msra.mxu1 %v12120_v27 }
0x243a   : > { %10301 = vmatprep.subr.mxu1 %v11492_v1 }
0x243b   : > { %10302 = vmatpush3.msra.mxu1 %v12138_v5 }
0x243c   : > { %10317 = vmatprep.subr.mxu1 %v11492_v1 }
0x24f4   : > { %v3672_v46 = vpop.f32.mrf.mxu1 }
0x24f5   : > { %v3673_v6 = vadd.f32 %v12162_v48, %v3672_v46 }
0x24f6   : > { %v10283_v49 = vpop.f32.mrf.mxu1 }
0x24f7   : > { %11192 = vtanh.f32 %v3673_v6 }
0x2504   : > { %v11193_v50 = vpop.eup %11192 }
0x2505   : > { %v3681_v51 = vadd.f32 %v11193_v50, %v3680_v45 }
0x2507   : > { %v3682_v52 = vmul.f32 %v3681_v51, %v12282_v47 }
0x2509   : > { %v12404_v53 = vadd.f32 %v3682_v52, %v12345_v17 }
0x250b   : > { %10293 = vmatmul.mubr.msk.f32.vlgmr.msra.gmra.mxu0 %vm246_vm1, %v12404_v53 }
0x250c   : > { %10307 = vmatpush3.msra.mxu0 %v12110_v26  ;;  %10314 = vmatprep.mubr.msk.f32.mxu0 %vm11493_vm0, %v11492_v1 }
0x250d   : > { %10308 = vmatprep.subr.mxu0 %v11492_v1 }
0x250e   : > { %10309 = vmatpush3.msra.mxu0 %v12116_v4 }
0x250f   : > { %10310 = vmatprep.subr.mxu0 %v11492_v1 }
0x2510   : > { %10311 = vmatpush3.msra.mxu0 %v12120_v27 }
0x2511   : > { %10312 = vmatprep.subr.mxu0 %v11492_v1 }
0x2512   : > { %10313 = vmatpush3.msra.mxu0 %v12138_v5 }
0x2513   : > { %10328 = vmatprep.subr.mxu0 %v11492_v1 }
0x25cb   : > { %v3753_v10 = vpop.f32.mrf.mxu0 }
0x25cc   : > { %v3754_v54 = vadd.f32 %v12162_v48, %v3753_v10 }
0x25cd   : > { %v10294_v55 = vpop.f32.mrf.mxu0 }
0x25ce   : > { %11194 = vtanh.f32 %v3754_v54 }
0x25db   : > { %v11195_v56 = vpop.eup %11194 }
0x25dc   : > { %v3758_v57 = vmul.f32 %v11195_v56, %v12234_v18 }
0x25de   : > { %v3759_v58 = vadd.f32 %v3758_v57, %v12404_v53 }
0x25e0   : > { %10304 = vmatmul.mubr.msk.f32.vlgmr.msra.gmra.mxu1 %vm246_vm1, %v3759_v58 }
0x25e1   : > { %10318 = vmatpush3.msra.mxu1 %v12110_v26  ;;  %10325 = vmatprep.mubr.msk.f32.mxu1 %vm11493_vm0, %v11492_v1 }
0x25e2   : > { %10319 = vmatprep.subr.mxu1 %v11492_v1 }
0x25e3   : > { %10320 = vmatpush3.msra.mxu1 %v12116_v4 }
0x25e4   : > { %10321 = vmatprep.subr.mxu1 %v11492_v1 }
0x25e5   : > { %10322 = vmatpush3.msra.mxu1 %v12120_v27 }
0x25e6   : > { %10323 = vmatprep.subr.mxu1 %v11492_v1 }
0x25e7   : > { %10324 = vmatpush3.msra.mxu1 %v12138_v5 }
0x25e8   : > { %10339 = vmatprep.subr.mxu1 %v11492_v1 }
0x26a0   : > { %v3829_v14 = vpop.f32.mrf.mxu1 }
0x26a1   : > { %v3830_v59 = vadd.f32 %v12162_v48, %v3829_v14 }
0x26a2   : > { %v10305_v60 = vpop.f32.mrf.mxu1 }
0x26a3   : > { %11196 = vtanh.f32 %v3830_v59  ;;  %v12558_v59 = vld [vmem:[#allocation7 + $0x18] sm:$0xff]  ;;  %v12568_v60 = vld [vmem:[#allocation7 + $0x8] sm:$0xff] }
0x26b0   : > { %v11197_v61 = vpop.eup %11196 }
0x26b1   : > { %v3834_v62 = vmul.f32 %v11197_v61, %v12234_v18  ;;  %v3986_v7 = vmul.f32 2.0, %v11197_v61 }
0x26b3   : > { %v3835_v24 = vadd.f32 %v3834_v62, %v12404_v53  ;;  %v3987_v29 = vadd.f32 %v11195_v56, %v3986_v7 }
0x26b5   : > { %10315 = vmatmul.mubr.msk.f32.vlgmr.msra.gmra.mxu0 %vm246_vm1, %v3835_v24 }
0x26b6   : > { %10329 = vmatpush3.msra.mxu0 %v12110_v26  ;;  %10336 = vmatprep.mubr.msk.f32.mxu0 %vm11493_vm0, %v11492_v1 }
0x26b7   : > { %10330 = vmatprep.subr.mxu0 %v11492_v1 }
0x26b8   : > { %10331 = vmatpush3.msra.mxu0 %v12116_v4 }
0x26b9   : > { %10332 = vmatprep.subr.mxu0 %v11492_v1 }
0x26ba   : > { %10333 = vmatpush3.msra.mxu0 %v12120_v27 }
0x26bb   : > { %10334 = vmatprep.subr.mxu0 %v11492_v1 }
0x26bc   : > { %10335 = vmatpush3.msra.mxu0 %v12138_v5 }
0x26bd   : > { %10350 = vmatprep.subr.mxu0 %v11492_v1 }
0x2775   : > { %v3905_v18 = vpop.f32.mrf.mxu0 }
0x2776   : > { %v3906_v63 = vadd.f32 %v12162_v48, %v3905_v18 }
0x2777   : > { %v10316_v3 = vpop.f32.mrf.mxu0 }
0x2778   : > { %11198 = vtanh.f32 %v3906_v63 }
0x2785   : > { %v11199_v8 = vpop.eup %11198 }
0x2786   : > { %v3988_v9 = vmul.f32 2.0, %v11199_v8  ;;  %v3910_v11 = vmul.f32 %v11199_v8, %v12265_v34 }
0x2788   : > { %v3911_v35 = vadd.f32 %v3910_v11, %v12404_v53  ;;  %v3989_v12 = vadd.f32 %v3988_v9, %v3987_v29 }
0x278a   : > { %10326 = vmatmul.mubr.msk.f32.vlgmr.msra.gmra.mxu1 %vm246_vm1, %v3911_v35 }
0x278b   : > { %10340 = vmatpush3.msra.mxu1 %v12110_v26  ;;  %10347 = vmatprep.mubr.msk.f32.mxu1 %vm11493_vm0, %v11492_v1 }
0x278c   : > { %10341 = vmatprep.subr.mxu1 %v11492_v1 }
0x278d   : > { %10342 = vmatpush3.msra.mxu1 %v12116_v4 }
0x278e   : > { %10343 = vmatprep.subr.mxu1 %v11492_v1 }
0x278f   : > { %10344 = vmatpush3.msra.mxu1 %v12120_v27 }
0x2790   : > { %10345 = vmatprep.subr.mxu1 %v11492_v1 }
0x2791   : > { %10346 = vmatpush3.msra.mxu1 %v12138_v5 }
0x2792   : > { %10361 = vmatprep.subr.mxu1 %v11492_v1 }
0x284a   : > { %v3981_v34 = vpop.f32.mrf.mxu1 }
0x284b   : > { %v3982_v13 = vadd.f32 %v12162_v48, %v3981_v34 }
0x284c   : > { %v10327_v15 = vpop.f32.mrf.mxu1 }
0x284d   : > { %11200 = vtanh.f32 %v3982_v13 }
0x285a   : > { %v11201_v41 = vpop.eup %11200 }
0x285b   : > { %v3990_v16 = vadd.f32 %v11201_v41, %v3989_v12 }
0x285d   : > { %v3991_v17 = vmul.f32 %v3990_v16, %v12282_v47 }
0x285f   : > { %v12463_v19 = vadd.f32 %v3991_v17, %v12404_v53  ;;  %v12536_v53 = vstv %s4000_s26  ;;  %s9218_s26 = sld [smem:[#allocation2 + $0x7]] }
0x2861   : > { %9159 = vst.msk [vmem:[%s11662_s21 + $0x18] sm:$0xff] %vm246_vm1, %v12463_v19  ;;  %10337 = vmatmul.mubr.msk.f32.vlgmr.msra.gmra.mxu0 %vm246_vm1, %v12463_v19 }
0x2862   : > { %10351 = vmatpush3.msra.mxu0 %v12110_v26  ;;  %10358 = vmatprep.mubr.msk.f32.mxu0 %vm11493_vm0, %v11492_v1 }
0x2863   : > { %10352 = vmatprep.subr.mxu0 %v11492_v1 }
0x2864   : > { %10353 = vmatpush3.msra.mxu0 %v12116_v4 }
0x2865   : > { %10354 = vmatprep.subr.mxu0 %v11492_v1  ;;  %s7738_s29 = ssub.f32 %s9218_s26, %s13001_s6 }
0x2866   : > { %10355 = vmatpush3.msra.mxu0 %v12120_v27 }
0x2867   : > { %10356 = vmatprep.subr.mxu0 %v11492_v1  ;;  %s13270_s7 = smul.f32 0.25, %s7738_s29 }
0x2868   : > { %10357 = vmatpush3.msra.mxu0 %v12138_v5 }
0x2869   : > { %10372 = vmatprep.subr.mxu0 %v11492_v1  ;;  %s7740_s8 = smul.f32 0.5, %s13270_s7 }
0x286a   : > { %s7741_s5 = smul.f32 0.16666667, %s13270_s7 }
0x2921   : > { %v4070_v47 = vpop.f32.mrf.mxu0 }
0x2922   : > { %v4071_v20 = vadd.f32 %v12162_v48, %v4070_v47 }
0x2923   : > { %v10338_v21 = vpop.f32.mrf.mxu0 }
0x2924   : > { %11202 = vtanh.f32 %v4071_v20 }
0x2931   : > { %v11203_v22 = vpop.eup %11202 }
0x2932   : > { %v4076_v23 = vmul.f32 %v11203_v22, %v12488_v0 }
0x2934   : > { %v4077_v25 = vadd.f32 %v4076_v23, %v12463_v19 }
0x2936   : > { %10348 = vmatmul.mubr.msk.f32.vlgmr.msra.gmra.mxu1 %vm246_vm1, %v4077_v25 }
0x2937   : > { %10362 = vmatpush3.msra.mxu1 %v12110_v26  ;;  %10369 = vmatprep.mubr.msk.f32.mxu1 %vm11493_vm0, %v11492_v1 }
0x2938   : > { %10363 = vmatprep.subr.mxu1 %v11492_v1 }
0x2939   : > { %10364 = vmatpush3.msra.mxu1 %v12116_v4 }
0x293a   : > { %10365 = vmatprep.subr.mxu1 %v11492_v1 }
0x293b   : > { %10366 = vmatpush3.msra.mxu1 %v12120_v27 }
0x293c   : > { %10367 = vmatprep.subr.mxu1 %v11492_v1 }
0x293d   : > { %10368 = vmatpush3.msra.mxu1 %v12138_v5 }
0x293e   : > { %10383 = vmatprep.subr.mxu1 %v11492_v1 }
0x29f6   : > { %v4147_v2 = vpop.f32.mrf.mxu1 }
0x29f7   : > { %v4148_v28 = vadd.f32 %v12162_v48, %v4147_v2 }
0x29f8   : > { %v10349_v30 = vpop.f32.mrf.mxu1 }
0x29f9   : > { %11204 = vtanh.f32 %v4148_v28 }
0x2a06   : > { %v11205_v31 = vpop.eup %11204 }
0x2a07   : > { %v4152_v32 = vmul.f32 %v11205_v31, %v12488_v0  ;;  %v4305_v39 = vmul.f32 2.0, %v11205_v31 }
0x2a09   : > { %v4153_v33 = vadd.f32 %v4152_v32, %v12463_v19  ;;  %v4306_v43 = vadd.f32 %v11203_v22, %v4305_v39  ;;  %v12624_v22 = vld [vmem:[%s13525_s3] ss:$0 sm:$0xff] }
0x2a0b   : > { %10359 = vmatmul.mubr.msk.f32.vlgmr.msra.gmra.mxu0 %vm246_vm1, %v4153_v33 }
0x2a0c   : > { %10373 = vmatpush3.msra.mxu0 %v12110_v26  ;;  %10380 = vmatprep.mubr.msk.f32.mxu0 %vm11493_vm0, %v11492_v1 }
0x2a0d   : > { %10374 = vmatprep.subr.mxu0 %v11492_v1 }
0x2a0e   : > { %10375 = vmatpush3.msra.mxu0 %v12116_v4 }
0x2a0f   : > { %10376 = vmatprep.subr.mxu0 %v11492_v1 }
0x2a10   : > { %10377 = vmatpush3.msra.mxu0 %v12120_v27 }
0x2a11   : > { %10378 = vmatprep.subr.mxu0 %v11492_v1 }
0x2a12   : > { %10379 = vmatpush3.msra.mxu0 %v12138_v5 }
0x2a13   : > { %10394 = vmatprep.subr.mxu0 %v11492_v1 }
0x2acb   : > { %v4223_v36 = vpop.f32.mrf.mxu0 }
0x2acc   : > { %v4224_v37 = vadd.f32 %v12162_v48, %v4223_v36 }
0x2acd   : > { %v10360_v38 = vpop.f32.mrf.mxu0 }
0x2ace   : > { %11206 = vtanh.f32 %v4224_v37 }
0x2adb   : > { %v11207_v42 = vpop.eup %11206 }
0x2adc   : > { %v4307_v44 = vmul.f32 2.0, %v11207_v42  ;;  %v4229_v45 = vmul.f32 %v11207_v42, %v12519_v40 }
0x2ade   : > { %v4230_v46 = vadd.f32 %v4229_v45, %v12463_v19  ;;  %v4308_v6 = vadd.f32 %v4307_v44, %v4306_v43 }
0x2ae0   : > { %10370 = vmatmul.mubr.msk.f32.vlgmr.msra.gmra.mxu1 %vm246_vm1, %v4230_v46 }
0x2ae1   : > { %10384 = vmatpush3.msra.mxu1 %v12110_v26  ;;  %10391 = vmatprep.mubr.msk.f32.mxu1 %vm11493_vm0, %v11492_v1 }
0x2ae2   : > { %10385 = vmatprep.subr.mxu1 %v11492_v1 }
0x2ae3   : > { %10386 = vmatpush3.msra.mxu1 %v12116_v4 }
0x2ae4   : > { %10387 = vmatprep.subr.mxu1 %v11492_v1 }
0x2ae5   : > { %10388 = vmatpush3.msra.mxu1 %v12120_v27 }
0x2ae6   : > { %10389 = vmatprep.subr.mxu1 %v11492_v1 }
0x2ae7   : > { %10390 = vmatpush3.msra.mxu1 %v12138_v5 }
0x2ae8   : > { %10405 = vmatprep.subr.mxu1 %v11492_v1 }
0x2ba0   : > { %v4300_v49 = vpop.f32.mrf.mxu1 }
0x2ba1   : > { %v4301_v50 = vadd.f32 %v12162_v48, %v4300_v49 }
0x2ba2   : > { %v10371_v51 = vpop.f32.mrf.mxu1 }
0x2ba3   : > { %11208 = vtanh.f32 %v4301_v50 }
0x2bb0   : > { %v11209_v52 = vpop.eup %11208 }
0x2bb1   : > { %v4309_v10 = vadd.f32 %v11209_v52, %v4308_v6 }
0x2bb3   : > { %v4311_v54 = vmul.f32 %v12536_v53, %v4309_v10 }
0x2bb5   : > { %v12540_v55 = vadd.f32 %v4311_v54, %v12463_v19 }
0x2bb7   : > { %10381 = vmatmul.mubr.msk.f32.vlgmr.msra.gmra.mxu0 %vm246_vm1, %v12540_v55 }
0x2bb8   : > { %10395 = vmatpush3.msra.mxu0 %v12110_v26  ;;  %10402 = vmatprep.mubr.msk.f32.mxu0 %vm11493_vm0, %v11492_v1 }
0x2bb9   : > { %10396 = vmatprep.subr.mxu0 %v11492_v1 }
0x2bba   : > { %10397 = vmatpush3.msra.mxu0 %v12116_v4 }
0x2bbb   : > { %10398 = vmatprep.subr.mxu0 %v11492_v1 }
0x2bbc   : > { %10399 = vmatpush3.msra.mxu0 %v12120_v27  ;;  %v12564_v27 = vld [vmem:[#allocation7 + $0x10] sm:$0xff] }
0x2bbd   : > { %10400 = vmatprep.subr.mxu0 %v11492_v1 }
0x2bbe   : > { %10401 = vmatpush3.msra.mxu0 %v12138_v5 }
0x2bbf   : > { %10416 = vmatprep.subr.mxu0 %v11492_v1 }
0x2c77   : > { %v4382_v56 = vpop.f32.mrf.mxu0 }
0x2c78   : > { %v4383_v26 = vadd.f32 %v12162_v48, %v4382_v56 }
0x2c79   : > { %v10382_v57 = vpop.f32.mrf.mxu0 }
0x2c7a   : > { %11210 = vtanh.f32 %v4383_v26 }
0x2c87   : > { %v11211_v58 = vpop.eup %11210 }
0x2c88   : > { %v4387_v14 = vmul.f32 %v11211_v58, %v12488_v0 }
0x2c8a   : > { %v4388_v4 = vadd.f32 %v4387_v14, %v12540_v55 }
0x2c8c   : > { %10392 = vmatmul.mubr.msk.f32.vlgmr.msra.gmra.mxu1 %vm246_vm1, %v4388_v4 }
0x2c8d   : > { %10406 = vmatpush3.msra.mxu1 %v12558_v59  ;;  %10413 = vmatprep.mubr.msk.f32.mxu1 %vm11493_vm0, %v11492_v1 }
0x2c8e   : > { %10407 = vmatprep.subr.mxu1 %v11492_v1 }
0x2c8f   : > { %10408 = vmatpush3.msra.mxu1 %v12564_v27 }
0x2c90   : > { %10409 = vmatprep.subr.mxu1 %v11492_v1 }
0x2c91   : > { %10410 = vmatpush3.msra.mxu1 %v12568_v60 }
0x2c92   : > { %10411 = vmatprep.subr.mxu1 %v11492_v1 }
0x2c93   : > { %10412 = vmatpush3.msra.mxu1 %v12138_v5 }
0x2c94   : > { %10427 = vmatprep.subr.mxu1 %v11492_v1 }
0x2d4c   : > { %v4458_v61 = vpop.f32.mrf.mxu1 }
0x2d4d   : > { %v4459_v62 = vadd.f32 %v12162_v48, %v4458_v61 }
0x2d4e   : > { %v10393_v24 = vpop.f32.mrf.mxu1 }
0x2d4f   : > { %11212 = vtanh.f32 %v4459_v62 }
0x2d5c   : > { %v11213_v18 = vpop.eup %11212 }
0x2d5d   : > { %v4463_v63 = vmul.f32 %v11213_v18, %v12488_v0  ;;  %v4615_v9 = vmul.f32 2.0, %v11213_v18 }
0x2d5f   : > { %v4464_v3 = vadd.f32 %v4463_v63, %v12540_v55  ;;  %v4616_v35 = vadd.f32 %v11211_v58, %v4615_v9 }
0x2d61   : > { %10403 = vmatmul.mubr.msk.f32.vlgmr.msra.gmra.mxu0 %vm246_vm1, %v4464_v3 }
0x2d62   : > { %10417 = vmatpush3.msra.mxu0 %v12558_v59  ;;  %10424 = vmatprep.mubr.msk.f32.mxu0 %vm11493_vm0, %v11492_v1 }
0x2d63   : > { %10418 = vmatprep.subr.mxu0 %v11492_v1 }
0x2d64   : > { %10419 = vmatpush3.msra.mxu0 %v12564_v27 }
0x2d65   : > { %10420 = vmatprep.subr.mxu0 %v11492_v1 }
0x2d66   : > { %10421 = vmatpush3.msra.mxu0 %v12568_v60 }
0x2d67   : > { %10422 = vmatprep.subr.mxu0 %v11492_v1 }
0x2d68   : > { %10423 = vmatpush3.msra.mxu0 %v12138_v5  ;;  %v12600_v5 = vld [vmem:[#allocation7] sm:$0xff] }
0x2d69   : > { %10438 = vmatprep.subr.mxu0 %v11492_v1 }
0x2e21   : > { %v4534_v7 = vpop.f32.mrf.mxu0 }
0x2e22   : > { %v4535_v8 = vadd.f32 %v12162_v48, %v4534_v7 }
0x2e23   : > { %v10404_v29 = vpop.f32.mrf.mxu0 }
0x2e24   : > { %11214 = vtanh.f32 %v4535_v8 }
0x2e31   : > { %v11215_v11 = vpop.eup %11214 }
0x2e32   : > { %v4617_v12 = vmul.f32 2.0, %v11215_v11  ;;  %v4539_v34 = vmul.f32 %v11215_v11, %v12519_v40 }
0x2e34   : > { %v4540_v13 = vadd.f32 %v4539_v34, %v12540_v55  ;;  %v4618_v15 = vadd.f32 %v4617_v12, %v4616_v35 }
0x2e36   : > { %10414 = vmatmul.mubr.msk.f32.vlgmr.msra.gmra.mxu1 %vm246_vm1, %v4540_v13 }
0x2e37   : > { %10428 = vmatpush3.msra.mxu1 %v12558_v59  ;;  %10435 = vmatprep.mubr.msk.f32.mxu1 %vm11493_vm0, %v11492_v1 }
0x2e38   : > { %10429 = vmatprep.subr.mxu1 %v11492_v1 }
0x2e39   : > { %10430 = vmatpush3.msra.mxu1 %v12564_v27 }
0x2e3a   : > { %10431 = vmatprep.subr.mxu1 %v11492_v1 }
0x2e3b   : > { %10432 = vmatpush3.msra.mxu1 %v12568_v60 }
0x2e3c   : > { %10433 = vmatprep.subr.mxu1 %v11492_v1 }
0x2e3d   : > { %10434 = vmatpush3.msra.mxu1 %v12600_v5 }
0x2e3e   : > { %10449 = vmatprep.subr.mxu1 %v11492_v1 }
0x2ef6   : > { %v4610_v41 = vpop.f32.mrf.mxu1 }
0x2ef7   : > { %v4611_v16 = vadd.f32 %v12162_v48, %v4610_v41 }
0x2ef8   : > { %v10415_v17 = vpop.f32.mrf.mxu1 }
0x2ef9   : > { %11216 = vtanh.f32 %v4611_v16 }
0x2f06   : > { %v11217_v19 = vpop.eup %11216 }
0x2f07   : > { %v4619_v47 = vadd.f32 %v11217_v19, %v4618_v15 }
0x2f09   : > { %v4620_v20 = vmul.f32 %v4619_v47, %v12536_v53 }
0x2f0b   : > { %v12607_v21 = vadd.f32 %v4620_v20, %v12540_v55 }
0x2f0d   : > { %10425 = vmatmul.mubr.msk.f32.vlgmr.msra.gmra.mxu0 %vm246_vm1, %v12607_v21 }
0x2f0e   : > { %10439 = vmatpush3.msra.mxu0 %v12558_v59  ;;  %10446 = vmatprep.mubr.msk.f32.mxu0 %vm11493_vm0, %v11492_v1 }
0x2f0f   : > { %10440 = vmatprep.subr.mxu0 %v11492_v1 }
0x2f10   : > { %10441 = vmatpush3.msra.mxu0 %v12564_v27 }
0x2f11   : > { %10442 = vmatprep.subr.mxu0 %v11492_v1 }
0x2f12   : > { %10443 = vmatpush3.msra.mxu0 %v12568_v60 }
0x2f13   : > { %10444 = vmatprep.subr.mxu0 %v11492_v1 }
0x2f14   : > { %10445 = vmatpush3.msra.mxu0 %v12600_v5 }
0x2f15   : > { %10460 = vmatprep.subr.mxu0 %v11492_v1 }
0x2fcd   : > { %v4691_v48 = vpop.f32.mrf.mxu0 }
0x2fce   : > { %v4692_v23 = vadd.f32 %v12624_v22, %v4691_v48 }
0x2fcf   : > { %v10426_v25 = vpop.f32.mrf.mxu0 }
0x2fd0   : > { %11218 = vtanh.f32 %v4692_v23 }
0x2fdd   : > { %v11219_v2 = vpop.eup %11218 }
0x2fde   : > { %v4696_v28 = vmul.f32 %v11219_v2, %v12488_v0 }
0x2fe0   : > { %v4697_v30 = vadd.f32 %v4696_v28, %v12607_v21 }
0x2fe2   : > { %10436 = vmatmul.mubr.msk.f32.vlgmr.msra.gmra.mxu1 %vm246_vm1, %v4697_v30 }
0x2fe3   : > { %10450 = vmatpush3.msra.mxu1 %v12558_v59  ;;  %10457 = vmatprep.mubr.msk.f32.mxu1 %vm11493_vm0, %v11492_v1 }
0x2fe4   : > { %10451 = vmatprep.subr.mxu1 %v11492_v1 }
0x2fe5   : > { %10452 = vmatpush3.msra.mxu1 %v12564_v27 }
0x2fe6   : > { %10453 = vmatprep.subr.mxu1 %v11492_v1 }
0x2fe7   : > { %10454 = vmatpush3.msra.mxu1 %v12568_v60 }
0x2fe8   : > { %10455 = vmatprep.subr.mxu1 %v11492_v1 }
0x2fe9   : > { %10456 = vmatpush3.msra.mxu1 %v12600_v5 }
0x2fea   : > { %10471 = vmatprep.subr.mxu1 %v11492_v1 }
0x30a2   : > { %v4767_v31 = vpop.f32.mrf.mxu1 }
0x30a3   : > { %v4768_v32 = vadd.f32 %v12624_v22, %v4767_v31 }
0x30a4   : > { %v10437_v33 = vpop.f32.mrf.mxu1 }
0x30a5   : > { %11220 = vtanh.f32 %v4768_v32 }
0x30b2   : > { %v11221_v36 = vpop.eup %11220 }
0x30b3   : > { %v4772_v37 = vmul.f32 %v11221_v36, %v12488_v0  ;;  %v4924_v44 = vmul.f32 2.0, %v11221_v36 }
0x30b5   : > { %v4773_v38 = vadd.f32 %v4772_v37, %v12607_v21  ;;  %v4925_v46 = vadd.f32 %v11219_v2, %v4924_v44  ;;  %v12755_v2 = vstv %s5246_s25  ;;  %s8996_s25 = sshll.u32 %s11662_s21, 4  ;;  %s13477_s25 = int_to_ptr.vmem [resolvable:$true] %s8996_s25 }
0x30b7   : > { %10447 = vmatmul.mubr.msk.f32.vlgmr.msra.gmra.mxu0 %vm246_vm1, %v4773_v38 }
0x30b8   : > { %10461 = vmatpush3.msra.mxu0 %v12558_v59  ;;  %10468 = vmatprep.mubr.msk.f32.mxu0 %vm11493_vm0, %v11492_v1 }
0x30b9   : > { %10462 = vmatprep.subr.mxu0 %v11492_v1 }
0x30ba   : > { %10463 = vmatpush3.msra.mxu0 %v12564_v27 }
0x30bb   : > { %10464 = vmatprep.subr.mxu0 %v11492_v1 }
0x30bc   : > { %10465 = vmatpush3.msra.mxu0 %v12568_v60 }
0x30bd   : > { %10466 = vmatprep.subr.mxu0 %v11492_v1 }
0x30be   : > { %10467 = vmatpush3.msra.mxu0 %v12600_v5 }
0x30bf   : > { %10482 = vmatprep.subr.mxu0 %v11492_v1 }
0x3177   : > { %v4843_v39 = vpop.f32.mrf.mxu0 }
0x3178   : > { %v4844_v42 = vadd.f32 %v12624_v22, %v4843_v39 }
0x3179   : > { %v10448_v43 = vpop.f32.mrf.mxu0 }
0x317a   : > { %11222 = vtanh.f32 %v4844_v42 }
0x3187   : > { %v11223_v45 = vpop.eup %11222 }
0x3188   : > { %v4926_v6 = vmul.f32 2.0, %v11223_v45  ;;  %v4848_v49 = vmul.f32 %v11223_v45, %v12519_v40 }
0x318a   : > { %v4849_v50 = vadd.f32 %v4848_v49, %v12607_v21  ;;  %v4927_v51 = vadd.f32 %v4926_v6, %v4925_v46  ;;  %v12786_v46 = vstv %s12752_s23  ;;  %s9237_s23 = sshll.u32 %s11544_s19, 7  ;;  %s11494_s19 = smov [#allocation9]  }
0x318b   : > { %s13475_s9 = scalar_lea.hbm %s13526_s4, %s9237_s23 }
0x318c   : > { %10458 = vmatmul.mubr.msk.f32.vlgmr.msra.gmra.mxu1 %vm246_vm1, %v4849_v50 }
0x318d   : > { %10472 = vmatpush3.msra.mxu1 %v12558_v59  ;;  %10479 = vmatprep.mubr.msk.f32.mxu1 %vm11493_vm0, %v11492_v1 }
0x318e   : > { %10473 = vmatprep.subr.mxu1 %v11492_v1 }
0x318f   : > { %10474 = vmatpush3.msra.mxu1 %v12564_v27 }
0x3190   : > { %10475 = vmatprep.subr.mxu1 %v11492_v1 }
0x3191   : > { %10476 = vmatpush3.msra.mxu1 %v12568_v60 }
0x3192   : > { %10477 = vmatprep.subr.mxu1 %v11492_v1 }
0x3193   : > { %10478 = vmatpush3.msra.mxu1 %v12600_v5 }
0x3194   : > { %10493 = vmatprep.subr.mxu1 %v11492_v1 }
0x324c   : > { %v4919_v52 = vpop.f32.mrf.mxu1 }
0x324d   : > { %v4920_v10 = vadd.f32 %v12624_v22, %v4919_v52 }
0x324e   : > { %v10459_v54 = vpop.f32.mrf.mxu1 }
0x324f   : > { %11224 = vtanh.f32 %v4920_v10 }
0x325c   : > { %v11225_v55 = vpop.eup %11224 }
0x325d   : > { %v4928_v56 = vadd.f32 %v11225_v55, %v4927_v51 }
0x325f   : > { %v4929_v26 = vmul.f32 %v4928_v56, %v12536_v53 }
0x3261   : > { %v12671_v57 = vadd.f32 %v4929_v26, %v12607_v21 }
0x3263   : > { %10469 = vmatmul.mubr.msk.f32.vlgmr.msra.gmra.mxu0 %vm246_vm1, %v12671_v57 }
0x3264   : > { %10483 = vmatpush3.msra.mxu0 %v12558_v59  ;;  %10490 = vmatprep.mubr.msk.f32.mxu0 %vm11493_vm0, %v11492_v1 }
0x3265   : > { %10484 = vmatprep.subr.mxu0 %v11492_v1 }
0x3266   : > { %10485 = vmatpush3.msra.mxu0 %v12564_v27 }
0x3267   : > { %10486 = vmatprep.subr.mxu0 %v11492_v1 }
0x3268   : > { %10487 = vmatpush3.msra.mxu0 %v12568_v60 }
0x3269   : > { %10488 = vmatprep.subr.mxu0 %v11492_v1 }
0x326a   : > { %10489 = vmatpush3.msra.mxu0 %v12600_v5 }
0x326b   : > { %10504 = vmatprep.subr.mxu0 %v11492_v1 }
0x3323   : > { %v5000_v58 = vpop.f32.mrf.mxu0 }
0x3324   : > { %v5001_v14 = vadd.f32 %v12624_v22, %v5000_v58 }
0x3325   : > { %v10470_v4 = vpop.f32.mrf.mxu0 }
0x3326   : > { %11226 = vtanh.f32 %v5001_v14 }
0x3333   : > { %v11227_v61 = vpop.eup %11226 }
0x3334   : > { %v5005_v62 = vmul.f32 %v11227_v61, %v12488_v0 }
0x3336   : > { %v5006_v24 = vadd.f32 %v5005_v62, %v12671_v57 }
0x3338   : > { %10480 = vmatmul.mubr.msk.f32.vlgmr.msra.gmra.mxu1 %vm246_vm1, %v5006_v24 }
0x3339   : > { %10494 = vmatpush3.msra.mxu1 %v12558_v59  ;;  %10501 = vmatprep.mubr.msk.f32.mxu1 %vm11493_vm0, %v11492_v1 }
0x333a   : > { %10495 = vmatprep.subr.mxu1 %v11492_v1 }
0x333b   : > { %10496 = vmatpush3.msra.mxu1 %v12564_v27 }
0x333c   : > { %10497 = vmatprep.subr.mxu1 %v11492_v1 }
0x333d   : > { %10498 = vmatpush3.msra.mxu1 %v12568_v60 }
0x333e   : > { %10499 = vmatprep.subr.mxu1 %v11492_v1 }
0x333f   : > { %10500 = vmatpush3.msra.mxu1 %v12600_v5 }
0x3340   : > { %10515 = vmatprep.subr.mxu1 %v11492_v1 }
0x33f8   : > { %v5076_v18 = vpop.f32.mrf.mxu1 }
0x33f9   : > { %v5077_v63 = vadd.f32 %v12624_v22, %v5076_v18 }
0x33fa   : > { %v10481_v3 = vpop.f32.mrf.mxu1 }
0x33fb   : > { %11228 = vtanh.f32 %v5077_v63 }
0x3408   : > { %v11229_v7 = vpop.eup %11228 }
0x3409   : > { %v5081_v8 = vmul.f32 %v11229_v7, %v12488_v0  ;;  %v5233_v35 = vmul.f32 2.0, %v11229_v7 }
0x340b   : > { %v5082_v29 = vadd.f32 %v5081_v8, %v12671_v57  ;;  %v5234_v34 = vadd.f32 %v11227_v61, %v5233_v35 }
0x340d   : > { %10491 = vmatmul.mubr.msk.f32.vlgmr.msra.gmra.mxu0 %vm246_vm1, %v5082_v29 }
0x340e   : > { %10505 = vmatpush3.msra.mxu0 %v12558_v59  ;;  %10512 = vmatprep.mubr.msk.f32.mxu0 %vm11493_vm0, %v11492_v1 }
0x340f   : > { %10506 = vmatprep.subr.mxu0 %v11492_v1 }
0x3410   : > { %10507 = vmatpush3.msra.mxu0 %v12564_v27 }
0x3411   : > { %10508 = vmatprep.subr.mxu0 %v11492_v1 }
0x3412   : > { %10509 = vmatpush3.msra.mxu0 %v12568_v60 }
0x3413   : > { %10510 = vmatprep.subr.mxu0 %v11492_v1 }
0x3414   : > { %10511 = vmatpush3.msra.mxu0 %v12600_v5 }
0x3415   : > { %10526 = vmatprep.subr.mxu0 %v11492_v1 }
0x34cd   : > { %v5152_v0 = vpop.f32.mrf.mxu0 }
0x34ce   : > { %v5153_v9 = vadd.f32 %v12624_v22, %v5152_v0 }
0x34cf   : > { %v10492_v11 = vpop.f32.mrf.mxu0 }
0x34d0   : > { %11230 = vtanh.f32 %v5153_v9 }
0x34dd   : > { %v11231_v12 = vpop.eup %11230 }
0x34de   : > { %v5235_v13 = vmul.f32 2.0, %v11231_v12  ;;  %v5157_v15 = vmul.f32 %v11231_v12, %v12519_v40 }
0x34e0   : > { %v5158_v41 = vadd.f32 %v5157_v15, %v12671_v57  ;;  %v5236_v16 = vadd.f32 %v5235_v13, %v5234_v34 }
0x34e2   : > { %10502 = vmatmul.mubr.msk.f32.vlgmr.msra.gmra.mxu1 %vm246_vm1, %v5158_v41 }
0x34e3   : > { %10516 = vmatpush3.msra.mxu1 %v12558_v59  ;;  %10523 = vmatprep.mubr.msk.f32.mxu1 %vm11493_vm0, %v11492_v1 }
0x34e4   : > { %10517 = vmatprep.subr.mxu1 %v11492_v1 }
0x34e5   : > { %10518 = vmatpush3.msra.mxu1 %v12564_v27 }
0x34e6   : > { %10519 = vmatprep.subr.mxu1 %v11492_v1 }
0x34e7   : > { %10520 = vmatpush3.msra.mxu1 %v12568_v60 }
0x34e8   : > { %10521 = vmatprep.subr.mxu1 %v11492_v1 }
0x34e9   : > { %10522 = vmatpush3.msra.mxu1 %v12600_v5 }
0x34ea   : > { %10537 = vmatprep.subr.mxu1 %v11492_v1 }
0x35a2   : > { %v5228_v40 = vpop.f32.mrf.mxu1 }
0x35a3   : > { %v5229_v17 = vadd.f32 %v12624_v22, %v5228_v40 }
0x35a4   : > { %v10503_v19 = vpop.f32.mrf.mxu1 }
0x35a5   : > { %11232 = vtanh.f32 %v5229_v17 }
0x35b2   : > { %v11233_v47 = vpop.eup %11232 }
0x35b3   : > { %v5237_v20 = vadd.f32 %v11233_v47, %v5236_v16 }
0x35b5   : > { %v5238_v21 = vmul.f32 %v5237_v20, %v12536_v53 }
0x35b7   : > { %v12730_v48 = vadd.f32 %v5238_v21, %v12671_v57  ;;  %v12803_v57 = vstv %s5247_s30 }
0x35b9   : > { %9178 = vst.msk [vmem:[%s11662_s21 + $0x20] sm:$0xff] %vm246_vm1, %v12730_v48  ;;  %10513 = vmatmul.mubr.msk.f32.vlgmr.msra.gmra.mxu0 %vm246_vm1, %v12730_v48 }
0x35ba   : > { %10527 = vmatpush3.msra.mxu0 %v12558_v59  ;;  %10534 = vmatprep.mubr.msk.f32.mxu0 %vm11493_vm0, %v11492_v1 }
0x35bb   : > { %10528 = vmatprep.subr.mxu0 %v11492_v1 }
0x35bc   : > { %10529 = vmatpush3.msra.mxu0 %v12564_v27 }
0x35bd   : > { %10530 = vmatprep.subr.mxu0 %v11492_v1 }
0x35be   : > { %10531 = vmatpush3.msra.mxu0 %v12568_v60 }
0x35bf   : > { %10532 = vmatprep.subr.mxu0 %v11492_v1 }
0x35c0   : > { %10533 = vmatpush3.msra.mxu0 %v12600_v5 }
0x35c1   : > { %10548 = vmatprep.subr.mxu0 %v11492_v1 }
0x3679   : > { %v5317_v53 = vpop.f32.mrf.mxu0 }
0x367a   : > { %v5318_v23 = vadd.f32 %v12624_v22, %v5317_v53 }
0x367b   : > { %v10514_v25 = vpop.f32.mrf.mxu0 }
0x367c   : > { %11234 = vtanh.f32 %v5318_v23 }
0x3689   : > { %v11235_v28 = vpop.eup %11234 }
0x368a   : > { %v5323_v30 = vmul.f32 %v11235_v28, %v12755_v2 }
0x368c   : > { %v5324_v31 = vadd.f32 %v5323_v30, %v12730_v48 }
0x368e   : > { %10524 = vmatmul.mubr.msk.f32.vlgmr.msra.gmra.mxu1 %vm246_vm1, %v5324_v31 }
0x368f   : > { %10538 = vmatpush3.msra.mxu1 %v12558_v59  ;;  %10545 = vmatprep.mubr.msk.f32.mxu1 %vm11493_vm0, %v11492_v1 }
0x3690   : > { %10539 = vmatprep.subr.mxu1 %v11492_v1 }
0x3691   : > { %10540 = vmatpush3.msra.mxu1 %v12564_v27 }
0x3692   : > { %10541 = vmatprep.subr.mxu1 %v11492_v1 }
0x3693   : > { %10542 = vmatpush3.msra.mxu1 %v12568_v60 }
0x3694   : > { %10543 = vmatprep.subr.mxu1 %v11492_v1 }
0x3695   : > { %10544 = vmatpush3.msra.mxu1 %v12600_v5 }
0x3696   : > { %10559 = vmatprep.subr.mxu1 %v11492_v1 }
0x374e   : > { %v5394_v32 = vpop.f32.mrf.mxu1 }
0x374f   : > { %v5395_v33 = vadd.f32 %v12624_v22, %v5394_v32 }
0x3750   : > { %v10525_v36 = vpop.f32.mrf.mxu1 }
0x3751   : > { %11236 = vtanh.f32 %v5395_v33 }
0x375e   : > { %v11237_v37 = vpop.eup %11236 }
0x375f   : > { %v5399_v38 = vmul.f32 %v11237_v37, %v12755_v2  ;;  %v5552_v45 = vmul.f32 2.0, %v11237_v37 }
0x3761   : > { %v5400_v39 = vadd.f32 %v5399_v38, %v12730_v48  ;;  %v5553_v49 = vadd.f32 %v11235_v28, %v5552_v45 }
0x3763   : > { %10535 = vmatmul.mubr.msk.f32.vlgmr.msra.gmra.mxu0 %vm246_vm1, %v5400_v39 }
0x3764   : > { %10549 = vmatpush3.msra.mxu0 %v12558_v59  ;;  %10556 = vmatprep.mubr.msk.f32.mxu0 %vm11493_vm0, %v11492_v1 }
0x3765   : > { %10550 = vmatprep.subr.mxu0 %v11492_v1 }
0x3766   : > { %10551 = vmatpush3.msra.mxu0 %v12564_v27 }
0x3767   : > { %10552 = vmatprep.subr.mxu0 %v11492_v1 }
0x3768   : > { %10553 = vmatpush3.msra.mxu0 %v12568_v60 }
0x3769   : > { %10554 = vmatprep.subr.mxu0 %v11492_v1 }
0x376a   : > { %10555 = vmatpush3.msra.mxu0 %v12600_v5 }
0x376b   : > { %10570 = vmatprep.subr.mxu0 %v11492_v1 }
0x3823   : > { %v5470_v42 = vpop.f32.mrf.mxu0 }
0x3824   : > { %v5471_v43 = vadd.f32 %v12624_v22, %v5470_v42 }
0x3825   : > { %v10536_v44 = vpop.f32.mrf.mxu0 }
0x3826   : > { %11238 = vtanh.f32 %v5471_v43 }
0x3833   : > { %v11239_v6 = vpop.eup %11238 }
0x3834   : > { %v5554_v50 = vmul.f32 2.0, %v11239_v6  ;;  %v5476_v51 = vmul.f32 %v11239_v6, %v12786_v46 }
0x3836   : > { %v5477_v52 = vadd.f32 %v5476_v51, %v12730_v48  ;;  %v5555_v10 = vadd.f32 %v5554_v50, %v5553_v49 }
0x3838   : > { %10546 = vmatmul.mubr.msk.f32.vlgmr.msra.gmra.mxu1 %vm246_vm1, %v5477_v52 }
0x3839   : > { %10560 = vmatpush3.msra.mxu1 %v12558_v59  ;;  %10567 = vmatprep.mubr.msk.f32.mxu1 %vm11493_vm0, %v11492_v1 }
0x383a   : > { %10561 = vmatprep.subr.mxu1 %v11492_v1 }
0x383b   : > { %10562 = vmatpush3.msra.mxu1 %v12564_v27 }
0x383c   : > { %10563 = vmatprep.subr.mxu1 %v11492_v1 }
0x383d   : > { %10564 = vmatpush3.msra.mxu1 %v12568_v60 }
0x383e   : > { %10565 = vmatprep.subr.mxu1 %v11492_v1 }
0x383f   : > { %10566 = vmatpush3.msra.mxu1 %v12600_v5 }
0x3840   : > { %10581 = vmatprep.subr.mxu1 %v11492_v1 }
0x38f8   : > { %v5547_v54 = vpop.f32.mrf.mxu1 }
0x38f9   : > { %v5548_v55 = vadd.f32 %v12624_v22, %v5547_v54 }
0x38fa   : > { %v10547_v56 = vpop.f32.mrf.mxu1 }
0x38fb   : > { %11240 = vtanh.f32 %v5548_v55 }
0x3908   : > { %v11241_v26 = vpop.eup %11240 }
0x3909   : > { %v5556_v58 = vadd.f32 %v11241_v26, %v5555_v10 }
0x390b   : > { %v5558_v14 = vmul.f32 %v12803_v57, %v5556_v58 }
0x390d   : > { %v12807_v4 = vadd.f32 %v5558_v14, %v12730_v48 }
0x390f   : > { %10557 = vmatmul.mubr.msk.f32.vlgmr.msra.gmra.mxu0 %vm246_vm1, %v12807_v4 }
0x3910   : > { %10571 = vmatpush3.msra.mxu0 %v12558_v59  ;;  %10578 = vmatprep.mubr.msk.f32.mxu0 %vm11493_vm0, %v11492_v1 }
0x3911   : > { %10572 = vmatprep.subr.mxu0 %v11492_v1 }
0x3912   : > { %10573 = vmatpush3.msra.mxu0 %v12564_v27 }
0x3913   : > { %10574 = vmatprep.subr.mxu0 %v11492_v1 }
0x3914   : > { %10575 = vmatpush3.msra.mxu0 %v12568_v60 }
0x3915   : > { %10576 = vmatprep.subr.mxu0 %v11492_v1 }
0x3916   : > { %10577 = vmatpush3.msra.mxu0 %v12600_v5 }
0x3917   : > { %10592 = vmatprep.subr.mxu0 %v11492_v1 }
0x39cf   : > { %v5629_v61 = vpop.f32.mrf.mxu0 }
0x39d0   : > { %v5630_v62 = vadd.f32 %v12624_v22, %v5629_v61 }
0x39d1   : > { %v10558_v24 = vpop.f32.mrf.mxu0 }
0x39d2   : > { %11242 = vtanh.f32 %v5630_v62 }
0x39df   : > { %v11243_v18 = vpop.eup %11242 }
0x39e0   : > { %v5634_v63 = vmul.f32 %v11243_v18, %v12755_v2 }
0x39e2   : > { %v5635_v3 = vadd.f32 %v5634_v63, %v12807_v4 }
0x39e4   : > { %10568 = vmatmul.mubr.msk.f32.vlgmr.msra.gmra.mxu1 %vm246_vm1, %v5635_v3 }
0x39e5   : > { %10582 = vmatpush3.msra.mxu1 %v12558_v59  ;;  %10589 = vmatprep.mubr.msk.f32.mxu1 %vm11493_vm0, %v11492_v1 }
0x39e6   : > { %10583 = vmatprep.subr.mxu1 %v11492_v1 }
0x39e7   : > { %10584 = vmatpush3.msra.mxu1 %v12564_v27 }
0x39e8   : > { %10585 = vmatprep.subr.mxu1 %v11492_v1 }
0x39e9   : > { %10586 = vmatpush3.msra.mxu1 %v12568_v60 }
0x39ea   : > { %10587 = vmatprep.subr.mxu1 %v11492_v1 }
0x39eb   : > { %10588 = vmatpush3.msra.mxu1 %v12600_v5 }
0x39ec   : > { %10603 = vmatprep.subr.mxu1 %v11492_v1 }
0x3aa4   : > { %v5705_v7 = vpop.f32.mrf.mxu1 }
0x3aa5   : > { %v5706_v8 = vadd.f32 %v12624_v22, %v5705_v7 }
0x3aa6   : > { %v10569_v29 = vpop.f32.mrf.mxu1 }
0x3aa7   : > { %11244 = vtanh.f32 %v5706_v8 }
0x3ab4   : > { %v11245_v0 = vpop.eup %11244 }
0x3ab5   : > { %v5710_v9 = vmul.f32 %v11245_v0, %v12755_v2  ;;  %v5862_v13 = vmul.f32 2.0, %v11245_v0 }
0x3ab7   : > { %v5711_v11 = vadd.f32 %v5710_v9, %v12807_v4  ;;  %v5863_v41 = vadd.f32 %v11243_v18, %v5862_v13 }
0x3ab9   : > { %10579 = vmatmul.mubr.msk.f32.vlgmr.msra.gmra.mxu0 %vm246_vm1, %v5711_v11 }
0x3aba   : > { %10593 = vmatpush3.msra.mxu0 %v12558_v59  ;;  %10600 = vmatprep.mubr.msk.f32.mxu0 %vm11493_vm0, %v11492_v1 }
0x3abb   : > { %10594 = vmatprep.subr.mxu0 %v11492_v1 }
0x3abc   : > { %10595 = vmatpush3.msra.mxu0 %v12564_v27 }
0x3abd   : > { %10596 = vmatprep.subr.mxu0 %v11492_v1 }
0x3abe   : > { %10597 = vmatpush3.msra.mxu0 %v12568_v60 }
0x3abf   : > { %10598 = vmatprep.subr.mxu0 %v11492_v1 }
0x3ac0   : > { %10599 = vmatpush3.msra.mxu0 %v12600_v5 }
0x3ac1   : > { %10614 = vmatprep.subr.mxu0 %v11492_v1 }
0x3b79   : > { %v5781_v35 = vpop.f32.mrf.mxu0 }
0x3b7a   : > { %v5782_v12 = vadd.f32 %v12624_v22, %v5781_v35 }
0x3b7b   : > { %v10580_v34 = vpop.f32.mrf.mxu0 }
0x3b7c   : > { %11246 = vtanh.f32 %v5782_v12 }
0x3b89   : > { %v11247_v15 = vpop.eup %11246 }
0x3b8a   : > { %v5864_v16 = vmul.f32 2.0, %v11247_v15  ;;  %v5786_v40 = vmul.f32 %v11247_v15, %v12786_v46 }
0x3b8c   : > { %v5787_v17 = vadd.f32 %v5786_v40, %v12807_v4  ;;  %v5865_v19 = vadd.f32 %v5864_v16, %v5863_v41 }
0x3b8e   : > { %10590 = vmatmul.mubr.msk.f32.vlgmr.msra.gmra.mxu1 %vm246_vm1, %v5787_v17 }
0x3b8f   : > { %10604 = vmatpush3.msra.mxu1 %v12558_v59  ;;  %10611 = vmatprep.mubr.msk.f32.mxu1 %vm11493_vm0, %v11492_v1 }
0x3b90   : > { %10605 = vmatprep.subr.mxu1 %v11492_v1 }
0x3b91   : > { %10606 = vmatpush3.msra.mxu1 %v12564_v27 }
0x3b92   : > { %10607 = vmatprep.subr.mxu1 %v11492_v1 }
0x3b93   : > { %10608 = vmatpush3.msra.mxu1 %v12568_v60 }
0x3b94   : > { %10609 = vmatprep.subr.mxu1 %v11492_v1 }
0x3b95   : > { %10610 = vmatpush3.msra.mxu1 %v12600_v5 }
0x3b96   : > { %10625 = vmatprep.subr.mxu1 %v11492_v1 }
0x3c4e   : > { %v5857_v47 = vpop.f32.mrf.mxu1 }
0x3c4f   : > { %v5858_v20 = vadd.f32 %v12624_v22, %v5857_v47 }
0x3c50   : > { %v10591_v21 = vpop.f32.mrf.mxu1 }
0x3c51   : > { %11248 = vtanh.f32 %v5858_v20 }
0x3c5e   : > { %v11249_v48 = vpop.eup %11248 }
0x3c5f   : > { %v5866_v53 = vadd.f32 %v11249_v48, %v5865_v19 }
0x3c61   : > { %v5867_v23 = vmul.f32 %v5866_v53, %v12803_v57 }
0x3c63   : > { %v12866_v25 = vadd.f32 %v5867_v23, %v12807_v4 }
0x3c65   : > { %10601 = vmatmul.mubr.msk.f32.vlgmr.msra.gmra.mxu0 %vm246_vm1, %v12866_v25 }
0x3c66   : > { %10615 = vmatpush3.msra.mxu0 %v12558_v59  ;;  %10622 = vmatprep.mubr.msk.f32.mxu0 %vm11493_vm0, %v11492_v1 }
0x3c67   : > { %10616 = vmatprep.subr.mxu0 %v11492_v1 }
0x3c68   : > { %10617 = vmatpush3.msra.mxu0 %v12564_v27 }
0x3c69   : > { %10618 = vmatprep.subr.mxu0 %v11492_v1 }
0x3c6a   : > { %10619 = vmatpush3.msra.mxu0 %v12568_v60 }
0x3c6b   : > { %10620 = vmatprep.subr.mxu0 %v11492_v1 }
0x3c6c   : > { %10621 = vmatpush3.msra.mxu0 %v12600_v5 }
0x3c6d   : > { %10636 = vmatprep.subr.mxu0 %v11492_v1 }
0x3d25   : > { %v5938_v28 = vpop.f32.mrf.mxu0 }
0x3d26   : > { %v5939_v30 = vadd.f32 %v12624_v22, %v5938_v28 }
0x3d27   : > { %v10602_v31 = vpop.f32.mrf.mxu0 }
0x3d28   : > { %11250 = vtanh.f32 %v5939_v30 }
0x3d35   : > { %v11251_v32 = vpop.eup %11250 }
0x3d36   : > { %v5943_v33 = vmul.f32 %v11251_v32, %v12755_v2 }
0x3d38   : > { %v5944_v36 = vadd.f32 %v5943_v33, %v12866_v25  ;;  %v13014_v33 = vld [vmem:[#allocation7 + $0x18] sm:$0xff] }
0x3d3a   : > { %10612 = vmatmul.mubr.msk.f32.vlgmr.msra.gmra.mxu1 %vm246_vm1, %v5944_v36  ;;  %v13020_v36 = vld [vmem:[#allocation7 + $0x10] sm:$0xff] }
0x3d3b   : > { %10626 = vmatpush3.msra.mxu1 %v12558_v59  ;;  %10633 = vmatprep.mubr.msk.f32.mxu1 %vm11493_vm0, %v11492_v1 }
0x3d3c   : > { %10627 = vmatprep.subr.mxu1 %v11492_v1 }
0x3d3d   : > { %10628 = vmatpush3.msra.mxu1 %v12564_v27 }
0x3d3e   : > { %10629 = vmatprep.subr.mxu1 %v11492_v1 }
0x3d3f   : > { %10630 = vmatpush3.msra.mxu1 %v12568_v60 }
0x3d40   : > { %10631 = vmatprep.subr.mxu1 %v11492_v1 }
0x3d41   : > { %10632 = vmatpush3.msra.mxu1 %v12600_v5 }
0x3d42   : > { %10647 = vmatprep.subr.mxu1 %v11492_v1 }
0x3dfa   : > { %v6014_v37 = vpop.f32.mrf.mxu1 }
0x3dfb   : > { %v6015_v38 = vadd.f32 %v12624_v22, %v6014_v37  ;;  %v13024_v37 = vld [vmem:[#allocation7 + $0x8] sm:$0xff] }
0x3dfc   : > { %v10613_v39 = vpop.f32.mrf.mxu1 }
0x3dfd   : > { %11252 = vtanh.f32 %v6015_v38 }
0x3e0a   : > { %v11253_v42 = vpop.eup %11252 }
0x3e0b   : > { %v6019_v43 = vmul.f32 %v11253_v42, %v12755_v2  ;;  %v6171_v50 = vmul.f32 2.0, %v11253_v42 }
0x3e0d   : > { %v6020_v44 = vadd.f32 %v6019_v43, %v12866_v25  ;;  %v6172_v52 = vadd.f32 %v11251_v32, %v6171_v50 }
0x3e0f   : > { %10623 = vmatmul.mubr.msk.f32.vlgmr.msra.gmra.mxu0 %vm246_vm1, %v6020_v44 }
0x3e10   : > { %10637 = vmatpush3.msra.mxu0 %v12558_v59  ;;  %10644 = vmatprep.mubr.msk.f32.mxu0 %vm11493_vm0, %v11492_v1 }
0x3e11   : > { %10638 = vmatprep.subr.mxu0 %v11492_v1 }
0x3e12   : > { %10639 = vmatpush3.msra.mxu0 %v12564_v27 }
0x3e13   : > { %10640 = vmatprep.subr.mxu0 %v11492_v1 }
0x3e14   : > { %10641 = vmatpush3.msra.mxu0 %v12568_v60 }
0x3e15   : > { %10642 = vmatprep.subr.mxu0 %v11492_v1 }
0x3e16   : > { %10643 = vmatpush3.msra.mxu0 %v12600_v5 }
0x3e17   : > { %10658 = vmatprep.subr.mxu0 %v11492_v1 }
0x3ecf   : > { %v6090_v45 = vpop.f32.mrf.mxu0 }
0x3ed0   : > { %v6091_v6 = vadd.f32 %v12624_v22, %v6090_v45 }
0x3ed1   : > { %v10624_v49 = vpop.f32.mrf.mxu0 }
0x3ed2   : > { %11254 = vtanh.f32 %v6091_v6 }
0x3edf   : > { %v11255_v51 = vpop.eup %11254 }
0x3ee0   : > { %v6173_v10 = vmul.f32 2.0, %v11255_v51  ;;  %v6095_v54 = vmul.f32 %v11255_v51, %v12786_v46 }
0x3ee2   : > { %v6096_v55 = vadd.f32 %v6095_v54, %v12866_v25  ;;  %v6174_v56 = vadd.f32 %v6173_v10, %v6172_v52  ;;  %v13046_v52 = vstv %s13006_s10  ;;  %s8984_s10 = scalar_lea.sflag [#allocation4], %s11639_s28 }
0x3ee4   : > { %10634 = vmatmul.mubr.msk.f32.vlgmr.msra.gmra.mxu1 %vm246_vm1, %v6096_v55 }
0x3ee5   : > { %10648 = vmatpush3.msra.mxu1 %v12558_v59  ;;  %10655 = vmatprep.mubr.msk.f32.mxu1 %vm11493_vm0, %v11492_v1 }
0x3ee6   : > { %10649 = vmatprep.subr.mxu1 %v11492_v1 }
0x3ee7   : > { %10650 = vmatpush3.msra.mxu1 %v12564_v27 }
0x3ee8   : > { %10651 = vmatprep.subr.mxu1 %v11492_v1 }
0x3ee9   : > { %10652 = vmatpush3.msra.mxu1 %v12568_v60 }
0x3eea   : > { %10653 = vmatprep.subr.mxu1 %v11492_v1 }
0x3eeb   : > { %10654 = vmatpush3.msra.mxu1 %v12600_v5 }
0x3eec   : > { %10669 = vmatprep.subr.mxu1 %v11492_v1 }
0x3fa4   : > { %v6166_v26 = vpop.f32.mrf.mxu1 }
0x3fa5   : > { %v6167_v58 = vadd.f32 %v12624_v22, %v6166_v26 }
0x3fa6   : > { %v10635_v14 = vpop.f32.mrf.mxu1 }
0x3fa7   : > { %11256 = vtanh.f32 %v6167_v58 }
0x3fb4   : > { %v11257_v4 = vpop.eup %11256 }
0x3fb5   : > { %v6175_v61 = vadd.f32 %v11257_v4, %v6174_v56 }
0x3fb7   : > { %v6176_v62 = vmul.f32 %v6175_v61, %v12803_v57 }
0x3fb9   : > { %v12925_v24 = vadd.f32 %v6176_v62, %v12866_v25 }
0x3fbb   : > { %10645 = vmatmul.mubr.msk.f32.vlgmr.msra.gmra.mxu0 %vm246_vm1, %v12925_v24 }
0x3fbc   : > { %10659 = vmatpush3.msra.mxu0 %v12558_v59  ;;  %10666 = vmatprep.mubr.msk.f32.mxu0 %vm11493_vm0, %v11492_v1 }
0x3fbd   : > { %10660 = vmatprep.subr.mxu0 %v11492_v1 }
0x3fbe   : > { %10661 = vmatpush3.msra.mxu0 %v12564_v27 }
0x3fbf   : > { %10662 = vmatprep.subr.mxu0 %v11492_v1 }
0x3fc0   : > { %10663 = vmatpush3.msra.mxu0 %v12568_v60 }
0x3fc1   : > { %10664 = vmatprep.subr.mxu0 %v11492_v1 }
0x3fc2   : > { %10665 = vmatpush3.msra.mxu0 %v12600_v5 }
0x3fc3   : > { %10680 = vmatprep.subr.mxu0 %v11492_v1 }
0x407b   : > { %v6247_v18 = vpop.f32.mrf.mxu0 }
0x407c   : > { %v6248_v63 = vadd.f32 %v12624_v22, %v6247_v18 }
0x407d   : > { %v10646_v3 = vpop.f32.mrf.mxu0 }
0x407e   : > { %11258 = vtanh.f32 %v6248_v63 }
0x408b   : > { %v11259_v7 = vpop.eup %11258 }
0x408c   : > { %v6252_v8 = vmul.f32 %v11259_v7, %v12755_v2 }
0x408e   : > { %v6253_v29 = vadd.f32 %v6252_v8, %v12925_v24 }
0x4090   : > { %10656 = vmatmul.mubr.msk.f32.vlgmr.msra.gmra.mxu1 %vm246_vm1, %v6253_v29 }
0x4091   : > { %10670 = vmatpush3.msra.mxu1 %v12558_v59  ;;  %10677 = vmatprep.mubr.msk.f32.mxu1 %vm11493_vm0, %v11492_v1 }
0x4092   : > { %10671 = vmatprep.subr.mxu1 %v11492_v1 }
0x4093   : > { %10672 = vmatpush3.msra.mxu1 %v12564_v27 }
0x4094   : > { %10673 = vmatprep.subr.mxu1 %v11492_v1 }
0x4095   : > { %10674 = vmatpush3.msra.mxu1 %v12568_v60 }
0x4096   : > { %10675 = vmatprep.subr.mxu1 %v11492_v1 }
0x4097   : > { %10676 = vmatpush3.msra.mxu1 %v12600_v5 }
0x4098   : > { %10691 = vmatprep.subr.mxu1 %v11492_v1 }
0x4150   : > { %v6323_v0 = vpop.f32.mrf.mxu1 }
0x4151   : > { %v6324_v9 = vadd.f32 %v12624_v22, %v6323_v0 }
0x4152   : > { %v10657_v11 = vpop.f32.mrf.mxu1 }
0x4153   : > { %11260 = vtanh.f32 %v6324_v9 }
0x4160   : > { %v11261_v35 = vpop.eup %11260 }
0x4161   : > { %v6328_v12 = vmul.f32 %v11261_v35, %v12755_v2  ;;  %v6480_v41 = vmul.f32 2.0, %v11261_v35 }
0x4163   : > { %v6329_v34 = vadd.f32 %v6328_v12, %v12925_v24  ;;  %v6481_v40 = vadd.f32 %v11259_v7, %v6480_v41  ;;  %v13086_v7 = vld [vmem:[%s13525_s3] ss:$0 sm:$0xff] }
0x4165   : > { %10667 = vmatmul.mubr.msk.f32.vlgmr.msra.gmra.mxu0 %vm246_vm1, %v6329_v34 }
0x4166   : > { %10681 = vmatpush3.msra.mxu0 %v12558_v59  ;;  %10688 = vmatprep.mubr.msk.f32.mxu0 %vm11493_vm0, %v11492_v1 }
0x4167   : > { %10682 = vmatprep.subr.mxu0 %v11492_v1 }
0x4168   : > { %10683 = vmatpush3.msra.mxu0 %v12564_v27 }
0x4169   : > { %10684 = vmatprep.subr.mxu0 %v11492_v1 }
0x416a   : > { %10685 = vmatpush3.msra.mxu0 %v12568_v60 }
0x416b   : > { %10686 = vmatprep.subr.mxu0 %v11492_v1 }
0x416c   : > { %10687 = vmatpush3.msra.mxu0 %v12600_v5 }
0x416d   : > { %10702 = vmatprep.subr.mxu0 %v11492_v1 }
0x4225   : > { %v6399_v2 = vpop.f32.mrf.mxu0 }
0x4226   : > { %v6400_v13 = vadd.f32 %v12624_v22, %v6399_v2 }
0x4227   : > { %v10668_v15 = vpop.f32.mrf.mxu0 }
0x4228   : > { %11262 = vtanh.f32 %v6400_v13 }
0x4235   : > { %v11263_v16 = vpop.eup %11262 }
0x4236   : > { %v6482_v17 = vmul.f32 2.0, %v11263_v16  ;;  %v6404_v19 = vmul.f32 %v11263_v16, %v12786_v46 }
0x4238   : > { %v6405_v47 = vadd.f32 %v6404_v19, %v12925_v24  ;;  %v6483_v20 = vadd.f32 %v6482_v17, %v6481_v40 }
0x423a   : > { %10678 = vmatmul.mubr.msk.f32.vlgmr.msra.gmra.mxu1 %vm246_vm1, %v6405_v47 }
0x423b   : > { %10692 = vmatpush3.msra.mxu1 %v12558_v59  ;;  %10699 = vmatprep.mubr.msk.f32.mxu1 %vm11493_vm0, %v11492_v1 }
0x423c   : > { %10693 = vmatprep.subr.mxu1 %v11492_v1 }
0x423d   : > { %10694 = vmatpush3.msra.mxu1 %v12564_v27 }
0x423e   : > { %10695 = vmatprep.subr.mxu1 %v11492_v1 }
0x423f   : > { %10696 = vmatpush3.msra.mxu1 %v12568_v60 }
0x4240   : > { %10697 = vmatprep.subr.mxu1 %v11492_v1 }
0x4241   : > { %10698 = vmatpush3.msra.mxu1 %v12600_v5 }
0x4242   : > { %10713 = vmatprep.subr.mxu1 %v11492_v1 }
0x42fa   : > { %v6475_v46 = vpop.f32.mrf.mxu1 }
0x42fb   : > { %v6476_v21 = vadd.f32 %v12624_v22, %v6475_v46 }
0x42fc   : > { %v10679_v48 = vpop.f32.mrf.mxu1 }
0x42fd   : > { %11264 = vtanh.f32 %v6476_v21 }
0x430a   : > { %v11265_v53 = vpop.eup %11264 }
0x430b   : > { %v6484_v23 = vadd.f32 %v11265_v53, %v6483_v20 }
0x430d   : > { %v6485_v25 = vmul.f32 %v6484_v23, %v12803_v57 }
0x430f   : > { %v12984_v28 = vadd.f32 %v6485_v25, %v12925_v24  ;;  %v13065_v24 = vstv %s6494_s20  ;;  %s11417_s20 = sshll.u32 %s11494_s19, 4  ;;  %s11418_s20 = int_to_ptr.vmem [resolvable:$false] %s11417_s20 }
0x4310   : > { %s11419_s24 = scalar_lea.vmem %s11418_s20, 2048  ;;  %p11420_p0 = scmp.lt.s32.totalorder %s13477_s25, %s11418_s20 }
0x4311   : > { %9197 = vst.msk [vmem:[%s11662_s21 + $0x28] sm:$0xff] %vm246_vm1, %v12984_v28  ;;  %10689 = vmatmul.mubr.msk.f32.vlgmr.msra.gmra.mxu0 %vm246_vm1, %v12984_v28 }
0x4312   : > { %10703 = vmatpush3.msra.mxu0 %v12558_v59  ;;  %10710 = vmatprep.mubr.msk.f32.mxu0 %vm11493_vm0, %v11492_v1 }
0x4313   : > { %10704 = vmatprep.subr.mxu0 %v11492_v1 }
0x4314   : > { %10705 = vmatpush3.msra.mxu0 %v12564_v27  ;;  %v13009_v27 = vstv %s6493_s11  ;;  %s11413_s11 = scalar_lea.vmem %s13477_s25, 1024 }
0x4315   : > { %10706 = vmatprep.subr.mxu0 %v11492_v1  ;;  %p11414_p3 = scmp.ne.s32.totalorder %s13477_s25, %s11413_s11  ;;  %p11421_p5 = scmp.lt.s32.totalorder %s11419_s24, %s11413_s11 }
0x4316   : > { %10707 = vmatpush3.msra.mxu0 %v12568_v60 }
0x4317   : > { %10708 = vmatprep.subr.mxu0 %v11492_v1  ;;  %p11415_p7 = pnand %p11414_p3, %p13543_p11  ;;  %p11422_p2 = por %p11421_p5, %p11420_p0 }
0x4318   : > { %10709 = vmatpush3.msra.mxu0 %v12600_v5 }
0x4319   : > { %10724 = vmatprep.subr.mxu0 %v11492_v1  ;;  %p11416_p13 = pneg %p11415_p7 }
0x431b   : > { %p11423_p10 = pnand %p11422_p2, %p11416_p13 }
0x43d1   : > { %v6564_v59 = vpop.f32.mrf.mxu0 }
0x43d2   : > { %v6565_v57 = vadd.f32 %v12624_v22, %v6564_v59 }
0x43d3   : > { %v10690_v30 = vpop.f32.mrf.mxu0 }
0x43d4   : > { %11266 = vtanh.f32 %v6565_v57 }
0x43e1   : > { %v11267_v60 = vpop.eup %11266 }
0x43e2   : > { %v6570_v31 = vmul.f32 %v11267_v60, %v13009_v27 }
0x43e4   : > { %v6571_v32 = vadd.f32 %v6570_v31, %v12984_v28 }
0x43e6   : > { %10700 = vmatmul.mubr.msk.f32.vlgmr.msra.gmra.mxu1 %vm246_vm1, %v6571_v32 }
0x43e7   : > { %10714 = vmatpush3.msra.mxu1 %v13014_v33  ;;  %10721 = vmatprep.mubr.msk.f32.mxu1 %vm11493_vm0, %v11492_v1 }
0x43e8   : > { %10715 = vmatprep.subr.mxu1 %v11492_v1 }
0x43e9   : > { %10716 = vmatpush3.msra.mxu1 %v13020_v36 }
0x43ea   : > { %10717 = vmatprep.subr.mxu1 %v11492_v1 }
0x43eb   : > { %10718 = vmatpush3.msra.mxu1 %v13024_v37 }
0x43ec   : > { %10719 = vmatprep.subr.mxu1 %v11492_v1 }
0x43ed   : > { %10720 = vmatpush3.msra.mxu1 %v12600_v5 }
0x43ee   : > { %10735 = vmatprep.subr.mxu1 %v11492_v1 }
0x44a6   : > { %v6641_v38 = vpop.f32.mrf.mxu1 }
0x44a7   : > { %v6642_v39 = vadd.f32 %v12624_v22, %v6641_v38 }
0x44a8   : > { %v10701_v42 = vpop.f32.mrf.mxu1 }
0x44a9   : > { %11268 = vtanh.f32 %v6642_v39 }
0x44b6   : > { %v11269_v43 = vpop.eup %11268 }
0x44b7   : > { %v6646_v44 = vmul.f32 %v11269_v43, %v13009_v27  ;;  %v6799_v51 = vmul.f32 2.0, %v11269_v43 }
0x44b9   : > { %v6647_v45 = vadd.f32 %v6646_v44, %v12984_v28  ;;  %v6800_v54 = vadd.f32 %v11267_v60, %v6799_v51 }
0x44bb   : > { %10711 = vmatmul.mubr.msk.f32.vlgmr.msra.gmra.mxu0 %vm246_vm1, %v6647_v45 }
0x44bc   : > { %10725 = vmatpush3.msra.mxu0 %v13014_v33  ;;  %10732 = vmatprep.mubr.msk.f32.mxu0 %vm11493_vm0, %v11492_v1 }
0x44bd   : > { %10726 = vmatprep.subr.mxu0 %v11492_v1 }
0x44be   : > { %10727 = vmatpush3.msra.mxu0 %v13020_v36 }
0x44bf   : > { %10728 = vmatprep.subr.mxu0 %v11492_v1 }
0x44c0   : > { %10729 = vmatpush3.msra.mxu0 %v13024_v37 }
0x44c1   : > { %10730 = vmatprep.subr.mxu0 %v11492_v1 }
0x44c2   : > { %10731 = vmatpush3.msra.mxu0 %v12600_v5  ;;  %v13059_v5 = vld [vmem:[#allocation7] sm:$0xff] }
0x44c3   : > { %10746 = vmatprep.subr.mxu0 %v11492_v1 }
0x457b   : > { %v6717_v6 = vpop.f32.mrf.mxu0 }
0x457c   : > { %v6718_v49 = vadd.f32 %v12624_v22, %v6717_v6 }
0x457d   : > { %v10712_v50 = vpop.f32.mrf.mxu0 }
0x457e   : > { %11270 = vtanh.f32 %v6718_v49 }
0x458b   : > { %v11271_v10 = vpop.eup %11270 }
0x458c   : > { %v6801_v55 = vmul.f32 2.0, %v11271_v10  ;;  %v6723_v56 = vmul.f32 %v11271_v10, %v13046_v52 }
0x458e   : > { %v6724_v26 = vadd.f32 %v6723_v56, %v12984_v28  ;;  %v6802_v58 = vadd.f32 %v6801_v55, %v6800_v54 }
0x4590   : > { %10722 = vmatmul.mubr.msk.f32.vlgmr.msra.gmra.mxu1 %vm246_vm1, %v6724_v26 }
0x4591   : > { %10736 = vmatpush3.msra.mxu1 %v13014_v33  ;;  %10743 = vmatprep.mubr.msk.f32.mxu1 %vm11493_vm0, %v11492_v1 }
0x4592   : > { %10737 = vmatprep.subr.mxu1 %v11492_v1 }
0x4593   : > { %10738 = vmatpush3.msra.mxu1 %v13020_v36 }
0x4594   : > { %10739 = vmatprep.subr.mxu1 %v11492_v1 }
0x4595   : > { %10740 = vmatpush3.msra.mxu1 %v13024_v37 }
0x4596   : > { %10741 = vmatprep.subr.mxu1 %v11492_v1 }
0x4597   : > { %10742 = vmatpush3.msra.mxu1 %v13059_v5 }
0x4598   : > { %10757 = vmatprep.subr.mxu1 %v11492_v1 }
0x4650   : > { %v6794_v14 = vpop.f32.mrf.mxu1 }
0x4651   : > { %v6795_v4 = vadd.f32 %v12624_v22, %v6794_v14 }
0x4652   : > { %v10723_v61 = vpop.f32.mrf.mxu1 }
0x4653   : > { %11272 = vtanh.f32 %v6795_v4 }
0x4660   : > { %v11273_v62 = vpop.eup %11272 }
0x4661   : > { %v6803_v18 = vadd.f32 %v11273_v62, %v6802_v58 }
0x4663   : > { %v6805_v63 = vmul.f32 %v13065_v24, %v6803_v18 }
0x4665   : > { %v13069_v3 = vadd.f32 %v6805_v63, %v12984_v28 }
0x4667   : > { %10733 = vmatmul.mubr.msk.f32.vlgmr.msra.gmra.mxu0 %vm246_vm1, %v13069_v3 }
0x4668   : > { %10747 = vmatpush3.msra.mxu0 %v13014_v33  ;;  %10754 = vmatprep.mubr.msk.f32.mxu0 %vm11493_vm0, %v11492_v1 }
0x4669   : > { %10748 = vmatprep.subr.mxu0 %v11492_v1 }
0x466a   : > { %10749 = vmatpush3.msra.mxu0 %v13020_v36 }
0x466b   : > { %10750 = vmatprep.subr.mxu0 %v11492_v1 }
0x466c   : > { %10751 = vmatpush3.msra.mxu0 %v13024_v37 }
0x466d   : > { %10752 = vmatprep.subr.mxu0 %v11492_v1 }
0x466e   : > { %10753 = vmatpush3.msra.mxu0 %v13059_v5 }
0x466f   : > { %10768 = vmatprep.subr.mxu0 %v11492_v1 }
0x4727   : > { %v6876_v22 = vpop.f32.mrf.mxu0 }
0x4728   : > { %v6877_v8 = vadd.f32 %v13086_v7, %v6876_v22 }
0x4729   : > { %v10734_v29 = vpop.f32.mrf.mxu0 }
0x472a   : > { %11274 = vtanh.f32 %v6877_v8 }
0x4737   : > { %v11275_v0 = vpop.eup %11274 }
0x4738   : > { %v6881_v9 = vmul.f32 %v11275_v0, %v13009_v27 }
0x473a   : > { %v6882_v11 = vadd.f32 %v6881_v9, %v13069_v3 }
0x473c   : > { %10744 = vmatmul.mubr.msk.f32.vlgmr.msra.gmra.mxu1 %vm246_vm1, %v6882_v11 }
0x473d   : > { %10758 = vmatpush3.msra.mxu1 %v13014_v33  ;;  %10765 = vmatprep.mubr.msk.f32.mxu1 %vm11493_vm0, %v11492_v1 }
0x473e   : > { %10759 = vmatprep.subr.mxu1 %v11492_v1 }
0x473f   : > { %10760 = vmatpush3.msra.mxu1 %v13020_v36 }
0x4740   : > { %10761 = vmatprep.subr.mxu1 %v11492_v1 }
0x4741   : > { %10762 = vmatpush3.msra.mxu1 %v13024_v37 }
0x4742   : > { %10763 = vmatprep.subr.mxu1 %v11492_v1 }
0x4743   : > { %10764 = vmatpush3.msra.mxu1 %v13059_v5 }
0x4744   : > { %10779 = vmatprep.subr.mxu1 %v11492_v1 }
0x47fc   : > { %v6952_v35 = vpop.f32.mrf.mxu1 }
0x47fd   : > { %v6953_v12 = vadd.f32 %v13086_v7, %v6952_v35 }
0x47fe   : > { %v10745_v34 = vpop.f32.mrf.mxu1 }
0x47ff   : > { %11276 = vtanh.f32 %v6953_v12 }
0x480c   : > { %v11277_v2 = vpop.eup %11276 }
0x480d   : > { %v6957_v13 = vmul.f32 %v11277_v2, %v13009_v27  ;;  %v7109_v17 = vmul.f32 2.0, %v11277_v2 }
0x480f   : > { %v6958_v15 = vadd.f32 %v6957_v13, %v13069_v3  ;;  %v7110_v47 = vadd.f32 %v11275_v0, %v7109_v17 }
0x4811   : > { %10755 = vmatmul.mubr.msk.f32.vlgmr.msra.gmra.mxu0 %vm246_vm1, %v6958_v15 }
0x4812   : > { %10769 = vmatpush3.msra.mxu0 %v13014_v33  ;;  %10776 = vmatprep.mubr.msk.f32.mxu0 %vm11493_vm0, %v11492_v1 }
0x4813   : > { %10770 = vmatprep.subr.mxu0 %v11492_v1 }
0x4814   : > { %10771 = vmatpush3.msra.mxu0 %v13020_v36 }
0x4815   : > { %10772 = vmatprep.subr.mxu0 %v11492_v1 }
0x4816   : > { %10773 = vmatpush3.msra.mxu0 %v13024_v37 }
0x4817   : > { %10774 = vmatprep.subr.mxu0 %v11492_v1 }
0x4818   : > { %10775 = vmatpush3.msra.mxu0 %v13059_v5 }
0x4819   : > { %10790 = vmatprep.subr.mxu0 %v11492_v1 }
0x48d1   : > { %v7028_v41 = vpop.f32.mrf.mxu0 }
0x48d2   : > { %v7029_v16 = vadd.f32 %v13086_v7, %v7028_v41 }
0x48d3   : > { %v10756_v40 = vpop.f32.mrf.mxu0 }
0x48d4   : > { %11278 = vtanh.f32 %v7029_v16 }
0x48e1   : > { %v11279_v19 = vpop.eup %11278 }
0x48e2   : > { %v7111_v20 = vmul.f32 2.0, %v11279_v19  ;;  %v7033_v46 = vmul.f32 %v11279_v19, %v13046_v52 }
0x48e4   : > { %v7034_v21 = vadd.f32 %v7033_v46, %v13069_v3  ;;  %v7112_v48 = vadd.f32 %v7111_v20, %v7110_v47 }
0x48e6   : > { %10766 = vmatmul.mubr.msk.f32.vlgmr.msra.gmra.mxu1 %vm246_vm1, %v7034_v21 }
0x48e7   : > { %10780 = vmatpush3.msra.mxu1 %v13014_v33  ;;  %10787 = vmatprep.mubr.msk.f32.mxu1 %vm11493_vm0, %v11492_v1 }
0x48e8   : > { %10781 = vmatprep.subr.mxu1 %v11492_v1 }
0x48e9   : > { %10782 = vmatpush3.msra.mxu1 %v13020_v36 }
0x48ea   : > { %10783 = vmatprep.subr.mxu1 %v11492_v1 }
0x48eb   : > { %10784 = vmatpush3.msra.mxu1 %v13024_v37 }
0x48ec   : > { %10785 = vmatprep.subr.mxu1 %v11492_v1 }
0x48ed   : > { %10786 = vmatpush3.msra.mxu1 %v13059_v5 }
0x48ee   : > { %10801 = vmatprep.subr.mxu1 %v11492_v1 }
0x49a6   : > { %v7104_v53 = vpop.f32.mrf.mxu1 }
0x49a7   : > { %v7105_v23 = vadd.f32 %v13086_v7, %v7104_v53 }
0x49a8   : > { %v10767_v25 = vpop.f32.mrf.mxu1 }
0x49a9   : > { %11280 = vtanh.f32 %v7105_v23 }
0x49b6   : > { %v11281_v28 = vpop.eup %11280 }
0x49b7   : > { %v7113_v59 = vadd.f32 %v11281_v28, %v7112_v48 }
0x49b9   : > { %v7114_v57 = vmul.f32 %v7113_v59, %v13065_v24 }
0x49bb   : > { %v13133_v30 = vadd.f32 %v7114_v57, %v13069_v3 }
0x49bd   : > { %10777 = vmatmul.mubr.msk.f32.vlgmr.msra.gmra.mxu0 %vm246_vm1, %v13133_v30 }
0x49be   : > { %10791 = vmatpush3.msra.mxu0 %v13014_v33  ;;  %10798 = vmatprep.mubr.msk.f32.mxu0 %vm11493_vm0, %v11492_v1 }
0x49bf   : > { %10792 = vmatprep.subr.mxu0 %v11492_v1 }
0x49c0   : > { %10793 = vmatpush3.msra.mxu0 %v13020_v36 }
0x49c1   : > { %10794 = vmatprep.subr.mxu0 %v11492_v1 }
0x49c2   : > { %10795 = vmatpush3.msra.mxu0 %v13024_v37 }
0x49c3   : > { %10796 = vmatprep.subr.mxu0 %v11492_v1 }
0x49c4   : > { %10797 = vmatpush3.msra.mxu0 %v13059_v5 }
0x49c5   : > { %10812 = vmatprep.subr.mxu0 %v11492_v1 }
0x4a7d   : > { %v7185_v60 = vpop.f32.mrf.mxu0 }
0x4a7e   : > { %v7186_v31 = vadd.f32 %v13086_v7, %v7185_v60 }
0x4a7f   : > { %v10778_v32 = vpop.f32.mrf.mxu0 }
0x4a80   : > { %11282 = vtanh.f32 %v7186_v31 }
0x4a8d   : > { %v11283_v38 = vpop.eup %11282 }
0x4a8e   : > { %v7190_v39 = vmul.f32 %v11283_v38, %v13009_v27 }
0x4a90   : > { %v7191_v42 = vadd.f32 %v7190_v39, %v13133_v30 }
0x4a92   : > { %10788 = vmatmul.mubr.msk.f32.vlgmr.msra.gmra.mxu1 %vm246_vm1, %v7191_v42 }
0x4a93   : > { %10802 = vmatpush3.msra.mxu1 %v13014_v33  ;;  %10809 = vmatprep.mubr.msk.f32.mxu1 %vm11493_vm0, %v11492_v1 }
0x4a94   : > { %10803 = vmatprep.subr.mxu1 %v11492_v1 }
0x4a95   : > { %10804 = vmatpush3.msra.mxu1 %v13020_v36 }
0x4a96   : > { %10805 = vmatprep.subr.mxu1 %v11492_v1 }
0x4a97   : > { %10806 = vmatpush3.msra.mxu1 %v13024_v37 }
0x4a98   : > { %10807 = vmatprep.subr.mxu1 %v11492_v1 }
0x4a99   : > { %10808 = vmatpush3.msra.mxu1 %v13059_v5 }
0x4a9a   : > { %10823 = vmatprep.subr.mxu1 %v11492_v1 }
0x4b52   : > { %v7261_v43 = vpop.f32.mrf.mxu1 }
0x4b53   : > { %v7262_v44 = vadd.f32 %v13086_v7, %v7261_v43 }
0x4b54   : > { %v10789_v45 = vpop.f32.mrf.mxu1 }
0x4b55   : > { %11284 = vtanh.f32 %v7262_v44 }
0x4b62   : > { %v11285_v6 = vpop.eup %11284 }
0x4b63   : > { %v7266_v49 = vmul.f32 %v11285_v6, %v13009_v27  ;;  %v7418_v55 = vmul.f32 2.0, %v11285_v6 }
0x4b65   : > { %v7267_v50 = vadd.f32 %v7266_v49, %v13133_v30  ;;  %v7419_v26 = vadd.f32 %v11283_v38, %v7418_v55  ;;  %v13273_v38 = vstv %s7740_s8 }
0x4b67   : > { %10799 = vmatmul.mubr.msk.f32.vlgmr.msra.gmra.mxu0 %vm246_vm1, %v7267_v50 }
0x4b68   : > { %10813 = vmatpush3.msra.mxu0 %v13014_v33  ;;  %10820 = vmatprep.mubr.msk.f32.mxu0 %vm11493_vm0, %v11492_v1 }
0x4b69   : > { %10814 = vmatprep.subr.mxu0 %v11492_v1 }
0x4b6a   : > { %10815 = vmatpush3.msra.mxu0 %v13020_v36 }
0x4b6b   : > { %10816 = vmatprep.subr.mxu0 %v11492_v1 }
0x4b6c   : > { %10817 = vmatpush3.msra.mxu0 %v13024_v37 }
0x4b6d   : > { %10818 = vmatprep.subr.mxu0 %v11492_v1 }
0x4b6e   : > { %10819 = vmatpush3.msra.mxu0 %v13059_v5 }
0x4b6f   : > { %10834 = vmatprep.subr.mxu0 %v11492_v1 }
0x4c27   : > { %v7337_v51 = vpop.f32.mrf.mxu0 }
0x4c28   : > { %v7338_v10 = vadd.f32 %v13086_v7, %v7337_v51 }
0x4c29   : > { %v10800_v54 = vpop.f32.mrf.mxu0 }
0x4c2a   : > { %11286 = vtanh.f32 %v7338_v10 }
0x4c37   : > { %v11287_v56 = vpop.eup %11286 }
0x4c38   : > { %v7420_v58 = vmul.f32 2.0, %v11287_v56  ;;  %v7342_v14 = vmul.f32 %v11287_v56, %v13046_v52 }
0x4c3a   : > { %v7343_v4 = vadd.f32 %v7342_v14, %v13133_v30  ;;  %v7421_v61 = vadd.f32 %v7420_v58, %v7419_v26  ;;  %v13304_v26 = vstv %s13270_s7 }
0x4c3c   : > { %10810 = vmatmul.mubr.msk.f32.vlgmr.msra.gmra.mxu1 %vm246_vm1, %v7343_v4 }
0x4c3d   : > { %10824 = vmatpush3.msra.mxu1 %v13014_v33  ;;  %10831 = vmatprep.mubr.msk.f32.mxu1 %vm11493_vm0, %v11492_v1 }
0x4c3e   : > { %10825 = vmatprep.subr.mxu1 %v11492_v1 }
0x4c3f   : > { %10826 = vmatpush3.msra.mxu1 %v13020_v36 }
0x4c40   : > { %10827 = vmatprep.subr.mxu1 %v11492_v1 }
0x4c41   : > { %10828 = vmatpush3.msra.mxu1 %v13024_v37 }
0x4c42   : > { %10829 = vmatprep.subr.mxu1 %v11492_v1 }
0x4c43   : > { %10830 = vmatpush3.msra.mxu1 %v13059_v5 }
0x4c44   : > { %10845 = vmatprep.subr.mxu1 %v11492_v1 }
0x4cfc   : > { %v7413_v62 = vpop.f32.mrf.mxu1 }
0x4cfd   : > { %v7414_v18 = vadd.f32 %v13086_v7, %v7413_v62 }
0x4cfe   : > { %v10811_v63 = vpop.f32.mrf.mxu1 }
0x4cff   : > { %11288 = vtanh.f32 %v7414_v18 }
0x4d0c   : > { %v11289_v3 = vpop.eup %11288 }
0x4d0d   : > { %v7422_v22 = vadd.f32 %v11289_v3, %v7421_v61 }
0x4d0f   : > { %v7423_v8 = vmul.f32 %v7422_v22, %v13065_v24 }
0x4d11   : > { %v13192_v29 = vadd.f32 %v7423_v8, %v13133_v30 }
0x4d13   : > { %10821 = vmatmul.mubr.msk.f32.vlgmr.msra.gmra.mxu0 %vm246_vm1, %v13192_v29 }
0x4d14   : > { %10835 = vmatpush3.msra.mxu0 %v13014_v33  ;;  %10842 = vmatprep.mubr.msk.f32.mxu0 %vm11493_vm0, %v11492_v1 }
0x4d15   : > { %10836 = vmatprep.subr.mxu0 %v11492_v1 }
0x4d16   : > { %10837 = vmatpush3.msra.mxu0 %v13020_v36 }
0x4d17   : > { %10838 = vmatprep.subr.mxu0 %v11492_v1 }
0x4d18   : > { %10839 = vmatpush3.msra.mxu0 %v13024_v37 }
0x4d19   : > { %10840 = vmatprep.subr.mxu0 %v11492_v1 }
0x4d1a   : > { %10841 = vmatpush3.msra.mxu0 %v13059_v5 }
0x4d1b   : > { %10856 = vmatprep.subr.mxu0 %v11492_v1 }
0x4dd3   : > { %v7494_v0 = vpop.f32.mrf.mxu0 }
0x4dd4   : > { %v7495_v9 = vadd.f32 %v13086_v7, %v7494_v0 }
0x4dd5   : > { %v10822_v11 = vpop.f32.mrf.mxu0 }
0x4dd6   : > { %11290 = vtanh.f32 %v7495_v9 }
0x4de3   : > { %v11291_v35 = vpop.eup %11290 }
0x4de4   : > { %v7499_v12 = vmul.f32 %v11291_v35, %v13009_v27 }
0x4de6   : > { %v7500_v34 = vadd.f32 %v7499_v12, %v13192_v29 }
0x4de8   : > { %10832 = vmatmul.mubr.msk.f32.vlgmr.msra.gmra.mxu1 %vm246_vm1, %v7500_v34 }
0x4de9   : > { %10846 = vmatpush3.msra.mxu1 %v13014_v33  ;;  %10853 = vmatprep.mubr.msk.f32.mxu1 %vm11493_vm0, %v11492_v1 }
0x4dea   : > { %10847 = vmatprep.subr.mxu1 %v11492_v1 }
0x4deb   : > { %10848 = vmatpush3.msra.mxu1 %v13020_v36 }
0x4dec   : > { %10849 = vmatprep.subr.mxu1 %v11492_v1 }
0x4ded   : > { %10850 = vmatpush3.msra.mxu1 %v13024_v37 }
0x4dee   : > { %10851 = vmatprep.subr.mxu1 %v11492_v1 }
0x4def   : > { %10852 = vmatpush3.msra.mxu1 %v13059_v5 }
0x4df0   : > { %10867 = vmatprep.subr.mxu1 %v11492_v1 }
0x4ea8   : > { %v7570_v2 = vpop.f32.mrf.mxu1 }
0x4ea9   : > { %v7571_v13 = vadd.f32 %v13086_v7, %v7570_v2 }
0x4eaa   : > { %v10833_v15 = vpop.f32.mrf.mxu1 }
0x4eab   : > { %11292 = vtanh.f32 %v7571_v13 }
0x4eb8   : > { %v11293_v41 = vpop.eup %11292 }
0x4eb9   : > { %v7575_v16 = vmul.f32 %v11293_v41, %v13009_v27  ;;  %v7727_v47 = vmul.f32 2.0, %v11293_v41 }
0x4ebb   : > { %v7576_v40 = vadd.f32 %v7575_v16, %v13192_v29  ;;  %v7728_v46 = vadd.f32 %v11291_v35, %v7727_v47 }
0x4ebd   : > { %10843 = vmatmul.mubr.msk.f32.vlgmr.msra.gmra.mxu0 %vm246_vm1, %v7576_v40 }
0x4ebe   : > { %10857 = vmatpush3.msra.mxu0 %v13014_v33  ;;  %10864 = vmatprep.mubr.msk.f32.mxu0 %vm11493_vm0, %v11492_v1 }
0x4ebf   : > { %10858 = vmatprep.subr.mxu0 %v11492_v1 }
0x4ec0   : > { %10859 = vmatpush3.msra.mxu0 %v13020_v36 }
0x4ec1   : > { %10860 = vmatprep.subr.mxu0 %v11492_v1 }
0x4ec2   : > { %10861 = vmatpush3.msra.mxu0 %v13024_v37 }
0x4ec3   : > { %10862 = vmatprep.subr.mxu0 %v11492_v1 }
0x4ec4   : > { %10863 = vmatpush3.msra.mxu0 %v13059_v5 }
0x4ec5   : > { %10878 = vmatprep.subr.mxu0 %v11492_v1 }
0x4f7d   : > { %v7646_v27 = vpop.f32.mrf.mxu0 }
0x4f7e   : > { %v7647_v17 = vadd.f32 %v13086_v7, %v7646_v27 }
0x4f7f   : > { %v10844_v19 = vpop.f32.mrf.mxu0 }
0x4f80   : > { %11294 = vtanh.f32 %v7647_v17 }
0x4f8d   : > { %v11295_v20 = vpop.eup %11294 }
0x4f8e   : > { %v7729_v21 = vmul.f32 2.0, %v11295_v20  ;;  %v7651_v48 = vmul.f32 %v11295_v20, %v13046_v52 }
0x4f90   : > { %v7652_v53 = vadd.f32 %v7651_v48, %v13192_v29  ;;  %v7730_v23 = vadd.f32 %v7729_v21, %v7728_v46 }
0x4f92   : > { %10854 = vmatmul.mubr.msk.f32.vlgmr.msra.gmra.mxu1 %vm246_vm1, %v7652_v53 }
0x4f93   : > { %10868 = vmatpush3.msra.mxu1 %v13014_v33  ;;  %10875 = vmatprep.mubr.msk.f32.mxu1 %vm11493_vm0, %v11492_v1 }
0x4f94   : > { %10869 = vmatprep.subr.mxu1 %v11492_v1 }
0x4f95   : > { %10870 = vmatpush3.msra.mxu1 %v13020_v36 }
0x4f96   : > { %10871 = vmatprep.subr.mxu1 %v11492_v1 }
0x4f97   : > { %10872 = vmatpush3.msra.mxu1 %v13024_v37 }
0x4f98   : > { %10873 = vmatprep.subr.mxu1 %v11492_v1 }
0x4f99   : > { %10874 = vmatpush3.msra.mxu1 %v13059_v5 }
0x4f9a   : > { %10889 = vmatprep.subr.mxu1 %v11492_v1 }
0x5052   : > { %v7722_v52 = vpop.f32.mrf.mxu1 }
0x5053   : > { %v7723_v25 = vadd.f32 %v13086_v7, %v7722_v52 }
0x5054   : > { %v10855_v28 = vpop.f32.mrf.mxu1 }
0x5055   : > { %11296 = vtanh.f32 %v7723_v25 }
0x5062   : > { %v11297_v59 = vpop.eup %11296 }
0x5063   : > { %v7731_v57 = vadd.f32 %v11297_v59, %v7730_v23 }
0x5065   : > { %v7732_v30 = vmul.f32 %v7731_v57, %v13065_v24 }
0x5067   : > { %v13251_v60 = vadd.f32 %v7732_v30, %v13192_v29  ;;  %v13321_v29 = vstv %s7741_s5 }
0x5069   : > { %9216 = vst.msk [vmem:[%s11662_s21 + $0x30] sm:$0xff] %vm246_vm1, %v13251_v60  ;;  %10865 = vmatmul.mubr.msk.f32.vlgmr.msra.gmra.mxu0 %vm246_vm1, %v13251_v60 }
0x506a   : > { %10879 = vmatpush3.msra.mxu0 %v13014_v33  ;;  %10886 = vmatprep.mubr.msk.f32.mxu0 %vm11493_vm0, %v11492_v1 }
0x506b   : > { %10880 = vmatprep.subr.mxu0 %v11492_v1 }
0x506c   : > { %10881 = vmatpush3.msra.mxu0 %v13020_v36 }
0x506d   : > { %10882 = vmatprep.subr.mxu0 %v11492_v1 }
0x506e   : > { %10883 = vmatpush3.msra.mxu0 %v13024_v37 }
0x506f   : > { %10884 = vmatprep.subr.mxu0 %v11492_v1 }
0x5070   : > { %10885 = vmatpush3.msra.mxu0 %v13059_v5 }
0x5071   : > { %10900 = vmatprep.subr.mxu0 %v11492_v1 }
0x5129   : > { %v7811_v24 = vpop.f32.mrf.mxu0 }
0x512a   : > { %v7812_v31 = vadd.f32 %v13086_v7, %v7811_v24 }
0x512b   : > { %v10866_v32 = vpop.f32.mrf.mxu0 }
0x512c   : > { %11298 = vtanh.f32 %v7812_v31 }
0x5139   : > { %v11299_v39 = vpop.eup %11298 }
0x513a   : > { %v7817_v42 = vmul.f32 %v11299_v39, %v13273_v38 }
0x513c   : > { %v7818_v43 = vadd.f32 %v7817_v42, %v13251_v60 }
0x513e   : > { %10876 = vmatmul.mubr.msk.f32.vlgmr.msra.gmra.mxu1 %vm246_vm1, %v7818_v43 }
0x513f   : > { %10890 = vmatpush3.msra.mxu1 %v13014_v33  ;;  %10897 = vmatprep.mubr.msk.f32.mxu1 %vm11493_vm0, %v11492_v1 }
0x5140   : > { %10891 = vmatprep.subr.mxu1 %v11492_v1 }
0x5141   : > { %10892 = vmatpush3.msra.mxu1 %v13020_v36 }
0x5142   : > { %10893 = vmatprep.subr.mxu1 %v11492_v1 }
0x5143   : > { %10894 = vmatpush3.msra.mxu1 %v13024_v37 }
0x5144   : > { %10895 = vmatprep.subr.mxu1 %v11492_v1 }
0x5145   : > { %10896 = vmatpush3.msra.mxu1 %v13059_v5 }
0x5146   : > { %10911 = vmatprep.subr.mxu1 %v11492_v1 }
0x51fe   : > { %v7888_v44 = vpop.f32.mrf.mxu1 }
0x51ff   : > { %v7889_v45 = vadd.f32 %v13086_v7, %v7888_v44 }
0x5200   : > { %v10877_v6 = vpop.f32.mrf.mxu1 }
0x5201   : > { %11300 = vtanh.f32 %v7889_v45 }
0x520e   : > { %v11301_v49 = vpop.eup %11300 }
0x520f   : > { %v7893_v50 = vmul.f32 %v11301_v49, %v13273_v38  ;;  %v8046_v56 = vmul.f32 2.0, %v11301_v49 }
0x5211   : > { %v7894_v51 = vadd.f32 %v7893_v50, %v13251_v60  ;;  %v8047_v14 = vadd.f32 %v11299_v39, %v8046_v56 }
0x5213   : > { %10887 = vmatmul.mubr.msk.f32.vlgmr.msra.gmra.mxu0 %vm246_vm1, %v7894_v51 }
0x5214   : > { %10901 = vmatpush3.msra.mxu0 %v13014_v33  ;;  %10908 = vmatprep.mubr.msk.f32.mxu0 %vm11493_vm0, %v11492_v1 }
0x5215   : > { %10902 = vmatprep.subr.mxu0 %v11492_v1 }
0x5216   : > { %10903 = vmatpush3.msra.mxu0 %v13020_v36 }
0x5217   : > { %10904 = vmatprep.subr.mxu0 %v11492_v1 }
0x5218   : > { %10905 = vmatpush3.msra.mxu0 %v13024_v37 }
0x5219   : > { %10906 = vmatprep.subr.mxu0 %v11492_v1 }
0x521a   : > { %10907 = vmatpush3.msra.mxu0 %v13059_v5 }
0x521b   : > { %10922 = vmatprep.subr.mxu0 %v11492_v1 }
0x52d3   : > { %v7964_v10 = vpop.f32.mrf.mxu0 }
0x52d4   : > { %v7965_v54 = vadd.f32 %v13086_v7, %v7964_v10 }
0x52d5   : > { %v10888_v55 = vpop.f32.mrf.mxu0 }
0x52d6   : > { %11302 = vtanh.f32 %v7965_v54 }
0x52e3   : > { %v11303_v58 = vpop.eup %11302 }
0x52e4   : > { %v8048_v4 = vmul.f32 2.0, %v11303_v58  ;;  %v7970_v61 = vmul.f32 %v11303_v58, %v13304_v26 }
0x52e6   : > { %v7971_v62 = vadd.f32 %v7970_v61, %v13251_v60  ;;  %v8049_v18 = vadd.f32 %v8048_v4, %v8047_v14 }
0x52e8   : > { %10898 = vmatmul.mubr.msk.f32.vlgmr.msra.gmra.mxu1 %vm246_vm1, %v7971_v62 }
0x52e9   : > { %10912 = vmatpush3.msra.mxu1 %v13014_v33  ;;  %10919 = vmatprep.mubr.msk.f32.mxu1 %vm11493_vm0, %v11492_v1 }
0x52ea   : > { %10913 = vmatprep.subr.mxu1 %v11492_v1 }
0x52eb   : > { %10914 = vmatpush3.msra.mxu1 %v13020_v36 }
0x52ec   : > { %10915 = vmatprep.subr.mxu1 %v11492_v1 }
0x52ed   : > { %10916 = vmatpush3.msra.mxu1 %v13024_v37 }
0x52ee   : > { %10917 = vmatprep.subr.mxu1 %v11492_v1 }
0x52ef   : > { %10918 = vmatpush3.msra.mxu1 %v13059_v5 }
0x52f0   : > { %10933 = vmatprep.subr.mxu1 %v11492_v1 }
0x53a8   : > { %v8041_v63 = vpop.f32.mrf.mxu1 }
0x53a9   : > { %v8042_v3 = vadd.f32 %v13086_v7, %v8041_v63 }
0x53aa   : > { %v10899_v22 = vpop.f32.mrf.mxu1 }
0x53ab   : > { %11304 = vtanh.f32 %v8042_v3 }
0x53b8   : > { %v11305_v8 = vpop.eup %11304 }
0x53b9   : > { %v8050_v0 = vadd.f32 %v11305_v8, %v8049_v18 }
0x53bb   : > { %v8052_v9 = vmul.f32 %v13321_v29, %v8050_v0 }
0x53bd   : > { %v13325_v11 = vadd.f32 %v8052_v9, %v13251_v60 }
0x53bf   : > { %10909 = vmatmul.mubr.msk.f32.vlgmr.msra.gmra.mxu0 %vm246_vm1, %v13325_v11 }
0x53c0   : > { %10923 = vmatpush3.msra.mxu0 %v13014_v33  ;;  %10930 = vmatprep.mubr.msk.f32.mxu0 %vm11493_vm0, %v11492_v1 }
0x53c1   : > { %10924 = vmatprep.subr.mxu0 %v11492_v1 }
0x53c2   : > { %10925 = vmatpush3.msra.mxu0 %v13020_v36 }
0x53c3   : > { %10926 = vmatprep.subr.mxu0 %v11492_v1 }
0x53c4   : > { %10927 = vmatpush3.msra.mxu0 %v13024_v37 }
0x53c5   : > { %10928 = vmatprep.subr.mxu0 %v11492_v1 }
0x53c6   : > { %10929 = vmatpush3.msra.mxu0 %v13059_v5 }
0x53c7   : > { %10944 = vmatprep.subr.mxu0 %v11492_v1 }
0x547f   : > { %v8123_v35 = vpop.f32.mrf.mxu0 }
0x5480   : > { %v8124_v12 = vadd.f32 %v13086_v7, %v8123_v35 }
0x5481   : > { %v10910_v34 = vpop.f32.mrf.mxu0 }
0x5482   : > { %11306 = vtanh.f32 %v8124_v12 }
0x548f   : > { %v11307_v2 = vpop.eup %11306 }
0x5490   : > { %v8128_v13 = vmul.f32 %v11307_v2, %v13273_v38 }
0x5492   : > { %v8129_v15 = vadd.f32 %v8128_v13, %v13325_v11 }
0x5494   : > { %10920 = vmatmul.mubr.msk.f32.vlgmr.msra.gmra.mxu1 %vm246_vm1, %v8129_v15 }
0x5495   : > { %10934 = vmatpush3.msra.mxu1 %v13014_v33  ;;  %10941 = vmatprep.mubr.msk.f32.mxu1 %vm11493_vm0, %v11492_v1 }
0x5496   : > { %10935 = vmatprep.subr.mxu1 %v11492_v1 }
0x5497   : > { %10936 = vmatpush3.msra.mxu1 %v13020_v36 }
0x5498   : > { %10937 = vmatprep.subr.mxu1 %v11492_v1 }
0x5499   : > { %10938 = vmatpush3.msra.mxu1 %v13024_v37 }
0x549a   : > { %10939 = vmatprep.subr.mxu1 %v11492_v1 }
0x549b   : > { %10940 = vmatpush3.msra.mxu1 %v13059_v5 }
0x549c   : > { %10955 = vmatprep.subr.mxu1 %v11492_v1 }
0x5554   : > { %v8199_v41 = vpop.f32.mrf.mxu1 }
0x5555   : > { %v8200_v16 = vadd.f32 %v13086_v7, %v8199_v41 }
0x5556   : > { %v10921_v40 = vpop.f32.mrf.mxu1 }
0x5557   : > { %11308 = vtanh.f32 %v8200_v16  ;;  %v11347_v40 = vld [vmem:[#allocation7 + $0x8] sm:$0xff] }
0x5564   : > { %v11309_v27 = vpop.eup %11308 }
0x5565   : > { %v8204_v17 = vmul.f32 %v11309_v27, %v13273_v38  ;;  %v8356_v21 = vmul.f32 2.0, %v11309_v27 }
0x5567   : > { %v8205_v19 = vadd.f32 %v8204_v17, %v13325_v11  ;;  %v8357_v53 = vadd.f32 %v11307_v2, %v8356_v21 }
0x5569   : > { %10931 = vmatmul.mubr.msk.f32.vlgmr.msra.gmra.mxu0 %vm246_vm1, %v8205_v19 }
0x556a   : > { %10945 = vmatpush3.msra.mxu0 %v13014_v33  ;;  %10952 = vmatprep.mubr.msk.f32.mxu0 %vm11493_vm0, %v11492_v1 }
0x556b   : > { %10946 = vmatprep.subr.mxu0 %v11492_v1 }
0x556c   : > { %10947 = vmatpush3.msra.mxu0 %v13020_v36 }
0x556d   : > { %10948 = vmatprep.subr.mxu0 %v11492_v1 }
0x556e   : > { %10949 = vmatpush3.msra.mxu0 %v13024_v37 }
0x556f   : > { %10950 = vmatprep.subr.mxu0 %v11492_v1 }
0x5570   : > { %10951 = vmatpush3.msra.mxu0 %v13059_v5 }
0x5571   : > { %10966 = vmatprep.subr.mxu0 %v11492_v1 }
0x5629   : > { %v8275_v47 = vpop.f32.mrf.mxu0 }
0x562a   : > { %v8276_v20 = vadd.f32 %v13086_v7, %v8275_v47 }
0x562b   : > { %v10932_v46 = vpop.f32.mrf.mxu0 }
0x562c   : > { %11310 = vtanh.f32 %v8276_v20 }
0x5639   : > { %v11311_v48 = vpop.eup %11310 }
0x563a   : > { %v8358_v23 = vmul.f32 2.0, %v11311_v48  ;;  %v8280_v52 = vmul.f32 %v11311_v48, %v13304_v26 }
0x563c   : > { %v8281_v25 = vadd.f32 %v8280_v52, %v13325_v11  ;;  %v8359_v28 = vadd.f32 %v8358_v23, %v8357_v53 }
0x563e   : > { %10942 = vmatmul.mubr.msk.f32.vlgmr.msra.gmra.mxu1 %vm246_vm1, %v8281_v25 }
0x563f   : > { %10956 = vmatpush3.msra.mxu1 %v13014_v33  ;;  %10963 = vmatprep.mubr.msk.f32.mxu1 %vm11493_vm0, %v11492_v1 }
0x5640   : > { %10957 = vmatprep.subr.mxu1 %v11492_v1 }
0x5641   : > { %10958 = vmatpush3.msra.mxu1 %v13020_v36 }
0x5642   : > { %10959 = vmatprep.subr.mxu1 %v11492_v1 }
0x5643   : > { %10960 = vmatpush3.msra.mxu1 %v13024_v37 }
0x5644   : > { %10961 = vmatprep.subr.mxu1 %v11492_v1 }
0x5645   : > { %10962 = vmatpush3.msra.mxu1 %v13059_v5 }
0x5646   : > { %10977 = vmatprep.subr.mxu1 %v11492_v1 }
0x56fe   : > { %v8351_v59 = vpop.f32.mrf.mxu1 }
0x56ff   : > { %v8352_v57 = vadd.f32 %v13086_v7, %v8351_v59 }
0x5700   : > { %v10943_v30 = vpop.f32.mrf.mxu1 }
0x5701   : > { %11312 = vtanh.f32 %v8352_v57 }
0x570e   : > { %v11313_v60 = vpop.eup %11312 }
0x570f   : > { %v8360_v24 = vadd.f32 %v11313_v60, %v8359_v28 }
0x5711   : > { %v8361_v31 = vmul.f32 %v8360_v24, %v13321_v29 }
0x5713   : > { %v13384_v32 = vadd.f32 %v8361_v31, %v13325_v11 }
0x5715   : > { %10953 = vmatmul.mubr.msk.f32.vlgmr.msra.gmra.mxu0 %vm246_vm1, %v13384_v32 }
0x5716   : > { %10967 = vmatpush3.msra.mxu0 %v13014_v33  ;;  %10974 = vmatprep.mubr.msk.f32.mxu0 %vm11493_vm0, %v11492_v1 }
0x5717   : > { %10968 = vmatprep.subr.mxu0 %v11492_v1 }
0x5718   : > { %10969 = vmatpush3.msra.mxu0 %v13020_v36 }
0x5719   : > { %10970 = vmatprep.subr.mxu0 %v11492_v1 }
0x571a   : > { %10971 = vmatpush3.msra.mxu0 %v13024_v37 }
0x571b   : > { %10972 = vmatprep.subr.mxu0 %v11492_v1 }
0x571c   : > { %10973 = vmatpush3.msra.mxu0 %v13059_v5 }
0x571d   : > { %10988 = vmatprep.subr.mxu0 %v11492_v1 }
0x57d5   : > { %v8432_v39 = vpop.f32.mrf.mxu0 }
0x57d6   : > { %v8433_v42 = vadd.f32 %v13086_v7, %v8432_v39 }
0x57d7   : > { %v10954_v43 = vpop.f32.mrf.mxu0 }
0x57d8   : > { %11314 = vtanh.f32 %v8433_v42 }
0x57e5   : > { %v11315_v44 = vpop.eup %11314 }
0x57e6   : > { %v8437_v45 = vmul.f32 %v11315_v44, %v13273_v38 }
0x57e8   : > { %v8438_v6 = vadd.f32 %v8437_v45, %v13384_v32 }
0x57ea   : > { %10964 = vmatmul.mubr.msk.f32.vlgmr.msra.gmra.mxu1 %vm246_vm1, %v8438_v6 }
0x57eb   : > { %10978 = vmatpush3.msra.mxu1 %v13014_v33  ;;  %10985 = vmatprep.mubr.msk.f32.mxu1 %vm11493_vm0, %v11492_v1 }
0x57ec   : > { %10979 = vmatprep.subr.mxu1 %v11492_v1 }
0x57ed   : > { %10980 = vmatpush3.msra.mxu1 %v13020_v36 }
0x57ee   : > { %10981 = vmatprep.subr.mxu1 %v11492_v1 }
0x57ef   : > { %10982 = vmatpush3.msra.mxu1 %v13024_v37 }
0x57f0   : > { %10983 = vmatprep.subr.mxu1 %v11492_v1 }
0x57f1   : > { %10984 = vmatpush3.msra.mxu1 %v13059_v5 }
0x57f2   : > { %10999 = vmatprep.subr.mxu1 %v11492_v1 }
0x58aa   : > { %v8508_v49 = vpop.f32.mrf.mxu1 }
0x58ab   : > { %v8509_v50 = vadd.f32 %v13086_v7, %v8508_v49 }
0x58ac   : > { %v10965_v51 = vpop.f32.mrf.mxu1 }
0x58ad   : > { %11316 = vtanh.f32 %v8509_v50 }
0x58ba   : > { %v11317_v10 = vpop.eup %11316 }
0x58bb   : > { %v8513_v54 = vmul.f32 %v11317_v10, %v13273_v38  ;;  %v8665_v4 = vmul.f32 2.0, %v11317_v10 }
0x58bd   : > { %v8514_v55 = vadd.f32 %v8513_v54, %v13384_v32  ;;  %v8666_v62 = vadd.f32 %v11315_v44, %v8665_v4 }
0x58bf   : > { %10975 = vmatmul.mubr.msk.f32.vlgmr.msra.gmra.mxu0 %vm246_vm1, %v8514_v55 }
0x58c0   : > { %10989 = vmatpush3.msra.mxu0 %v13014_v33  ;;  %10996 = vmatprep.mubr.msk.f32.mxu0 %vm11493_vm0, %v11492_v1 }
0x58c1   : > { %10990 = vmatprep.subr.mxu0 %v11492_v1 }
0x58c2   : > { %10991 = vmatpush3.msra.mxu0 %v13020_v36 }
0x58c3   : > { %10992 = vmatprep.subr.mxu0 %v11492_v1 }
0x58c4   : > { %10993 = vmatpush3.msra.mxu0 %v13024_v37 }
0x58c5   : > { %10994 = vmatprep.subr.mxu0 %v11492_v1 }
0x58c6   : > { %10995 = vmatpush3.msra.mxu0 %v13059_v5 }
0x58c7   : > { %11010 = vmatprep.subr.mxu0 %v11492_v1 }
0x597f   : > { %v8584_v56 = vpop.f32.mrf.mxu0 }
0x5980   : > { %v8585_v58 = vadd.f32 %v13086_v7, %v8584_v56 }
0x5981   : > { %v10976_v14 = vpop.f32.mrf.mxu0 }
0x5982   : > { %11318 = vtanh.f32 %v8585_v58 }
0x598f   : > { %v11319_v61 = vpop.eup %11318 }
0x5990   : > { %v8667_v18 = vmul.f32 2.0, %v11319_v61  ;;  %v8589_v63 = vmul.f32 %v11319_v61, %v13304_v26 }
0x5992   : > { %v8590_v3 = vadd.f32 %v8589_v63, %v13384_v32  ;;  %v8668_v22 = vadd.f32 %v8667_v18, %v8666_v62 }
0x5994   : > { %10986 = vmatmul.mubr.msk.f32.vlgmr.msra.gmra.mxu1 %vm246_vm1, %v8590_v3 }
0x5995   : > { %11000 = vmatpush3.msra.mxu1 %v13014_v33  ;;  %11007 = vmatprep.mubr.msk.f32.mxu1 %vm11493_vm0, %v11492_v1 }
0x5996   : > { %11001 = vmatprep.subr.mxu1 %v11492_v1 }
0x5997   : > { %11002 = vmatpush3.msra.mxu1 %v13020_v36 }
0x5998   : > { %11003 = vmatprep.subr.mxu1 %v11492_v1 }
0x5999   : > { %11004 = vmatpush3.msra.mxu1 %v13024_v37 }
0x599a   : > { %11005 = vmatprep.subr.mxu1 %v11492_v1 }
0x599b   : > { %11006 = vmatpush3.msra.mxu1 %v13059_v5 }
0x599c   : > { %11021 = vmatprep.subr.mxu1 %v11492_v1 }
0x5a54   : > { %v8660_v8 = vpop.f32.mrf.mxu1 }
0x5a55   : > { %v8661_v0 = vadd.f32 %v13086_v7, %v8660_v8 }
0x5a56   : > { %v10987_v9 = vpop.f32.mrf.mxu1 }
0x5a57   : > { %11320 = vtanh.f32 %v8661_v0 }
0x5a64   : > { %v11321_v11 = vpop.eup %11320 }
0x5a65   : > { %v8669_v35 = vadd.f32 %v11321_v11, %v8668_v22 }
0x5a67   : > { %v8670_v12 = vmul.f32 %v8669_v35, %v13321_v29 }
0x5a69   : > { %v8671_v34 = vadd.f32 %v8670_v12, %v13384_v32 }
0x5a6b   : > { %10997 = vmatmul.mubr.msk.f32.vlgmr.msra.gmra.mxu0 %vm246_vm1, %v8671_v34 }
0x5a6c   : > { %11011 = vmatpush3.msra.mxu0 %v13014_v33  ;;  %11018 = vmatprep.mubr.msk.f32.mxu0 %vm11493_vm0, %v11492_v1 }
0x5a6d   : > { %11012 = vmatprep.subr.mxu0 %v11492_v1 }
0x5a6e   : > { %11013 = vmatpush3.msra.mxu0 %v13020_v36  ;;  %v11345_v36 = vld [vmem:[#allocation7 + $0x18] sm:$0xff] }
0x5a6f   : > { %11014 = vmatprep.subr.mxu0 %v11492_v1 }
0x5a70   : > { %11015 = vmatpush3.msra.mxu0 %v13024_v37  ;;  %v11346_v37 = vld [vmem:[#allocation7 + $0x10] sm:$0xff] }
0x5a71   : > { %11016 = vmatprep.subr.mxu0 %v11492_v1 }
0x5a72   : > { %11017 = vmatpush3.msra.mxu0 %v13059_v5 }
0x5b2b   : > { %v8741_v2 = vpop.f32.mrf.mxu0 }
0x5b2c   : > { %v8742_v13 = vadd.f32 %v13086_v7, %v8741_v2 }
0x5b2d   : > { %v10998_v15 = vpop.f32.mrf.mxu0 }
0x5b2e   : > { %11322 = vtanh.f32 %v8742_v13 }
0x5b3b   : > { %v11323_v33 = vpop.eup %11322 }
0x5b3c   : > { %v8746_v41 = vmul.f32 %v11323_v33, %v13273_v38 }
0x5b3e   : > { %v8747_v16 = vadd.f32 %v8746_v41, %v8671_v34 }
0x5b40   : > { %11008 = vmatmul.mubr.msk.f32.vlgmr.msra.gmra.mxu1 %vm246_vm1, %v8747_v16 }
0x5b41   : > { %11022 = vmatpush3.msra.mxu1 %v11345_v36  ;;  %11029 = vmatprep.mubr.msk.f32.mxu1 %vm11493_vm0, %v11492_v1 }
0x5b42   : > { %11023 = vmatprep.subr.mxu1 %v11492_v1 }
0x5b43   : > { %11024 = vmatpush3.msra.mxu1 %v11346_v37 }
0x5b44   : > { %11025 = vmatprep.subr.mxu1 %v11492_v1 }
0x5b45   : > { %11026 = vmatpush3.msra.mxu1 %v11347_v40 }
0x5b46   : > { %11027 = vmatprep.subr.mxu1 %v11492_v1 }
0x5b47   : > { %11028 = vmatpush3.msra.mxu1 %v13059_v5 }
0x5c00   : > { %v8817_v27 = vpop.f32.mrf.mxu1 }
0x5c01   : > { %v8818_v17 = vadd.f32 %v13086_v7, %v8817_v27 }
0x5c02   : > { %v11009_v19 = vpop.f32.mrf.mxu1 }
0x5c03   : > { %11324 = vtanh.f32 %v8818_v17 }
0x5c10   : > { %v11325_v47 = vpop.eup %11324 }
0x5c11   : > { %v8822_v20 = vmul.f32 %v11325_v47, %v13273_v38  ;;  %v8974_v1 = vmul.f32 2.0, %v11325_v47 }
0x5c13   : > { %v8823_v46 = vadd.f32 %v8822_v20, %v8671_v34  ;;  %v8975_v23 = vadd.f32 %v11323_v33, %v8974_v1 }
0x5c15   : > { %11019 = vmatmul.mubr.msk.f32.vlgmr.msra.gmra.mxu0 %vm246_vm1, %v8823_v46 }
0x5cd5   : > { %v8893_v21 = vpop.f32.mrf.mxu0 }
0x5cd6   : > { %v8894_v48 = vadd.f32 %v13086_v7, %v8893_v21 }
0x5cd7   : > { %v11020_v53 = vpop.f32.mrf.mxu0 }
0x5cd8   : > { %11326 = vtanh.f32 %v8894_v48 }
0x5ce5   : > { %v11327_v5 = vpop.eup %11326 }
0x5ce6   : > { %v8976_v52 = vmul.f32 2.0, %v11327_v5  ;;  %v8898_v25 = vmul.f32 %v11327_v5, %v13304_v26 }
0x5ce8   : > { %v8899_v28 = vadd.f32 %v8898_v25, %v8671_v34  ;;  %v8977_v38 = vadd.f32 %v8976_v52, %v8975_v23 }
0x5cea   : > { %11030 = vmatmul.mubr.msk.f32.vlgmr.msra.gmra.mxu1 %vm246_vm1, %v8899_v28 }
0x5daa   : > { %v8969_v59 = vpop.f32.mrf.mxu1 }
0x5dab   : > { %v8970_v57 = vadd.f32 %v13086_v7, %v8969_v59 }
0x5dac   : > { %v11031_v30 = vpop.f32.mrf.mxu1 }
0x5dad   : > { %11328 = vtanh.f32 %v8970_v57 }
0x5dba   : > { %v11329_v60 = vpop.eup %11328 }
0x5dbb   : > { %v8978_v24 = vadd.f32 %v11329_v60, %v8977_v38 }
0x5dbd   : > { %v8979_v31 = vmul.f32 %v8978_v24, %v13321_v29 }
0x5dbf   : > { %v8980_v26 = vadd.f32 %v8979_v31, %v8671_v34 }
0x5dc1   : > { %9235 = vst.msk [vmem:[%s11662_s21 + $0x38] sm:$0xff] %vm246_vm1, %v8980_v26 }
0x5dc2   : > { %11426 = shalt.err (!%p11423_p10)
}
0x5dc3   : > { %s11427_s21 = scalar_lea.hbm %s13475_s9, 1024  ;;  %s11431_s29 = scalar_lea.hbm %s13526_s4, 2048 }
0x5dc4   : > { %p11428_p12 = scmp.ne.s32.totalorder %s13475_s9, %s11427_s21  ;;  %p11432_p4 = scmp.lt.s32.totalorder %s13475_s9, %s13526_s4 }
0x5dc5   : > { %p11433_p6 = scmp.lt.s32.totalorder %s11431_s29, %s11427_s21 }
0x5dc6   : > { %p11429_p9 = pnand %p11428_p12, %p13543_p11 }
0x5dc7   : > { %p11434_p8 = por %p11433_p6, %p11432_p4 }
0x5dc8   : > { %p11430_p1 = pneg %p11429_p9 }
0x5dca   : > { %p11435_p3 = pnand %p11434_p8, %p11430_p1 }
0x5dcc   : > { %11438 = shalt.err (!%p11435_p3)
}
0x5dcd   : > { %s11495_s5 = smov 128   ;;  %s11496_s23 = smov 256  }
0x5dce   : > { %s11497_s30 = smov 8  }
0x5dcf   : > { %11042 = dma.vmem_to_hbm [thread:$0]  (%p13543_p11), %s13477_s25, 1024, %s13475_s9, %s8984_s10, %s11495_s5, %s11496_s23, %s11497_s30  }
0x5dd0 PF: > { %s9011_s6 = sand.u32 1, %s11473_s15   ;;  %p13544_p7 = scmp.ne.s32.totalorder %s13532_s22, 0 }
0x5dd1   : > { %p13545_p13 = scmp.ge.s32.totalorder %s11485_s18, 2  ;;  %s9012_s11 = scalar_lea.sflag [#allocation4], %s9011_s6 }
0x5dd3   : > { %p11056_p0 = pnand %p13545_p13, %p13544_p7 }
0x5dd5   : > { %p11057_p5 = pneg %p11056_p0 }
0x5dd7   : > { %11468 = dma.done.wait (%p11057_p5), %s9012_s11, 1024  }
0x5dd8   : > { %11470 = vsyncadd (%p11057_p5), %s9012_s11, 4294966272  ;;  %p19_p2 = scmp.ge.s32.totalorder %s11577_s27, 4   ;;  %s13546_s15 = smov %s11477_s16 }
0x5dd9   : > { %s13547_s16 = smov %s11481_s17  ;;  %s13548_s17 = smov %s11598_s12 }
0x5dda   : > { %s13549_s18 = smov %s11577_s27  ;;  %21 = sbr.rel (!%p19_p2) target bundleno = 7 (0x7), region = 97 }
0x5ddf   :  { %9017 = vsyncpa [#allocation3], 1 }
0x5de0   :  { %9019 = vsyncpa [#allocation3 + $0x1], 1 }
0x5de1   :  { %9020 = vsyncpa [#allocation8], 1 }
0x5de2   :  { %9021 = vsyncpa [#allocation4], 1 }
0x5de3   :  { %9023 = vsyncpa [#allocation4 + $0x1], 1 }
0x5de4   :  { %9024 = vsyncpa [#allocation5], 1 }
0x5de5   :  { %9026 = vsyncpa [#allocation5 + $0x1], 1 }

</bundles_post_ra>
